<compile_context>
chip_gen: v6e
topology: v6e:2x2x1
jax: 0.10.0
libtpu: 0.0.40
codegen_flags: <defaults>
</compile_context>

<pallas_src>
import numpy as np
import jax
import jax.numpy as jnp
from jax.experimental import pallas as pl
from jax.experimental.pallas import tpu as pltpu

NUM_FEATURES = 468
NUM_CLASSES = 2
HIDDEN1 = 256
HIDDEN2 = 64
HIDDEN3 = 64
BN_EPS = 1e-5

IN_WIDTH = 2 * NUM_FEATURES      # 936: full input row, fed raw (f32) to the kernel
H1_WIDTH = 2 * HIDDEN1           # 512: both branches side-by-side on the lane axis
H2_WIDTH = 2 * HIDDEN2           # 128: == torch.cat((branch_1, branch_2), dim=1)
PADDED_CLASSES = 128             # lane-dense output width; sliced to NUM_CLASSES outside
MAX_BATCH_TILE = 1024


def _classifier_kernel(
    x_ref,
    w1_ref, b1_ref,
    w2_ref, b2_ref,
    w3_ref, b3_ref,
    w4_ref, b4_ref,
    o_ref,
):
    # Raw f32 input tile -> bf16 for the MXU (cheap VPU cast, no HBM round-trip).
    xb = x_ref[...].astype(jnp.bfloat16)                              # (TB, 936)

    # Shared blockCNN, both branches at once via block-diagonal folded weights.
    h = jnp.dot(xb, w1_ref[...], preferred_element_type=jnp.float32) + b1_ref[...]
    h = jnp.maximum(h, 0.0)                                           # (TB, 512)

    h = jnp.dot(h.astype(jnp.bfloat16), w2_ref[...],
                preferred_element_type=jnp.float32) + b2_ref[...]
    h = jnp.maximum(h, 0.0)                                           # (TB, 128) == cat(b1, b2)

    # classified: Linear(128->64) + folded BN + ReLU, then Linear(64->2) padded to 128 lanes.
    h = jnp.dot(h.astype(jnp.bfloat16), w3_ref[...],
                preferred_element_type=jnp.float32) + b3_ref[...]
    h = jnp.maximum(h, 0.0)                                           # (TB, 64)

    out = jnp.dot(h.astype(jnp.bfloat16), w4_ref[...],
                  preferred_element_type=jnp.float32) + b4_ref[...]   # (TB, 128)
    o_ref[...] = out.astype(o_ref.dtype)


def _pick_batch_tile(batch):
    """Largest tile <= MAX_BATCH_TILE (multiple of 8) that still leaves >= 2 grid
    steps when possible (v7x has 2 TensorCores sharded over the parallel axis)."""
    half = (batch + 1) // 2
    tile = ((half + 7) // 8) * 8
    return max(8, min(MAX_BATCH_TILE, tile))


def binary_classifier_forward(x, kp, *, batch_tile=None):
    """x: (B, 2*NUM_FEATURES) float32 -> (B, NUM_CLASSES) float32 (eval-mode BN)."""
    B = x.shape[0]
    if batch_tile is None:
        batch_tile = _pick_batch_tile(B)
    pad_b = (-B) % batch_tile
    pB = B + pad_b
    if pad_b:
        x = jnp.pad(x, ((0, pad_b), (0, 0)))   # batch-only pad; features go in raw

    weight_args = (
        kp["w1"], kp["b1"],
        kp["w2"], kp["b2"],
        kp["w3"], kp["b3"],
        kp["w4"], kp["b4"],
    )

    x_spec = pl.BlockSpec((batch_tile, IN_WIDTH), lambda i: (i, 0))
    # Weights/biases: identical block every grid step -> stay VMEM-resident.
    w_specs = [pl.BlockSpec(w.shape, lambda i: (0, 0)) for w in weight_args]

    macs_per_row = (IN_WIDTH * H1_WIDTH + H1_WIDTH * H2_WIDTH
                    + H2_WIDTH * HIDDEN3 + HIDDEN3 * PADDED_CLASSES)
    flops = 2 * pB * macs_per_row
    weight_bytes = sum(int(np.prod(w.shape)) * w.dtype.itemsize for w in weight_args)
    bytes_accessed = pB * IN_WIDTH * 4 + weight_bytes + pB * PADDED_CLASSES * 4

    out = pl.pallas_call(
        _classifier_kernel,
        out_shape=jax.ShapeDtypeStruct((pB, PADDED_CLASSES), jnp.float32),
        grid=(pB // batch_tile,),
        in_specs=[x_spec] + w_specs,
        out_specs=pl.BlockSpec((batch_tile, PADDED_CLASSES), lambda i: (i, 0)),
        compiler_params=pltpu.CompilerParams(
            dimension_semantics=("parallel",),
            vmem_limit_bytes=32 * 1024 * 1024,   # covers TB=1024 on v5e's 16 MiB default
        ),
        cost_estimate=pl.CostEstimate(
            flops=flops, transcendentals=0, bytes_accessed=bytes_accessed),
    )(x, *weight_args)
    return out[:B, :NUM_CLASSES]


def _make_params(key):
    """PyTorch-style raw parameters: Linear weights stored (in, out); BatchNorm
    with non-trivial gamma/beta/running stats so the fold is actually exercised."""
    def linear(key, fan_in, fan_out):
        k_w, k_b = jax.random.split(key)
        bound = 1.0 / np.sqrt(fan_in)
        w = jax.random.uniform(k_w, (fan_in, fan_out), jnp.float32, -bound, bound)
        b = jax.random.uniform(k_b, (1, fan_out), jnp.float32, -bound, bound)
        return w, b

    def bn(key, n):
        k1, k2, k3, k4 = jax.random.split(key, 4)
        return dict(
            gamma=jax.random.uniform(k1, (1, n), jnp.float32, 0.5, 1.5),
            beta=0.1 * jax.random.normal(k2, (1, n), jnp.float32),
            mean=0.1 * jax.random.normal(k3, (1, n), jnp.float32),
            var=jax.random.uniform(k4, (1, n), jnp.float32, 0.5, 1.5),
        )

    ks = jax.random.split(key, 7)
    w1, b1 = linear(ks[0], NUM_FEATURES, HIDDEN1)
    w2, b2 = linear(ks[1], HIDDEN1, HIDDEN2)
    w3, b3 = linear(ks[2], 2 * HIDDEN2, HIDDEN3)
    w4, b4 = linear(ks[3], HIDDEN3, NUM_CLASSES)
    return dict(
        w1=w1, b1=b1, bn1=bn(ks[4], HIDDEN1),
        w2=w2, b2=b2, bn2=bn(ks[5], HIDDEN2),
        w3=w3, b3=b3, bn3=bn(ks[6], HIDDEN3),
        w4=w4, b4=b4,
    )


def _fold_params(p):
    """Fold eval-mode BatchNorm into the preceding Linear, build block-diagonal
    weights for the shared blockCNN (both branches on the lane axis), and pad
    the final layer to a 128-lane-dense output.  Weights bf16 (MXU), biases f32."""
    # TODO(synk): training-mode BatchNorm (batch statistics) is not implemented.
    def fold(w, b, bn):
        scale = bn["gamma"] / jnp.sqrt(bn["var"] + BN_EPS)    # (1, out)
        shift = bn["beta"] - bn["mean"] * scale
        return w * scale, b * scale + shift

    w1, b1 = fold(p["w1"], p["b1"], p["bn1"])                 # (468, 256), (1, 256)
    w2, b2 = fold(p["w2"], p["b2"], p["bn2"])                 # (256, 64),  (1, 64)
    w3, b3 = fold(p["w3"], p["b3"], p["bn3"])                 # (128, 64),  (1, 64)

    z1 = jnp.zeros_like(w1)
    w1_big = jnp.block([[w1, z1], [z1, w1]])                  # (936, 512) block-diag
    b1_big = jnp.concatenate([b1, b1], axis=1)                # (1, 512)

    z2 = jnp.zeros_like(w2)
    w2_big = jnp.block([[w2, z2], [z2, w2]])                  # (512, 128) block-diag
    b2_big = jnp.concatenate([b2, b2], axis=1)                # (1, 128)

    w4 = jnp.pad(p["w4"], ((0, 0), (0, PADDED_CLASSES - NUM_CLASSES)))  # (64, 128)
    b4 = jnp.pad(p["b4"], ((0, 0), (0, PADDED_CLASSES - NUM_CLASSES)))  # (1, 128)

    bf = jnp.bfloat16
    return dict(
        w1=w1_big.astype(bf), b1=b1_big,
        w2=w2_big.astype(bf), b2=b2_big,
        w3=w3.astype(bf), b3=b3,
        w4=w4.astype(bf), b4=b4,
    )


def _reference_forward(x, p):
    """Pure-JAX f32 reference mirroring the original PyTorch module (eval BN)."""
    def bn_eval(h, bn):
        scale = bn["gamma"] / jnp.sqrt(bn["var"] + BN_EPS)
        return (h - bn["mean"]) * scale + bn["beta"]

    def block_cnn(xb):
        h = xb @ p["w1"] + p["b1"]
        h = jnp.maximum(bn_eval(h, p["bn1"]), 0.0)
        h = h @ p["w2"] + p["b2"]
        h = jnp.maximum(bn_eval(h, p["bn2"]), 0.0)
        return h

    b1 = block_cnn(x[:, :NUM_FEATURES])
    b2 = block_cnn(x[:, NUM_FEATURES:])
    h = jnp.concatenate([b1, b2], axis=1)
    h = h @ p["w3"] + p["b3"]
    h = jnp.maximum(bn_eval(h, p["bn3"]), 0.0)
    return h @ p["w4"] + p["b4"]


if __name__ == "__main__":
    key = jax.random.PRNGKey(0)
    k_x, k_p = jax.random.split(key)

    B = 512  # auto batch_tile = 256 -> two "parallel" grid steps (pipelined DMA, v7x megacore)
    x = jax.random.normal(k_x, (B, 2 * NUM_FEATURES), jnp.float32)
    raw_params = _make_params(k_p)
    kernel_params = _fold_params(raw_params)

    out = jax.block_until_ready(binary_classifier_forward(x, kernel_params))
    ref = jax.block_until_ready(_reference_forward(x, raw_params))

    assert out.shape == (B, NUM_CLASSES)
    # bf16 MXU operands vs. a pure-f32 reference -> loose tolerance.
    np.testing.assert_allclose(np.asarray(out), np.asarray(ref), rtol=5e-2, atol=5e-2)

    print("KERNEL_OK")
</pallas_src>

<mosaic_0001>
module attributes {stable_mosaic.version = 11 : i64} {
  func.func @_classifier_kernel(%arg0: i32, %arg1: memref<256x936xf32, #tpu.memory_space<vmem>>, %arg2: memref<936x512xbf16, #tpu.memory_space<vmem>>, %arg3: memref<1x512xf32, #tpu.memory_space<vmem>>, %arg4: memref<512x128xbf16, #tpu.memory_space<vmem>>, %arg5: memref<1x128xf32, #tpu.memory_space<vmem>>, %arg6: memref<128x64xbf16, #tpu.memory_space<vmem>>, %arg7: memref<1x64xf32, #tpu.memory_space<vmem>>, %arg8: memref<64x128xbf16, #tpu.memory_space<vmem>>, %arg9: memref<1x128xf32, #tpu.memory_space<vmem>>, %arg10: memref<256x128xf32, #tpu.memory_space<vmem>>) attributes {dimension_semantics = [#tpu.dimension_semantics<parallel>], iteration_bounds = array<i64: 2>, scalar_prefetch = 0 : i64, scratch_operands = 0 : i64, tpu.core_type = #tpu.core_type<tc>, window_params = [{transform_indices = @transform_0, window_bounds = array<i64: 256, 936>}, {pipeline_mode = #tpu.pipeline_mode<synchronous>, transform_indices = @transform_1, window_bounds = array<i64: 936, 512>}, {pipeline_mode = #tpu.pipeline_mode<synchronous>, transform_indices = @transform_2, window_bounds = array<i64: 1, 512>}, {pipeline_mode = #tpu.pipeline_mode<synchronous>, transform_indices = @transform_3, window_bounds = array<i64: 512, 128>}, {pipeline_mode = #tpu.pipeline_mode<synchronous>, transform_indices = @transform_4, window_bounds = array<i64: 1, 128>}, {pipeline_mode = #tpu.pipeline_mode<synchronous>, transform_indices = @transform_5, window_bounds = array<i64: 128, 64>}, {pipeline_mode = #tpu.pipeline_mode<synchronous>, transform_indices = @transform_6, window_bounds = array<i64: 1, 64>}, {pipeline_mode = #tpu.pipeline_mode<synchronous>, transform_indices = @transform_7, window_bounds = array<i64: 64, 128>}, {pipeline_mode = #tpu.pipeline_mode<synchronous>, transform_indices = @transform_8, window_bounds = array<i64: 1, 128>}, {transform_indices = @transform_9, window_bounds = array<i64: 256, 128>}]} {
    %c0 = arith.constant 0 : index
    %c0_0 = arith.constant 0 : index
    %0 = vector.load %arg1[%c0, %c0_0] : memref<256x936xf32, #tpu.memory_space<vmem>>, vector<256x936xf32>
    %1 = arith.truncf %0 : vector<256x936xf32> to vector<256x936xbf16>
    %c0_1 = arith.constant 0 : index
    %c0_2 = arith.constant 0 : index
    %2 = vector.load %arg2[%c0_1, %c0_2] : memref<936x512xbf16, #tpu.memory_space<vmem>>, vector<936x512xbf16>
    %cst = arith.constant dense<0.000000e+00> : vector<256x512xf32>
    %3 = tpu.matmul %1, %2, %cst {dimension_numbers = #tpu.dot_dimension_numbers<[1], [0], [0], [1], [0, 0, 1, 1], [], []>} : vector<256x936xbf16>, vector<936x512xbf16>, vector<256x512xf32> -> vector<256x512xf32>
    %c0_3 = arith.constant 0 : index
    %c0_4 = arith.constant 0 : index
    %4 = vector.load %arg3[%c0_3, %c0_4] : memref<1x512xf32, #tpu.memory_space<vmem>>, vector<1x512xf32>
    %5 = vector.broadcast %4 : vector<1x512xf32> to vector<256x512xf32>
    %6 = arith.addf %3, %5 : vector<256x512xf32>
    %cst_5 = arith.constant 0.000000e+00 : f32
    %7 = vector.broadcast %cst_5 : f32 to vector<256x512xf32>
    %8 = arith.maximumf %6, %7 : vector<256x512xf32>
    %9 = arith.truncf %8 : vector<256x512xf32> to vector<256x512xbf16>
    %c0_6 = arith.constant 0 : index
    %c0_7 = arith.constant 0 : index
    %10 = vector.load %arg4[%c0_6, %c0_7] : memref<512x128xbf16, #tpu.memory_space<vmem>>, vector<512x128xbf16>
    %cst_8 = arith.constant dense<0.000000e+00> : vector<256x128xf32>
    %11 = tpu.matmul %9, %10, %cst_8 {dimension_numbers = #tpu.dot_dimension_numbers<[1], [0], [0], [1], [0, 0, 1, 1], [], []>} : vector<256x512xbf16>, vector<512x128xbf16>, vector<256x128xf32> -> vector<256x128xf32>
    %c0_9 = arith.constant 0 : index
    %c0_10 = arith.constant 0 : index
    %12 = vector.load %arg5[%c0_9, %c0_10] : memref<1x128xf32, #tpu.memory_space<vmem>>, vector<1x128xf32>
    %13 = vector.broadcast %12 : vector<1x128xf32> to vector<256x128xf32>
    %14 = arith.addf %11, %13 : vector<256x128xf32>
    %cst_11 = arith.constant 0.000000e+00 : f32
    %15 = vector.broadcast %cst_11 : f32 to vector<256x128xf32>
    %16 = arith.maximumf %14, %15 : vector<256x128xf32>
    %17 = arith.truncf %16 : vector<256x128xf32> to vector<256x128xbf16>
    %c0_12 = arith.constant 0 : index
    %c0_13 = arith.constant 0 : index
    %18 = vector.load %arg6[%c0_12, %c0_13] : memref<128x64xbf16, #tpu.memory_space<vmem>>, vector<128x64xbf16>
    %cst_14 = arith.constant dense<0.000000e+00> : vector<256x64xf32>
    %19 = tpu.matmul %17, %18, %cst_14 {dimension_numbers = #tpu.dot_dimension_numbers<[1], [0], [0], [1], [0, 0, 1, 1], [], []>} : vector<256x128xbf16>, vector<128x64xbf16>, vector<256x64xf32> -> vector<256x64xf32>
    %c0_15 = arith.constant 0 : index
    %c0_16 = arith.constant 0 : index
    %20 = vector.load %arg7[%c0_15, %c0_16] : memref<1x64xf32, #tpu.memory_space<vmem>>, vector<1x64xf32>
    %21 = vector.broadcast %20 : vector<1x64xf32> to vector<256x64xf32>
    %22 = arith.addf %19, %21 : vector<256x64xf32>
    %cst_17 = arith.constant 0.000000e+00 : f32
    %23 = vector.broadcast %cst_17 : f32 to vector<256x64xf32>
    %24 = arith.maximumf %22, %23 : vector<256x64xf32>
    %25 = arith.truncf %24 : vector<256x64xf32> to vector<256x64xbf16>
    %c0_18 = arith.constant 0 : index
    %c0_19 = arith.constant 0 : index
    %26 = vector.load %arg8[%c0_18, %c0_19] : memref<64x128xbf16, #tpu.memory_space<vmem>>, vector<64x128xbf16>
    %cst_20 = arith.constant dense<0.000000e+00> : vector<256x128xf32>
    %27 = tpu.matmul %25, %26, %cst_20 {dimension_numbers = #tpu.dot_dimension_numbers<[1], [0], [0], [1], [0, 0, 1, 1], [], []>} : vector<256x64xbf16>, vector<64x128xbf16>, vector<256x128xf32> -> vector<256x128xf32>
    %c0_21 = arith.constant 0 : index
    %c0_22 = arith.constant 0 : index
    %28 = vector.load %arg9[%c0_21, %c0_22] : memref<1x128xf32, #tpu.memory_space<vmem>>, vector<1x128xf32>
    %29 = vector.broadcast %28 : vector<1x128xf32> to vector<256x128xf32>
    %30 = arith.addf %27, %29 : vector<256x128xf32>
    %c0_23 = arith.constant 0 : index
    %c0_24 = arith.constant 0 : index
    %31 = vector.load %arg10[%c0_23, %c0_24] : memref<256x128xf32, #tpu.memory_space<vmem>>, vector<256x128xf32>
    tpu.vector_store %arg10[%c0_23, %c0_24], %30 {strides = array<i32>} : memref<256x128xf32, #tpu.memory_space<vmem>>, vector<256x128xf32>,
    return
  }
  func.func @transform_0(%arg0: i32) -> (i32, i32) {
    %c0_i32 = arith.constant 0 : i32
    %c0_i32_0 = arith.constant 0 : i32
    return %arg0, %c0_i32 : i32, i32
  }
  func.func @transform_1(%arg0: i32) -> (i32, i32) {
    %c0_i32 = arith.constant 0 : i32
    %c0_i32_0 = arith.constant 0 : i32
    %c0_i32_1 = arith.constant 0 : i32
    return %c0_i32, %c0_i32_0 : i32, i32
  }
  func.func @transform_2(%arg0: i32) -> (i32, i32) {
    %c0_i32 = arith.constant 0 : i32
    %c0_i32_0 = arith.constant 0 : i32
    %c0_i32_1 = arith.constant 0 : i32
    return %c0_i32, %c0_i32_0 : i32, i32
  }
  func.func @transform_3(%arg0: i32) -> (i32, i32) {
    %c0_i32 = arith.constant 0 : i32
    %c0_i32_0 = arith.constant 0 : i32
    %c0_i32_1 = arith.constant 0 : i32
    return %c0_i32, %c0_i32_0 : i32, i32
  }
  func.func @transform_4(%arg0: i32) -> (i32, i32) {
    %c0_i32 = arith.constant 0 : i32
    %c0_i32_0 = arith.constant 0 : i32
    %c0_i32_1 = arith.constant 0 : i32
    return %c0_i32, %c0_i32_0 : i32, i32
  }
  func.func @transform_5(%arg0: i32) -> (i32, i32) {
    %c0_i32 = arith.constant 0 : i32
    %c0_i32_0 = arith.constant 0 : i32
    %c0_i32_1 = arith.constant 0 : i32
    return %c0_i32, %c0_i32_0 : i32, i32
  }
  func.func @transform_6(%arg0: i32) -> (i32, i32) {
    %c0_i32 = arith.constant 0 : i32
    %c0_i32_0 = arith.constant 0 : i32
    %c0_i32_1 = arith.constant 0 : i32
    return %c0_i32, %c0_i32_0 : i32, i32
  }
  func.func @transform_7(%arg0: i32) -> (i32, i32) {
    %c0_i32 = arith.constant 0 : i32
    %c0_i32_0 = arith.constant 0 : i32
    %c0_i32_1 = arith.constant 0 : i32
    return %c0_i32, %c0_i32_0 : i32, i32
  }
  func.func @transform_8(%arg0: i32) -> (i32, i32) {
    %c0_i32 = arith.constant 0 : i32
    %c0_i32_0 = arith.constant 0 : i32
    %c0_i32_1 = arith.constant 0 : i32
    return %c0_i32, %c0_i32_0 : i32, i32
  }
  func.func @transform_9(%arg0: i32) -> (i32, i32) {
    %c0_i32 = arith.constant 0 : i32
    %c0_i32_0 = arith.constant 0 : i32
    return %arg0, %c0_i32 : i32, i32
  }
}

</mosaic_0001>

<bundles_post_ra>
// kernel: tpu_custom_call.1
= control target key start
LH: loop header
LB: loop body
LE: loop exit
PB: predicated region body
PF: predicated region fallthrough
CT: control target
= control target key end

     0   :  { %14 = vsyncpa [#allocation3], 0  ;;  %s9179_s0 = inlined_call_operand.vmem [shape: f32[512,936], index: 0, kind: input, shape index: {}]   ;;  %s9180_s1 = inlined_call_operand.vmem [shape: bf16[936,512], index: 1, kind: input, shape index: {}]   ;;  %s9181_s2 = inlined_call_operand.vmem [shape: f32[1,512], index: 2, kind: input, shape index: {}]   ;;  %s9182_s3 = inlined_call_operand.vmem [shape: bf16[512,128], index: 3, kind: input, shape index: {}]   ;;  %s9183_s4 = inlined_call_operand.vmem [shape: f32[1,128], index: 4, kind: input, shape index: {}]   ;;  %s9184_s5 = inlined_call_operand.vmem [shape: bf16[128,64], index: 5, kind: input, shape index: {}]   ;;  %s9185_s6 = inlined_call_operand.vmem [shape: f32[1,64], index: 6, kind: input, shape index: {}]   ;;  %s9186_s7 = inlined_call_operand.vmem [shape: bf16[64,128], index: 7, kind: input, shape index: {}]   ;;  %s9187_s8 = inlined_call_operand.vmem [shape: f32[1,128], index: 8, kind: input, shape index: {}]   ;;  %s9188_s9 = inlined_call_operand.hbm [shape: f32[512,128], index: 9, kind: output, shape index: {}]  }
   0x1   :  { %16 = vsyncpa [#allocation3 + $0x1], 0  ;;  %s6473_s30 = smov 0   ;;  %s6475_s10 = smov 0  }
   0x2   :  { %s6477_s11 = smov 0   ;;  %s6479_s12 = smov 0  }
   0x3 LB: > { %s6494_s13 = sadd.s32 4294967295, %s6418_s12   ;;  %s5216_s14 = sadd.s32 4294967294, %s6418_s12   ;;  %s6418_s12 = sphi %s6479_s12, %s9616_s12   ;;  %s6414_s11 = sphi %s6477_s11, %s9615_s11   ;;  %s6410_s10 = sphi %s6475_s10, %s9614_s10   ;;  %s6406_s30 = sphi %s6473_s30, %s9613_s30  }
   0x4   : > { %s6498_s15 = sadd.s32 1, %s6418_s12   ;;  %s223_s16 = sadd.s32 1, %s6414_s11 }
   0x5   : > { %s220_s17 = ssub.s32 %s6418_s12, %s6498_s15  ;;  %p233_p0 = scmp.ne.s32.totalorder %s6414_s11, %s6410_s10 }
   0x6   : > { %p221_p1 = scmp.eq.s32.totalorder %s220_s17, 0  ;;  %p234_p2 = scmp.eq.s32.totalorder %s6494_s13, 1 }
   0x7   : > { %p239_p3 = scmp.ne.s32.totalorder %s6410_s10, %s6406_s30  ;;  %p240_p4 = scmp.eq.s32.totalorder %s5216_s14, 1 }
   0x8   : > { %s6509_s18 = scalar_select %p221_p1, %s6414_s11, %s223_s16  }
   0x9   : > { %p6511_p5 = por %p234_p2, %p233_p0  ;;  %p6515_p6 = por %p240_p4, %p239_p3 }
   0xa   : > { %p5219_p7 = scmp.ge.s32.totalorder %s6418_s12, 1  ;;  %p292_p8 = scmp.lt.s32.totalorder %s6418_s12, 3 }
   0xc   : > { %p293_p9 = pnand %p5219_p7, %p292_p8 }
   0xe   : > { %296 = sbr.rel (%p293_p9) target bundleno = 1424 (0x590), region = 56 }
  0x13   : > { %v5961_v0 = vld [vmem:[%s9180_s1 + $0xe4] ss:$16 sps:$4 sm:$0xff]   ;;  %v5965_v2 = vld [vmem:[%s9180_s1 + $0xe0] ss:$16 sps:$4 sm:$0xff]   ;;  %s5221_s21 = sshll.u32 %s6494_s13, 5  ;;  %vm2197_vm0 = vcmask 1043456  }
  0x14   : > { %v5963_v1 = vld [vmem:[%s9180_s1 + $0x2e4] ss:$16 sps:$4 sm:$0xff]   ;;  %2210 = vmatprep.subr.bf16.mxu0 %v5961_v0  ;;  %v5966_v3 = vld [vmem:[%s9180_s1 + $0x2e0] ss:$16 sps:$4 sm:$0xff]   ;;  %p330_p10 = scmp.lt.s32.totalorder %s5221_s21, 63  ;;  %vm2148_vm1 = vcmask 326656  }
  0x15   : > { %2403 = vmatprep.subr.bf16.mxu1 %v5963_v1  ;;  %v5967_v4 = vld [vmem:[%s9180_s1 + $0xc4] ss:$16 sps:$4 sm:$0xff]   ;;  %2211 = vmatpush1.bf16.msra.mxu0 %v5965_v2  ;;  %v5971_v6 = vld [vmem:[%s9180_s1 + $0xc0] ss:$16 sps:$4 sm:$0xff]   ;;  %vm4898_vm2 = vcmask 523264   ;;  %s326_s28 = sand.u32 1, %s6410_s10  }
  0x16   : > { %2404 = vmatpush1.bf16.msra.mxu1 %v5966_v3  ;;  %v5969_v5 = vld [vmem:[%s9180_s1 + $0x2c4] ss:$16 sps:$4 sm:$0xff]   ;;  %2212 = vmatprep.subr.bf16.mxu0 %v5967_v4  ;;  %v5972_v7 = vld [vmem:[%s9180_s1 + $0x2c0] ss:$16 sps:$4 sm:$0xff]   ;;  %s9618_s21 = smov (!%p330_p10, %s5221_s21), 63  ;;  %s5220_s29 = sshll.u32 %s326_s28, 8 }
  0x17   : > { %2405 = vmatprep.subr.bf16.mxu1 %v5969_v5  ;;  %v5973_v8 = vld [vmem:[%s9180_s1 + $0xa4] ss:$16 sps:$4 sm:$0xff]   ;;  %v5977_v10 = vld [vmem:[%s9180_s1 + $0xa0] ss:$16 sps:$4 sm:$0xff]   ;;  %s5562_s22 = sshll.u32 %s9618_s21, 6  ;;  %s9063_s17 = scalar_lea.vmem [#allocation2], %s5220_s29 }
  0x18   : > { %v5975_v9 = vld [vmem:[%s9180_s1 + $0x2a4] ss:$16 sps:$4 sm:$0xff]   ;;  %v5978_v11 = vld [vmem:[%s9180_s1 + $0x2a0] ss:$16 sps:$4 sm:$0xff]   ;;  %s6657_s16 = scalar_lea.vmem %s9179_s0, %s5562_s22  ;;  %s5563_s23 = sshll.u32 %s6494_s13, 12 }
  0x19   : > { %2213 = vmatpush1.bf16.msra.mxu0 %v5971_v6  ;;  %v5979_v12 = vld [vmem:[%s9180_s1 + $0x84] ss:$16 sps:$4 sm:$0xff]   ;;  %v5983_v14 = vld [vmem:[%s9180_s1 + $0x80] ss:$16 sps:$4 sm:$0xff]   ;;  %v339_v46 = vld [vmem:[%s6657_s16 + $0x8] sm:$0xff]  ;;  %s5154_s24 = sshll.u32 %s9063_s17, 4  ;;  %s9130_s25 = scalar_lea.hbm %s9188_s9, %s5563_s23  ;;  %s9132_s24 = int_to_ptr.vmem [resolvable:$true] %s5154_s24 }
  0x1a   : > { %2406 = vmatpush1.bf16.msra.mxu1 %v5972_v7  ;;  %2214 = vmatprep.subr.bf16.mxu0 %v5973_v8  ;;  %v5981_v13 = vld [vmem:[%s9180_s1 + $0x284] ss:$16 sps:$4 sm:$0xff]   ;;  %v5984_v15 = vld [vmem:[%s9180_s1 + $0x280] ss:$16 sps:$4 sm:$0xff]   ;;  %v347_v47 = vld [vmem:[%s6657_s16 + $0x48] sm:$0xff]  ;;  %s9139_s13 = scalar_lea.sflag [#allocation3], %s326_s28 }
  0x1b   : > { %2407 = vmatprep.subr.bf16.mxu1 %v5975_v9  ;;  %v5985_v16 = vld [vmem:[%s9180_s1 + $0x64] ss:$16 sps:$4 sm:$0xff]   ;;  %v5989_v18 = vld [vmem:[%s9180_s1 + $0x60] ss:$16 sps:$4 sm:$0xff]   ;;  %v341_v48 = vld [vmem:[%s6657_s16 + $0x18] sm:$0xff]  ;;  %v6678_v53 = vpack.c.bf16 %v347_v47, %v339_v46  ;;  %s6358_s26 = scalar_lea.vmem %s9132_s24, 4096 }
  0x1c   : > { %v5987_v17 = vld [vmem:[%s9180_s1 + $0x264] ss:$16 sps:$4 sm:$0xff]   ;;  %v5990_v19 = vld [vmem:[%s9180_s1 + $0x260] ss:$16 sps:$4 sm:$0xff]   ;;  %v349_v49 = vld [vmem:[%s6657_s16 + $0x58] sm:$0xff]  ;;  %p6359_p11 = scmp.ne.s32.totalorder %s9132_s24, %s6358_s26  ;;  %s6420_s27 = smov [#allocation2]  }
  0x1d   : > { %2215 = vmatpush1.bf16.msra.mxu0 %v5977_v10  ;;  %v5991_v20 = vld [vmem:[%s9180_s1 + $0x44] ss:$16 sps:$4 sm:$0xff]   ;;  %v5995_v22 = vld [vmem:[%s9180_s1 + $0x40] ss:$16 sps:$4 sm:$0xff]   ;;  %v6680_v54 = vpack.c.bf16 %v349_v49, %v341_v48  ;;  %2242 = vmatprep.mubr.bf16.mxu0 %v6678_v53  ;;  %v387_v48 = vld [vmem:[%s6657_s16 + $0x188] sm:$0xff]  ;;  %s6362_s29 = sshll.u32 %s6420_s27, 4  ;;  %s6363_s29 = int_to_ptr.vmem [resolvable:$false] %s6362_s29 }
  0x1e   : > { %2408 = vmatpush1.bf16.msra.mxu1 %v5978_v11  ;;  %2216 = vmatprep.subr.bf16.mxu0 %v5979_v12  ;;  %v5993_v21 = vld [vmem:[%s9180_s1 + $0x244] ss:$16 sps:$4 sm:$0xff]   ;;  %v5996_v23 = vld [vmem:[%s9180_s1 + $0x240] ss:$16 sps:$4 sm:$0xff]   ;;  %v355_v12 = vld [vmem:[%s6657_s16 + $0x88] sm:$0xff]  ;;  %p6360_p12 = pnand %p6359_p11, %p6511_p5  ;;  %s6364_s14 = scalar_lea.vmem %s6363_s29, 8192 }
  0x1f   : > { %2409 = vmatprep.subr.bf16.mxu1 %v5981_v13  ;;  %v5997_v24 = vld [vmem:[%s9180_s1 + $0x24] ss:$16 sps:$4 sm:$0xff]   ;;  %v6001_v26 = vld [vmem:[%s9180_s1 + $0x20] ss:$16 sps:$4 sm:$0xff]   ;;  %2435 = vmatprep.mubr.bf16.mxu1 %v6680_v54  ;;  %v363_v13 = vld [vmem:[%s6657_s16 + $0xc8] sm:$0xff]  ;;  %p6365_p0 = scmp.lt.s32.totalorder %s9132_s24, %s6363_s29  ;;  %p6366_p1 = scmp.lt.s32.totalorder %s6364_s14, %s6358_s26 }
  0x20   : > { %v5999_v25 = vld [vmem:[%s9180_s1 + $0x224] ss:$16 sps:$4 sm:$0xff]   ;;  %v6002_v27 = vld [vmem:[%s9180_s1 + $0x220] ss:$16 sps:$4 sm:$0xff]   ;;  %v395_v49 = vld [vmem:[%s6657_s16 + $0x1c8] sm:$0xff]  ;;  %p6361_p13 = pneg %p6360_p12 }
  0x21   : > { %2217 = vmatpush1.bf16.msra.mxu0 %v5983_v14  ;;  %v6003_v28 = vld [vmem:[%s9180_s1 + $0x4] ss:$16 sps:$4 sm:$0xff]   ;;  %v6007_v30 = vld [vmem:[%s9180_s1] ss:$16 sps:$4 sm:$0xff]   ;;  %v357_v14 = vld [vmem:[%s6657_s16 + $0x98] sm:$0xff]  ;;  %p6367_p2 = por %p6366_p1, %p6365_p0 }
  0x22   : > { %2410 = vmatpush1.bf16.msra.mxu1 %v5984_v15  ;;  %2218 = vmatprep.subr.bf16.mxu0 %v5985_v16  ;;  %v6005_v29 = vld [vmem:[%s9180_s1 + $0x204] ss:$16 sps:$4 sm:$0xff]   ;;  %v6008_v31 = vld [vmem:[%s9180_s1 + $0x200] ss:$16 sps:$4 sm:$0xff]   ;;  %v365_v15 = vld [vmem:[%s6657_s16 + $0xd8] sm:$0xff] }
  0x23   : > { %2411 = vmatprep.subr.bf16.mxu1 %v5987_v17  ;;  %v6009_v32 = vld [vmem:[%s9180_s1 + $0x1e4] ss:$16 sps:$4 sm:$0xff]   ;;  %v6013_v34 = vld [vmem:[%s9180_s1 + $0x1e0] ss:$16 sps:$4 sm:$0xff]   ;;  %p6368_p3 = pnand %p6367_p2, %p6361_p13 }
  0x24   : > { %v6011_v33 = vld [vmem:[%s9180_s1 + $0x3e4] ss:$16 sps:$4 sm:$0xff]   ;;  %v6014_v35 = vld [vmem:[%s9180_s1 + $0x3e0] ss:$16 sps:$4 sm:$0xff]  }
  0x25   : > { %2219 = vmatpush1.bf16.msra.mxu0 %v5989_v18  ;;  %v6015_v36 = vld [vmem:[%s9180_s1 + $0x1c4] ss:$16 sps:$4 sm:$0xff]   ;;  %v6019_v38 = vld [vmem:[%s9180_s1 + $0x1c0] ss:$16 sps:$4 sm:$0xff]  }
  0x26   : > { %2412 = vmatpush1.bf16.msra.mxu1 %v5990_v19  ;;  %2220 = vmatprep.subr.bf16.mxu0 %v5991_v20  ;;  %v6017_v37 = vld [vmem:[%s9180_s1 + $0x3c4] ss:$16 sps:$4 sm:$0xff]   ;;  %v6020_v39 = vld [vmem:[%s9180_s1 + $0x3c0] ss:$16 sps:$4 sm:$0xff]   ;;  %v6753_v20 = vpack.c.bf16 %v363_v13, %v355_v12 }
  0x27   : > { %2413 = vmatprep.subr.bf16.mxu1 %v5993_v21  ;;  %v6021_v40 = vld [vmem:[%s9180_s1 + $0x1a4] ss:$16 sps:$4 sm:$0xff]   ;;  %v6025_v42 = vld [vmem:[%s9180_s1 + $0x1a0] ss:$16 sps:$4 sm:$0xff]   ;;  %v6755_v21 = vpack.c.bf16 %v365_v15, %v357_v14 }
  0x28   : > { %v6023_v41 = vld [vmem:[%s9180_s1 + $0x3a4] ss:$16 sps:$4 sm:$0xff]   ;;  %v6026_v43 = vld [vmem:[%s9180_s1 + $0x3a0] ss:$16 sps:$4 sm:$0xff]  }
  0x29   : > { %2221 = vmatpush1.bf16.msra.mxu0 %v5995_v22  ;;  %v6027_v44 = vld [vmem:[%s9180_s1 + $0x184] ss:$16 sps:$4 sm:$0xff]   ;;  %v6031_v50 = vld [vmem:[%s9180_s1 + $0x180] ss:$16 sps:$4 sm:$0xff]  }
  0x2a   : > { %2414 = vmatpush1.bf16.msra.mxu1 %v5996_v23  ;;  %2222 = vmatprep.subr.bf16.mxu0 %v5997_v24  ;;  %v6029_v45 = vld [vmem:[%s9180_s1 + $0x384] ss:$16 sps:$4 sm:$0xff]   ;;  %v6032_v51 = vld [vmem:[%s9180_s1 + $0x380] ss:$16 sps:$4 sm:$0xff]  }
  0x2b   : > { %2415 = vmatprep.subr.bf16.mxu1 %v5999_v25  ;;  %v6033_v52 = vld [vmem:[%s9180_s1 + $0x164] ss:$16 sps:$4 sm:$0xff]   ;;  %v6037_v56 = vld [vmem:[%s9180_s1 + $0x160] ss:$16 sps:$4 sm:$0xff]  }
  0x2c   : > { %v6035_v55 = vld [vmem:[%s9180_s1 + $0x364] ss:$16 sps:$4 sm:$0xff]   ;;  %v6038_v57 = vld [vmem:[%s9180_s1 + $0x360] ss:$16 sps:$4 sm:$0xff]  }
  0x2d   : > { %2223 = vmatpush1.bf16.msra.mxu0 %v6001_v26  ;;  %v6039_v58 = vld [vmem:[%s9180_s1 + $0x144] ss:$16 sps:$4 sm:$0xff]   ;;  %v6043_v60 = vld [vmem:[%s9180_s1 + $0x140] ss:$16 sps:$4 sm:$0xff]  }
  0x2e   : > { %2416 = vmatpush1.bf16.msra.mxu1 %v6002_v27  ;;  %2224 = vmatprep.subr.bf16.mxu0 %v6003_v28  ;;  %v6041_v59 = vld [vmem:[%s9180_s1 + $0x344] ss:$16 sps:$4 sm:$0xff]   ;;  %v6044_v61 = vld [vmem:[%s9180_s1 + $0x340] ss:$16 sps:$4 sm:$0xff]  }
  0x2f   : > { %2417 = vmatprep.subr.bf16.mxu1 %v6005_v29  ;;  %v6045_v62 = vld [vmem:[%s9180_s1 + $0x124] ss:$16 sps:$4 sm:$0xff]   ;;  %v6049_v0 = vld [vmem:[%s9180_s1 + $0x120] ss:$16 sps:$4 sm:$0xff]  }
  0x30   : > { %v6047_v63 = vld [vmem:[%s9180_s1 + $0x324] ss:$16 sps:$4 sm:$0xff]   ;;  %v6050_v1 = vld [vmem:[%s9180_s1 + $0x320] ss:$16 sps:$4 sm:$0xff]  }
  0x31   : > { %2225 = vmatpush1.bf16.msra.mxu0 %v6007_v30  ;;  %v6051_v2 = vld [vmem:[%s9180_s1 + $0x104] ss:$16 sps:$4 sm:$0xff]   ;;  %v6055_v4 = vld [vmem:[%s9180_s1 + $0x100] ss:$16 sps:$4 sm:$0xff]   ;;  %v371_v30 = vld [vmem:[%s6657_s16 + $0x108] sm:$0xff] }
  0x32   : > { %2418 = vmatpush1.bf16.msra.mxu1 %v6008_v31  ;;  %2226 = vmatprep.subr.bf16.mxu0 %v6009_v32  ;;  %v6053_v3 = vld [vmem:[%s9180_s1 + $0x304] ss:$16 sps:$4 sm:$0xff]   ;;  %v6056_v5 = vld [vmem:[%s9180_s1 + $0x300] ss:$16 sps:$4 sm:$0xff]   ;;  %v379_v31 = vld [vmem:[%s6657_s16 + $0x148] sm:$0xff] }
  0x33   : > { %2419 = vmatprep.subr.bf16.mxu1 %v6011_v33  ;;  %v338_v6 = vld [vmem:[%s6657_s16] sm:$0xff]  ;;  %v340_v8 = vld [vmem:[%s6657_s16 + $0x10] sm:$0xff]  ;;  %v373_v32 = vld [vmem:[%s6657_s16 + $0x118] sm:$0xff] }
  0x34   : > { %v346_v7 = vld [vmem:[%s6657_s16 + $0x40] sm:$0xff]  ;;  %v348_v9 = vld [vmem:[%s6657_s16 + $0x50] sm:$0xff]  ;;  %v381_v33 = vld [vmem:[%s6657_s16 + $0x158] sm:$0xff] }
  0x35   : > { %2227 = vmatpush2.bf16.msra.mxu0 %v6013_v34  ;;  %v6059_v10 = vld [vmem:[%s9180_s1 + $0x4e4] ss:$16 sps:$4 sm:$0xff]   ;;  %v6743_v16 = vpack.c.bf16 %v346_v7, %v338_v6  ;;  %v6745_v17 = vpack.c.bf16 %v348_v9, %v340_v8  ;;  %v6057_v18 = vld [vmem:[%s9180_s1 + $0x4e0] ss:$16 sps:$4 sm:$0xff]   ;;  %v403_v6 = vld [vmem:[%s6657_s16 + $0x208] sm:$0xff] }
  0x36   : > { %2420 = vmatpush2.bf16.msra.mxu1 %v6014_v35  ;;  %2228 = vmatprep.subr.bf16.mxu0 %v6015_v36  ;;  %v6062_v11 = vld [vmem:[%s9180_s1 + $0x6e4] ss:$16 sps:$4 sm:$0xff]   ;;  %v6060_v19 = vld [vmem:[%s9180_s1 + $0x6e0] ss:$16 sps:$4 sm:$0xff]   ;;  %v411_v7 = vld [vmem:[%s6657_s16 + $0x248] sm:$0xff] }
  0x37   : > { %2421 = vmatprep.subr.bf16.mxu1 %v6017_v37  ;;  %v354_v22 = vld [vmem:[%s6657_s16 + $0x80] sm:$0xff]  ;;  %v356_v24 = vld [vmem:[%s6657_s16 + $0x90] sm:$0xff]  ;;  %v405_v8 = vld [vmem:[%s6657_s16 + $0x218] sm:$0xff]  ;;  %v6876_v15 = vpack.c.bf16 %v411_v7, %v403_v6 }
  0x38   : > { %v362_v23 = vld [vmem:[%s6657_s16 + $0xc0] sm:$0xff]  ;;  %v364_v25 = vld [vmem:[%s6657_s16 + $0xd0] sm:$0xff]  ;;  %v413_v9 = vld [vmem:[%s6657_s16 + $0x258] sm:$0xff] }
  0x39   : > { %2229 = vmatpush2.bf16.msra.mxu0 %v6019_v38  ;;  %v6065_v26 = vld [vmem:[%s9180_s1 + $0x4c4] ss:$16 sps:$4 sm:$0xff]   ;;  %v6063_v28 = vld [vmem:[%s9180_s1 + $0x4c0] ss:$16 sps:$4 sm:$0xff]   ;;  %v6787_v36 = vpack.c.bf16 %v362_v23, %v354_v22  ;;  %v6789_v37 = vpack.c.bf16 %v364_v25, %v356_v24  ;;  %v6791_v38 = vpack.c.bf16 %v379_v31, %v371_v30  ;;  %v427_v30 = vld [vmem:[%s6657_s16 + $0x2c8] sm:$0xff] }
  0x3a   : > { %2422 = vmatpush2.bf16.msra.mxu1 %v6020_v39  ;;  %2230 = vmatprep.subr.bf16.mxu0 %v6021_v40  ;;  %v6068_v27 = vld [vmem:[%s9180_s1 + $0x6c4] ss:$16 sps:$4 sm:$0xff]   ;;  %v6066_v29 = vld [vmem:[%s9180_s1 + $0x6c0] ss:$16 sps:$4 sm:$0xff]   ;;  %v6793_v39 = vpack.c.bf16 %v381_v33, %v373_v32  ;;  %v421_v31 = vld [vmem:[%s6657_s16 + $0x298] sm:$0xff] }
  0x3b   : > { %2423 = vmatprep.subr.bf16.mxu1 %v6023_v41  ;;  %v6071_v34 = vld [vmem:[%s9180_s1 + $0x4a4] ss:$16 sps:$4 sm:$0xff]   ;;  %v6069_v40 = vld [vmem:[%s9180_s1 + $0x4a0] ss:$16 sps:$4 sm:$0xff]   ;;  %v429_v32 = vld [vmem:[%s6657_s16 + $0x2d8] sm:$0xff] }
  0x3c   : > { %v6077_v35 = vld [vmem:[%s9180_s1 + $0x6a4] ss:$16 sps:$4 sm:$0xff]   ;;  %v6075_v41 = vld [vmem:[%s9180_s1 + $0x6a0] ss:$16 sps:$4 sm:$0xff]  }
  0x3d   : > { %2231 = vmatpush2.bf16.msra.mxu0 %v6025_v42  ;;  %v370_v42 = vld [vmem:[%s6657_s16 + $0x100] sm:$0xff]  ;;  %v404_v24 = vld [vmem:[%s6657_s16 + $0x210] sm:$0xff] }
  0x3e   : > { %2424 = vmatpush2.bf16.msra.mxu1 %v6026_v43  ;;  %2232 = vmatprep.subr.bf16.mxu0 %v6027_v44  ;;  %v378_v43 = vld [vmem:[%s6657_s16 + $0x140] sm:$0xff]  ;;  %v372_v44 = vld [vmem:[%s6657_s16 + $0x110] sm:$0xff] }
  0x3f   : > { %2425 = vmatprep.subr.bf16.mxu1 %v6029_v45  ;;  %v380_v45 = vld [vmem:[%s6657_s16 + $0x150] sm:$0xff]  ;;  %v402_v22 = vld [vmem:[%s6657_s16 + $0x200] sm:$0xff] }
  0x40   : > { %v6074_v46 = vld [vmem:[%s9180_s1 + $0x484] ss:$16 sps:$4 sm:$0xff]   ;;  %v6093_v33 = vld [vmem:[%s9180_s1 + $0x400] ss:$16 sps:$4 sm:$0xff]  }
  0x41   : > { %2233 = vmatpush2.bf16.msra.mxu0 %v6031_v50  ;;  %v6083_v47 = vld [vmem:[%s9180_s1 + $0x684] ss:$16 sps:$4 sm:$0xff]   ;;  %v389_v50 = vld [vmem:[%s6657_s16 + $0x198] sm:$0xff] }
  0x42   : > { %2426 = vmatpush2.bf16.msra.mxu1 %v6032_v51  ;;  %2234 = vmatprep.subr.bf16.mxu0 %v6033_v52  ;;  %v397_v51 = vld [vmem:[%s6657_s16 + $0x1d8] sm:$0xff]  ;;  %v6072_v52 = vld [vmem:[%s9180_s1 + $0x480] ss:$16 sps:$4 sm:$0xff]   ;;  %v6089_v12 = vld [vmem:[%s9180_s1 + $0x424] ss:$16 sps:$4 sm:$0xff]  }
  0x43   : > { %2427 = vmatprep.subr.bf16.mxu1 %v6035_v55  ;;  %v6081_v55 = vld [vmem:[%s9180_s1 + $0x680] ss:$16 sps:$4 sm:$0xff]   ;;  %v6095_v25 = vld [vmem:[%s9180_s1 + $0x404] ss:$16 sps:$4 sm:$0xff]  }
  0x44   : > { %v410_v23 = vld [vmem:[%s6657_s16 + $0x240] sm:$0xff]  ;;  %v436_v7 = vld [vmem:[%s6657_s16 + $0x310] sm:$0xff] }
  0x45   : > { %2235 = vmatpush2.bf16.msra.mxu0 %v6037_v56  ;;  %v6080_v56 = vld [vmem:[%s9180_s1 + $0x464] ss:$16 sps:$4 sm:$0xff]  }
  0x46   : > { %2428 = vmatpush2.bf16.msra.mxu1 %v6038_v57  ;;  %2236 = vmatprep.subr.bf16.mxu0 %v6039_v58  ;;  %v6092_v57 = vld [vmem:[%s9180_s1 + $0x664] ss:$16 sps:$4 sm:$0xff]   ;;  %v6831_v58 = vpack.c.bf16 %v378_v43, %v370_v42  ;;  %v6916_v42 = vpack.c.bf16 %v429_v32, %v421_v31  ;;  %v6099_v43 = vld [vmem:[%s9180_s1 + $0x5e0] ss:$16 sps:$4 sm:$0xff]  }
  0x47   : > { %2429 = vmatprep.subr.bf16.mxu1 %v6041_v59  ;;  %v6833_v59 = vpack.c.bf16 %v380_v45, %v372_v44  ;;  %v6113_v44 = vld [vmem:[%s9180_s1 + $0x604] ss:$16 sps:$4 sm:$0xff]  }
  0x48   : > { %v418_v45 = vld [vmem:[%s6657_s16 + $0x280] sm:$0xff] }
  0x49   : > { %2237 = vmatpush2.bf16.msra.mxu0 %v6043_v60  ;;  %v6835_v60 = vpack.c.bf16 %v395_v49, %v387_v48  ;;  %v6111_v48 = vld [vmem:[%s9180_s1 + $0x600] ss:$16 sps:$4 sm:$0xff]  }
  0x4a   : > { %2430 = vmatpush2.bf16.msra.mxu1 %v6044_v61  ;;  %2238 = vmatprep.subr.bf16.mxu0 %v6045_v62  ;;  %v6837_v61 = vpack.c.bf16 %v397_v51, %v389_v50  ;;  %v6078_v62 = vld [vmem:[%s9180_s1 + $0x460] ss:$16 sps:$4 sm:$0xff]   ;;  %v435_v51 = vld [vmem:[%s6657_s16 + $0x308] sm:$0xff] }
  0x4b   : > { %2431 = vmatprep.subr.bf16.mxu1 %v6047_v63  ;;  %v6090_v63 = vld [vmem:[%s9180_s1 + $0x660] ss:$16 sps:$4 sm:$0xff]  }
  0x4c   : > { %v420_v49 = vld [vmem:[%s6657_s16 + $0x290] sm:$0xff]  ;;  %v442_v6 = vld [vmem:[%s6657_s16 + $0x340] sm:$0xff] }
  0x4d   : > { %2239 = vmatpush2.bf16.msra.mxu0 %v6049_v0  ;;  %v386_v0 = vld [vmem:[%s6657_s16 + $0x180] sm:$0xff]  ;;  %v428_v50 = vld [vmem:[%s6657_s16 + $0x2d0] sm:$0xff] }
  0x4e   : > { %2432 = vmatpush2.bf16.msra.mxu1 %v6050_v1  ;;  %2240 = vmatprep.subr.bf16.mxu0 %v6051_v2  ;;  %v394_v1 = vld [vmem:[%s6657_s16 + $0x1c0] sm:$0xff]  ;;  %v388_v2 = vld [vmem:[%s6657_s16 + $0x190] sm:$0xff] }
  0x4f   : > { %2433 = vmatprep.subr.bf16.mxu1 %v6053_v3  ;;  %v6086_v3 = vld [vmem:[%s9180_s1 + $0x444] ss:$16 sps:$4 sm:$0xff]   ;;  %v6872_v13 = vpack.c.bf16 %v394_v1, %v386_v0  ;;  %v6950_v0 = vpack.c.bf16 %v428_v50, %v420_v49  ;;  %v469_v49 = vld [vmem:[%s6657_s16 + $0x418] sm:$0xff] }
  0x50   : > { %v477_v50 = vld [vmem:[%s6657_s16 + $0x458] sm:$0xff] }
  0x51   : > { %2241 = vmatpush2.bf16.msra.mxu0 %v6055_v4  ;;  %v6098_v4 = vld [vmem:[%s9180_s1 + $0x644] ss:$16 sps:$4 sm:$0xff]  }
  0x52   : > { %2434 = vmatpush2.bf16.msra.mxu1 %v6056_v5  ;;  %2596 = vmatprep.subr.bf16.mxu0 %v6059_v10  ;;  %v396_v5 = vld [vmem:[%s6657_s16 + $0x1d0] sm:$0xff] }
  0x53   : > { %2789 = vmatprep.subr.bf16.mxu1 %v6062_v11  ;;  %v6084_v10 = vld [vmem:[%s9180_s1 + $0x440] ss:$16 sps:$4 sm:$0xff]   ;;  %v6874_v14 = vpack.c.bf16 %v396_v5, %v388_v2 }
  0x54   : > { %2243 = vmatmul.mubr.bf16.vlgmr.msra.gmra.mxu0 %v6743_v16  ;;  %v6096_v11 = vld [vmem:[%s9180_s1 + $0x640] ss:$16 sps:$4 sm:$0xff]  }
  0x55   : > { %2436 = vmatmul.mubr.bf16.vlgmr.msra.gmra.mxu1 %v6745_v17  ;;  %2597 = vmatpush1.bf16.msra.mxu0 %v6057_v18  ;;  %v6878_v18 = vpack.c.bf16 %v413_v9, %v405_v8  ;;  %v434_v5 = vld [vmem:[%s6657_s16 + $0x300] sm:$0xff]  ;;  %v444_v8 = vld [vmem:[%s6657_s16 + $0x350] sm:$0xff] }
  0x56   : > { %2790 = vmatpush1.bf16.msra.mxu1 %v6060_v19  ;;  %2252 = vmatprep.mubr.bf16.mxu0 %v6753_v20  ;;  %v6087_v19 = vld [vmem:[%s9180_s1 + $0x420] ss:$16 sps:$4 sm:$0xff]   ;;  %v6116_v9 = vld [vmem:[%s9180_s1 + $0x584] ss:$16 sps:$4 sm:$0xff]  }
  0x57   : > { %2445 = vmatprep.mubr.bf16.mxu1 %v6755_v21  ;;  %2598 = vmatprep.subr.bf16.mxu0 %v6065_v26  ;;  %v6105_v26 = vld [vmem:[%s9180_s1 + $0x620] ss:$16 sps:$4 sm:$0xff]  }
  0x58   : > { %2791 = vmatprep.subr.bf16.mxu1 %v6068_v27  ;;  %v6107_v27 = vld [vmem:[%s9180_s1 + $0x624] ss:$16 sps:$4 sm:$0xff]  }
  0x59   : > { %2599 = vmatpush1.bf16.msra.mxu0 %v6063_v28  ;;  %v412_v28 = vld [vmem:[%s6657_s16 + $0x250] sm:$0xff] }
  0x5a   : > { %2792 = vmatpush1.bf16.msra.mxu1 %v6066_v29  ;;  %2600 = vmatprep.subr.bf16.mxu0 %v6071_v34  ;;  %v419_v29 = vld [vmem:[%s6657_s16 + $0x288] sm:$0xff]  ;;  %v6101_v34 = vld [vmem:[%s9180_s1 + $0x5e4] ss:$16 sps:$4 sm:$0xff]  }
  0x5b   : > { %2793 = vmatprep.subr.bf16.mxu1 %v6077_v35  ;;  %v6910_v35 = vpack.c.bf16 %v410_v23, %v402_v22  ;;  %v453_v22 = vld [vmem:[%s6657_s16 + $0x398] sm:$0xff] }
  0x5c   : > { %2253 = vmatmul.mubr.bf16.gmra.mxu0 %v6787_v36  ;;  %v461_v23 = vld [vmem:[%s6657_s16 + $0x3d8] sm:$0xff] }
  0x5d   : > { %2446 = vmatmul.mubr.bf16.gmra.mxu1 %v6789_v37  ;;  %2262 = vmatprep.mubr.bf16.mxu0 %v6791_v38  ;;  %v6997_v32 = vpack.c.bf16 %v461_v23, %v453_v22  ;;  %v493_v22 = vld [vmem:[%s6657_s16 + $0x4d8] sm:$0xff]  ;;  %v6134_v23 = vld [vmem:[%s9180_s1 + $0x500] ss:$16 sps:$4 sm:$0xff]  }
  0x5e   : > { %2455 = vmatprep.mubr.bf16.mxu1 %v6793_v39  ;;  %2601 = vmatpush1.bf16.msra.mxu0 %v6069_v40  ;;  %v6912_v40 = vpack.c.bf16 %v412_v28, %v404_v24  ;;  %v6127_v28 = vld [vmem:[%s9180_s1 + $0x724] ss:$16 sps:$4 sm:$0xff]  }
  0x5f   : > { %2794 = vmatpush1.bf16.msra.mxu1 %v6075_v41  ;;  %2602 = vmatprep.subr.bf16.mxu0 %v6074_v46  ;;  %v6914_v41 = vpack.c.bf16 %v427_v30, %v419_v29  ;;  %v426_v46 = vld [vmem:[%s6657_s16 + $0x2c0] sm:$0xff]  ;;  %v6991_v29 = vpack.c.bf16 %v442_v6, %v434_v5  ;;  %v6993_v30 = vpack.c.bf16 %v444_v8, %v436_v7  ;;  %v468_v8 = vld [vmem:[%s6657_s16 + $0x410] sm:$0xff] }
  0x60   : > { %2795 = vmatprep.subr.bf16.mxu1 %v6083_v47  ;;  %v6104_v47 = vld [vmem:[%s9180_s1 + $0x5c4] ss:$16 sps:$4 sm:$0xff]   ;;  %v6128_v5 = vld [vmem:[%s9180_s1 + $0x520] ss:$16 sps:$4 sm:$0xff]  }
  0x61   : > { %v466_v6 = vld [vmem:[%s6657_s16 + $0x400] sm:$0xff] }
  0x62   : > { %2603 = vmatpush1.bf16.msra.mxu0 %v6072_v52  ;;  %v443_v52 = vld [vmem:[%s6657_s16 + $0x348] sm:$0xff]  ;;  %v474_v7 = vld [vmem:[%s6657_s16 + $0x440] sm:$0xff] }
  0x63   : > { %2796 = vmatpush1.bf16.msra.mxu1 %v6081_v55  ;;  %2604 = vmatprep.subr.bf16.mxu0 %v6080_v56  ;;  %v437_v55 = vld [vmem:[%s6657_s16 + $0x318] sm:$0xff]  ;;  %v6952_v1 = vpack.c.bf16 %v443_v52, %v435_v51  ;;  %v6122_v51 = vld [vmem:[%s9180_s1 + $0x540] ss:$16 sps:$4 sm:$0xff]  }
  0x64   : > { %2797 = vmatprep.subr.bf16.mxu1 %v6092_v57  ;;  %2263 = vmatmul.mubr.bf16.gmra.mxu0 %v6831_v58  ;;  %v445_v56 = vld [vmem:[%s6657_s16 + $0x358] sm:$0xff]  ;;  %v6102_v57 = vld [vmem:[%s9180_s1 + $0x5c0] ss:$16 sps:$4 sm:$0xff]  }
  0x65   : > { %2456 = vmatmul.mubr.bf16.gmra.mxu1 %v6833_v59  ;;  %2272 = vmatprep.mubr.bf16.mxu0 %v6835_v60  ;;  %v6954_v2 = vpack.c.bf16 %v445_v56, %v437_v55  ;;  %v6131_v52 = vld [vmem:[%s9180_s1 + $0x700] ss:$16 sps:$4 sm:$0xff]   ;;  %v6133_v55 = vld [vmem:[%s9180_s1 + $0x704] ss:$16 sps:$4 sm:$0xff]  }
  0x66   : > { %2465 = vmatprep.mubr.bf16.mxu1 %v6837_v61  ;;  %2605 = vmatpush1.bf16.msra.mxu0 %v6078_v62  ;;  %v6110_v62 = vld [vmem:[%s9180_s1 + $0x5a4] ss:$16 sps:$4 sm:$0xff]  }
  0x67   : > { %2798 = vmatpush1.bf16.msra.mxu1 %v6090_v63  ;;  %2606 = vmatprep.subr.bf16.mxu0 %v6086_v3  ;;  %v6948_v63 = vpack.c.bf16 %v426_v46, %v418_v45  ;;  %v6108_v3 = vld [vmem:[%s9180_s1 + $0x5a0] ss:$16 sps:$4 sm:$0xff]   ;;  %v6124_v46 = vld [vmem:[%s9180_s1 + $0x544] ss:$16 sps:$4 sm:$0xff]  }
  0x68   : > { %2799 = vmatprep.subr.bf16.mxu1 %v6098_v4  ;;  %v954_v4 = vld [vmem:[%s9180_s1 + $0x740] sm:$0xff]  ;;  %v460_v45 = vld [vmem:[%s6657_s16 + $0x3d0] sm:$0xff] }
  0x69   : > { %v6130_v56 = vld [vmem:[%s9180_s1 + $0x524] ss:$16 sps:$4 sm:$0xff]  }
  0x6a   : > { %2607 = vmatpush1.bf16.msra.mxu0 %v6084_v10  ;;  %v5457_v10 = vcombine.high %v954_v4, %v954_v4 }
  0x6b   : > { %2800 = vmatpush1.bf16.msra.mxu1 %v6096_v11  ;;  %2608 = vmatprep.subr.bf16.mxu0 %v6089_v12  ;;  %v5456_v11 = vcombine.low %v954_v4, %v954_v4  ;;  %v451_v12 = vld [vmem:[%s6657_s16 + $0x388] sm:$0xff]  ;;  %v7035_v4 = vpack.c.bf16 %v477_v50, %v469_v49  ;;  %v509_v49 = vld [vmem:[%s6657_s16 + $0x558] sm:$0xff] }
  0x6c   : > { %2273 = vmatmul.mubr.bf16.gmra.mxu0 %v6872_v13  ;;  %2801 = vmatprep.subr.bf16.mxu1 %v6107_v27  ;;  %v6125_v27 = vld [vmem:[%s9180_s1 + $0x720] ss:$16 sps:$4 sm:$0xff]  }
  0x6d   : > { %2466 = vmatmul.mubr.bf16.gmra.mxu1 %v6874_v14  ;;  %2282 = vmatprep.mubr.bf16.mxu0 %v6876_v15  ;;  %v2199_v24 = vsel %vm2197_vm0, %v5456_v11, 0  ;;  %v483_v11 = vld [vmem:[%s6657_s16 + $0x488] sm:$0xff] }
  0x6e   : > { %2475 = vmatprep.mubr.bf16.mxu1 %v6878_v18  ;;  %2609 = vmatpush1.bf16.msra.mxu0 %v6087_v19  ;;  %v459_v19 = vld [vmem:[%s6657_s16 + $0x3c8] sm:$0xff] }
  0x6f   : > { %2610 = vmatprep.subr.bf16.mxu0 %v6095_v25  ;;  %2802 = vmatpush1.bf16.msra.mxu1 %v6105_v26  ;;  %v6114_v25 = vld [vmem:[%s9180_s1 + $0x580] ss:$16 sps:$4 sm:$0xff]   ;;  %v6119_v26 = vld [vmem:[%s9180_s1 + $0x564] ss:$16 sps:$4 sm:$0xff]   ;;  %v6995_v31 = vpack.c.bf16 %v459_v19, %v451_v12  ;;  %v491_v12 = vld [vmem:[%s6657_s16 + $0x4c8] sm:$0xff] }
  0x70   : > { %2803 = vmatprep.subr.bf16.mxu1 %v6113_v44  ;;  %v452_v44 = vld [vmem:[%s6657_s16 + $0x390] sm:$0xff]  ;;  %v485_v19 = vld [vmem:[%s6657_s16 + $0x498] sm:$0xff] }
  0x72   : > { %2611 = vmatpush1.bf16.msra.mxu0 %v6093_v33  ;;  %v6117_v33 = vld [vmem:[%s9180_s1 + $0x560] ss:$16 sps:$4 sm:$0xff]  }
  0x73   : > { %2612 = vmatprep.subr.bf16.mxu0 %v6101_v34  ;;  %2804 = vmatpush1.bf16.msra.mxu1 %v6111_v48  ;;  %v450_v34 = vld [vmem:[%s6657_s16 + $0x380] sm:$0xff]  ;;  %v475_v48 = vld [vmem:[%s6657_s16 + $0x448] sm:$0xff] }
  0x74   : > { %2283 = vmatmul.mubr.bf16.gmra.mxu0 %v6910_v35  ;;  %5460 = vmatprep.subr.msk.bf16.mxu1 %vm2197_vm0, %v5457_v10  ;;  %v6136_v10 = vld [vmem:[%s9180_s1 + $0x504] ss:$16 sps:$4 sm:$0xff]  }
  0x75   : > { %2476 = vmatmul.mubr.bf16.gmra.mxu1 %v6912_v40  ;;  %2292 = vmatprep.mubr.bf16.mxu0 %v6914_v41 }
  0x76   : > { %2485 = vmatprep.mubr.bf16.mxu1 %v6916_v42  ;;  %2613 = vmatpush2.bf16.msra.mxu0 %v6099_v43  ;;  %v458_v43 = vld [vmem:[%s6657_s16 + $0x3c0] sm:$0xff] }
  0x77   : > { %2614 = vmatprep.subr.bf16.mxu0 %v6104_v47  ;;  %2816 = vmatpush2.bf16.msra.mxu1 %v2199_v24  ;;  %v467_v47 = vld [vmem:[%s6657_s16 + $0x408] sm:$0xff] }
  0x78   : > { %2817 = vmatprep.subr.bf16.mxu1 %v6127_v28  ;;  %v6142_v24 = vld [vmem:[%s9180_s1 + $0x2ec] ss:$16 sps:$4 sm:$0xff]   ;;  %v7068_v28 = vpack.c.bf16 %v491_v12, %v483_v11 }
  0x79   : > { %v525_v11 = vld [vmem:[%s6657_s16 + $0x5d8] sm:$0xff] }
  0x7a   : > { %2615 = vmatpush2.bf16.msra.mxu0 %v6102_v57  ;;  %v7029_v57 = vpack.c.bf16 %v458_v43, %v450_v34  ;;  %v482_v34 = vld [vmem:[%s6657_s16 + $0x480] sm:$0xff] }
  0x7b   : > { %2616 = vmatprep.subr.bf16.mxu0 %v6110_v62  ;;  %2818 = vmatpush2.bf16.msra.mxu1 %v6125_v27  ;;  %v7031_v62 = vpack.c.bf16 %v460_v45, %v452_v44  ;;  %v490_v43 = vld [vmem:[%s6657_s16 + $0x4c0] sm:$0xff]  ;;  %v484_v44 = vld [vmem:[%s6657_s16 + $0x490] sm:$0xff] }
  0x7c   : > { %2293 = vmatmul.mubr.bf16.gmra.mxu0 %v6948_v63  ;;  %2819 = vmatprep.subr.bf16.mxu1 %v6133_v55  ;;  %v492_v45 = vld [vmem:[%s6657_s16 + $0x4d0] sm:$0xff]  ;;  %v7084_v50 = vpack.c.bf16 %v490_v43, %v482_v34 }
  0x7d   : > { %2486 = vmatmul.mubr.bf16.gmra.mxu1 %v6950_v0  ;;  %2302 = vmatprep.mubr.bf16.mxu0 %v6952_v1  ;;  %v516_v34 = vld [vmem:[%s6657_s16 + $0x590] sm:$0xff] }
  0x7e   : > { %2495 = vmatprep.mubr.bf16.mxu1 %v6954_v2  ;;  %2617 = vmatpush2.bf16.msra.mxu0 %v6108_v3  ;;  %v7033_v3 = vpack.c.bf16 %v475_v48, %v467_v47  ;;  %v507_v47 = vld [vmem:[%s6657_s16 + $0x548] sm:$0xff]  ;;  %v501_v48 = vld [vmem:[%s6657_s16 + $0x518] sm:$0xff]  ;;  %9283 = vst [vmem:[#allocation5_spill] sm:$0xff] %v7084_v50  ;;  %v524_v43 = vld [vmem:[%s6657_s16 + $0x5d0] sm:$0xff] }
  0x7f   : > { %2618 = vmatprep.subr.bf16.mxu0 %v6116_v9  ;;  %2820 = vmatpush2.bf16.msra.mxu1 %v6131_v52  ;;  %v476_v9 = vld [vmem:[%s6657_s16 + $0x450] sm:$0xff]  ;;  %v7090_v55 = vpack.c.bf16 %v509_v49, %v501_v48  ;;  %v7126_v49 = vpack.c.bf16 %v524_v43, %v516_v34 }
  0x80   : > { %v7066_v27 = vpack.c.bf16 %v476_v9, %v468_v8  ;;  %3175 = vmatprep.subr.bf16.mxu1 %v6142_v24  ;;  %v515_v8 = vld [vmem:[%s6657_s16 + $0x588] sm:$0xff]  ;;  %v514_v24 = vld [vmem:[%s6657_s16 + $0x580] sm:$0xff] }
  0x81   : > { %9286 = vst [vmem:[#allocation8_spill] sm:$0xff] %v7090_v55  ;;  %v523_v9 = vld [vmem:[%s6657_s16 + $0x5c8] sm:$0xff]  ;;  %9292 = vst [vmem:[#allocation14_spill] sm:$0xff] %v7126_v49 }
  0x82   : > { %2619 = vmatpush2.bf16.msra.mxu0 %v6114_v25  ;;  %v6139_v25 = vld [vmem:[%s9180_s1 + $0xec] ss:$16 sps:$4 sm:$0xff]  }
  0x83   : > { %2620 = vmatprep.subr.bf16.mxu0 %v6119_v26  ;;  %v7064_v26 = vpack.c.bf16 %v474_v7, %v466_v6  ;;  %v500_v6 = vld [vmem:[%s6657_s16 + $0x510] sm:$0xff] }
  0x84   : > { %2303 = vmatmul.mubr.bf16.gmra.mxu0 %v6991_v29  ;;  %v508_v7 = vld [vmem:[%s6657_s16 + $0x550] sm:$0xff] }
  0x85   : > { %2496 = vmatmul.mubr.bf16.gmra.mxu1 %v6993_v30  ;;  %2312 = vmatprep.mubr.bf16.mxu0 %v6995_v31 }
  0x86   : > { %2505 = vmatprep.mubr.bf16.mxu1 %v6997_v32  ;;  %2621 = vmatpush2.bf16.msra.mxu0 %v6117_v33  ;;  %v7070_v33 = vpack.c.bf16 %v493_v22, %v485_v19  ;;  %v7106_v19 = vpack.c.bf16 %v508_v7, %v500_v6  ;;  %v7108_v22 = vpack.c.bf16 %v523_v9, %v515_v8  ;;  %v530_v6 = vld [vmem:[%s6657_s16 + $0x600] sm:$0xff]  ;;  %v532_v8 = vld [vmem:[%s6657_s16 + $0x610] sm:$0xff] }
  0x87   : > { %2622 = vmatprep.subr.bf16.mxu0 %v6124_v46  ;;  %v499_v46 = vld [vmem:[%s6657_s16 + $0x508] sm:$0xff]  ;;  %v538_v7 = vld [vmem:[%s6657_s16 + $0x640] sm:$0xff]  ;;  %v540_v9 = vld [vmem:[%s6657_s16 + $0x650] sm:$0xff] }
  0x88   : > { %v7088_v52 = vpack.c.bf16 %v507_v47, %v499_v46  ;;  %9288 = vst [vmem:[#allocation10_spill] sm:$0xff] %v7106_v19  ;;  %9289 = vst [vmem:[#allocation11_spill] sm:$0xff] %v7108_v22  ;;  %v533_v46 = vld [vmem:[%s6657_s16 + $0x618] sm:$0xff]  ;;  %v7144_v34 = vpack.c.bf16 %v538_v7, %v530_v6  ;;  %v7146_v43 = vpack.c.bf16 %v540_v9, %v532_v8  ;;  %v548_v6 = vld [vmem:[%s6657_s16 + $0x690] sm:$0xff] }
  0x89   : > { %v541_v47 = vld [vmem:[%s6657_s16 + $0x658] sm:$0xff]  ;;  %v556_v7 = vld [vmem:[%s6657_s16 + $0x6d0] sm:$0xff]  ;;  %v563_v8 = vld [vmem:[%s6657_s16 + $0x708] sm:$0xff] }
  0x8a   : > { %2623 = vmatpush2.bf16.msra.mxu0 %v6122_v51  ;;  %v7086_v51 = vpack.c.bf16 %v492_v45, %v484_v44  ;;  %9285 = vst [vmem:[#allocation7_spill] sm:$0xff] %v7088_v52  ;;  %v531_v44 = vld [vmem:[%s6657_s16 + $0x608] sm:$0xff]  ;;  %9295 = vst [vmem:[#allocation17_spill] sm:$0xff] %v7144_v34 }
  0x8b   : > { %2624 = vmatprep.subr.bf16.mxu0 %v6130_v56  ;;  %v498_v56 = vld [vmem:[%s6657_s16 + $0x500] sm:$0xff]  ;;  %v539_v45 = vld [vmem:[%s6657_s16 + $0x648] sm:$0xff]  ;;  %9296 = vst [vmem:[#allocation18_spill] sm:$0xff] %v7146_v43 }
  0x8c   : > { %2313 = vmatmul.mubr.bf16.gmra.mxu0 %v7029_v57  ;;  %9284 = vst [vmem:[#allocation6_spill] sm:$0xff] %v7086_v51  ;;  %v571_v9 = vld [vmem:[%s6657_s16 + $0x748] sm:$0xff] }
  0x8d   : > { %2506 = vmatmul.mubr.bf16.gmra.mxu1 %v7031_v62  ;;  %2322 = vmatprep.mubr.bf16.mxu0 %v7033_v3 }
  0x8e   : > { %2515 = vmatprep.mubr.bf16.mxu1 %v7035_v4  ;;  %2625 = vmatpush2.bf16.msra.mxu0 %v6128_v5  ;;  %v506_v5 = vld [vmem:[%s6657_s16 + $0x540] sm:$0xff] }
  0x8f   : > { %2626 = vmatprep.subr.bf16.mxu0 %v6136_v10  ;;  %v517_v10 = vld [vmem:[%s6657_s16 + $0x598] sm:$0xff]  ;;  %v7104_v12 = vpack.c.bf16 %v506_v5, %v498_v56  ;;  %v7128_v56 = vpack.c.bf16 %v539_v45, %v531_v44  ;;  %v7130_v5 = vpack.c.bf16 %v541_v47, %v533_v46  ;;  %v546_v46 = vld [vmem:[%s6657_s16 + $0x680] sm:$0xff] }
  0x90   : > { %v554_v47 = vld [vmem:[%s6657_s16 + $0x6c0] sm:$0xff] }
  0x91   : > { %9287 = vst [vmem:[#allocation9_spill] sm:$0xff] %v7104_v12  ;;  %9293 = vst [vmem:[#allocation15_spill] sm:$0xff] %v7128_v56 }
  0x92   : > { %2627 = vmatpush2.bf16.msra.mxu0 %v6134_v23  ;;  %v7110_v23 = vpack.c.bf16 %v525_v11, %v517_v10  ;;  %9294 = vst [vmem:[#allocation16_spill] sm:$0xff] %v7130_v5  ;;  %v547_v10 = vld [vmem:[%s6657_s16 + $0x688] sm:$0xff] }
  0x93   : > { %2982 = vmatprep.subr.bf16.mxu0 %v6139_v25  ;;  %v522_v25 = vld [vmem:[%s6657_s16 + $0x5c0] sm:$0xff]  ;;  %v555_v11 = vld [vmem:[%s6657_s16 + $0x6c8] sm:$0xff] }
  0x94   : > { %2323 = vmatmul.mubr.bf16.gmra.mxu0 %v7064_v26  ;;  %9290 = vst [vmem:[#allocation12_spill] sm:$0xff] %v7110_v23  ;;  %v7124_v48 = vpack.c.bf16 %v522_v25, %v514_v24  ;;  %v549_v24 = vld [vmem:[%s6657_s16 + $0x698] sm:$0xff]  ;;  %v7148_v44 = vpack.c.bf16 %v555_v11, %v547_v10 }
  0x95   : > { %2516 = vmatmul.mubr.bf16.gmra.mxu1 %v7066_v27  ;;  %2332 = vmatprep.mubr.bf16.mxu0 %v7068_v28  ;;  %v557_v25 = vld [vmem:[%s6657_s16 + $0x6d8] sm:$0xff] }
  0x96   : > { %2525 = vmatprep.mubr.bf16.mxu1 %v7070_v33  ;;  %9291 = vst [vmem:[#allocation13_spill] sm:$0xff] %v7124_v48  ;;  %9297 = vst [vmem:[#allocation19_spill] sm:$0xff] %v7148_v44  ;;  %v7150_v45 = vpack.c.bf16 %v557_v25, %v549_v24  ;;  %v565_v10 = vld [vmem:[%s6657_s16 + $0x718] sm:$0xff]  ;;  %v7164_v24 = vpack.c.bf16 %v554_v47, %v546_v46  ;;  %v7166_v25 = vpack.c.bf16 %v556_v7, %v548_v6  ;;  %v579_v46 = vld [vmem:[%s6657_s16 + $0x788] sm:$0xff] }
  0x97   : > { %v573_v11 = vld [vmem:[%s6657_s16 + $0x758] sm:$0xff]  ;;  %v587_v47 = vld [vmem:[%s6657_s16 + $0x7c8] sm:$0xff] }
  0x98   : > { %9298 = vst [vmem:[#allocation20_spill] sm:$0xff] %v7150_v45  ;;  %9299 = vst [vmem:[#allocation21_spill] sm:$0xff] %v7164_v24  ;;  %v581_v6 = vld [vmem:[%s6657_s16 + $0x798] sm:$0xff] }
  0x99   : > { %9300 = vst [vmem:[#allocation22_spill] sm:$0xff] %v7166_v25  ;;  %v589_v7 = vld [vmem:[%s6657_s16 + $0x7d8] sm:$0xff] }
  0x9c   : > { %2333 = vmatmul.mubr.bf16.gmra.mxu0 %v7084_v50 }
  0x9d   : > { %2526 = vmatmul.mubr.bf16.gmra.mxu1 %v7086_v51  ;;  %2342 = vmatprep.mubr.bf16.mxu0 %v7088_v52 }
  0x9e   : > { %2535 = vmatprep.mubr.bf16.mxu1 %v7090_v55  ;;  %v497_v55 = vld [vmem:[%s6657_s16 + $0x4f8] sm:$0xff] }
  0xa4   : > { %2343 = vmatmul.mubr.bf16.gmra.mxu0 %v7104_v12 }
  0xa5   : > { %2536 = vmatmul.mubr.bf16.gmra.mxu1 %v7106_v19  ;;  %2352 = vmatprep.mubr.bf16.mxu0 %v7108_v22  ;;  %v416_v22 = vld [vmem:[%s6657_s16 + $0x270] sm:$0xff]  ;;  %v6179_v19 = vld [vmem:[%s9180_s1 + $0x8] ss:$16 sps:$4 sm:$0xff]  }
  0xa6   : > { %2545 = vmatprep.mubr.bf16.mxu1 %v7110_v23  ;;  %v6149_v23 = vld [vmem:[%s9180_s1 + $0xa8] ss:$16 sps:$4 sm:$0xff]  }
  0xac   : > { %2353 = vmatmul.mubr.bf16.gmra.mxu0 %v7124_v48 }
  0xad   : > { %2546 = vmatmul.mubr.bf16.gmra.mxu1 %v7126_v49  ;;  %2362 = vmatprep.mubr.bf16.mxu0 %v7128_v56  ;;  %v572_v56 = vld [vmem:[%s6657_s16 + $0x750] sm:$0xff]  ;;  %v377_v49 = vld [vmem:[%s6657_s16 + $0x138] sm:$0xff] }
  0xae   : > { %2555 = vmatprep.mubr.bf16.mxu1 %v7130_v5  ;;  %v564_v5 = vld [vmem:[%s6657_s16 + $0x710] sm:$0xff] }
  0xb4   : > { %2363 = vmatmul.mubr.bf16.gmra.mxu0 %v7144_v34  ;;  %v570_v34 = vld [vmem:[%s6657_s16 + $0x740] sm:$0xff] }
  0xb5   : > { %2556 = vmatmul.mubr.bf16.gmra.mxu1 %v7146_v43  ;;  %2372 = vmatprep.mubr.bf16.mxu0 %v7148_v44  ;;  %v7168_v43 = vpack.c.bf16 %v571_v9, %v563_v8  ;;  %v7170_v44 = vpack.c.bf16 %v573_v11, %v565_v10  ;;  %v7186_v9 = vpack.c.bf16 %v572_v56, %v564_v5  ;;  %v343_v56 = vld [vmem:[%s6657_s16 + $0x28] sm:$0xff] }
  0xb6   : > { %2565 = vmatprep.mubr.bf16.mxu1 %v7150_v45  ;;  %v562_v45 = vld [vmem:[%s6657_s16 + $0x700] sm:$0xff]  ;;  %v7188_v10 = vpack.c.bf16 %v587_v47, %v579_v46  ;;  %v7190_v11 = vpack.c.bf16 %v589_v7, %v581_v6  ;;  %v351_v5 = vld [vmem:[%s6657_s16 + $0x68] sm:$0xff]  ;;  %v345_v46 = vld [vmem:[%s6657_s16 + $0x38] sm:$0xff] }
  0xb7   : > { %9301 = vst [vmem:[#allocation23_spill] sm:$0xff] %v7168_v43  ;;  %9302 = vst [vmem:[#allocation24_spill] sm:$0xff] %v7170_v44  ;;  %v7184_v8 = vpack.c.bf16 %v570_v34, %v562_v45  ;;  %v580_v34 = vld [vmem:[%s6657_s16 + $0x790] sm:$0xff]  ;;  %v353_v47 = vld [vmem:[%s6657_s16 + $0x78] sm:$0xff] }
  0xb8   : > { %9304 = vst [vmem:[#allocation26_spill] sm:$0xff] %v7186_v9  ;;  %9305 = vst [vmem:[#allocation27_spill] sm:$0xff] %v7188_v10  ;;  %v588_v45 = vld [vmem:[%s6657_s16 + $0x7d0] sm:$0xff] }
  0xb9   : > { %9303 = vst [vmem:[#allocation25_spill] sm:$0xff] %v7184_v8  ;;  %9306 = vst [vmem:[#allocation28_spill] sm:$0xff] %v7190_v11  ;;  %v7206_v7 = vpack.c.bf16 %v588_v45, %v580_v34  ;;  %v359_v34 = vld [vmem:[%s6657_s16 + $0xa8] sm:$0xff] }
  0xba   : > { %v367_v45 = vld [vmem:[%s6657_s16 + $0xe8] sm:$0xff] }
  0xbb   : > { %9308 = vst [vmem:[#allocation30_spill] sm:$0xff] %v7206_v7 }
  0xbc   : > { %2373 = vmatmul.mubr.bf16.gmra.mxu0 %v7164_v24  ;;  %v383_v24 = vld [vmem:[%s6657_s16 + $0x168] sm:$0xff] }
  0xbd   : > { %2566 = vmatmul.mubr.bf16.gmra.mxu1 %v7166_v25  ;;  %2382 = vmatprep.mubr.bf16.mxu0 %v7168_v43  ;;  %v586_v43 = vld [vmem:[%s6657_s16 + $0x7c0] sm:$0xff]  ;;  %v6148_v25 = vld [vmem:[%s9180_s1 + $0x2cc] ss:$16 sps:$4 sm:$0xff]  }
  0xbe   : > { %2575 = vmatprep.mubr.bf16.mxu1 %v7170_v44  ;;  %v578_v44 = vld [vmem:[%s6657_s16 + $0x780] sm:$0xff] }
  0xbf   : > { %v7204_v6 = vpack.c.bf16 %v586_v43, %v578_v44  ;;  %v344_v43 = vld [vmem:[%s6657_s16 + $0x30] sm:$0xff] }
  0xc0   : > { %v352_v44 = vld [vmem:[%s6657_s16 + $0x70] sm:$0xff] }
  0xc1   : > { %9307 = vst [vmem:[#allocation29_spill] sm:$0xff] %v7204_v6 }
  0xc4   : > { %2383 = vmatmul.mubr.bf16.gmra.mxu0 %v7184_v8  ;;  %v350_v8 = vld [vmem:[%s6657_s16 + $0x60] sm:$0xff] }
  0xc5   : > { %2576 = vmatmul.mubr.bf16.gmra.mxu1 %v7186_v9  ;;  %2392 = vmatprep.mubr.bf16.mxu0 %v7188_v10  ;;  %v7208_v10 = vpack.c.bf16 %v351_v5, %v343_v56  ;;  %v7210_v9 = vpack.c.bf16 %v353_v47, %v345_v46  ;;  %v361_v56 = vld [vmem:[%s6657_s16 + $0xb8] sm:$0xff]  ;;  %v7227_v47 = vpack.c.bf16 %v352_v44, %v344_v43  ;;  %v366_v43 = vld [vmem:[%s6657_s16 + $0xe0] sm:$0xff]  ;;  %v360_v44 = vld [vmem:[%s6657_s16 + $0xb0] sm:$0xff] }
  0xc6   : > { %2585 = vmatprep.mubr.bf16.mxu1 %v7190_v11  ;;  %v342_v11 = vld [vmem:[%s6657_s16 + $0x20] sm:$0xff]  ;;  %v369_v5 = vld [vmem:[%s6657_s16 + $0xf8] sm:$0xff] }
  0xc7   : > { %9309 = vst [vmem:[#allocation31_spill] sm:$0xff] %v7208_v10  ;;  %9310 = vst [vmem:[#allocation32_spill] sm:$0xff] %v7210_v9  ;;  %v7225_v46 = vpack.c.bf16 %v350_v8, %v342_v11  ;;  %v6145_v8 = vld [vmem:[%s9180_s1 + $0xcc] ss:$16 sps:$4 sm:$0xff]   ;;  %v358_v11 = vld [vmem:[%s6657_s16 + $0xa0] sm:$0xff] }
  0xc8   : > { %9312 = vst [vmem:[#allocation34_spill] sm:$0xff] %v7227_v47 }
  0xc9   : > { %9311 = vst [vmem:[#allocation33_spill] sm:$0xff] %v7225_v46 }
  0xcc   : > { %2393 = vmatmul.mubr.bf16.gmra.mxu0 %v7204_v6  ;;  %v7237_v6 = vpack.c.bf16 %v369_v5, %v361_v56  ;;  %v6146_v56 = vld [vmem:[%s9180_s1 + $0x2c8] ss:$16 sps:$4 sm:$0xff]  }
  0xcd   : > { %2586 = vmatmul.mubr.bf16.gmra.mxu1 %v7206_v7  ;;  %2628 = vmatprep.mubr.bf16.mxu0 %v7208_v10  ;;  %v6137_v10 = vld [vmem:[%s9180_s1 + $0xe8] ss:$16 sps:$4 sm:$0xff]   ;;  %v7235_v7 = vpack.c.bf16 %v367_v45, %v359_v34  ;;  %v368_v34 = vld [vmem:[%s6657_s16 + $0xf0] sm:$0xff] }
  0xce   : > { %5461 = vmatprep.mubr.msk.bf16.mxu1 %vm2148_vm1, %v7210_v9  ;;  %v6140_v9 = vld [vmem:[%s9180_s1 + $0x2e8] ss:$16 sps:$4 sm:$0xff]   ;;  %9314 = vst [vmem:[#allocation36_spill] sm:$0xff] %v7237_v6 }
  0xcf   : > { %9313 = vst [vmem:[#allocation35_spill] sm:$0xff] %v7235_v7  ;;  %v6143_v45 = vld [vmem:[%s9180_s1 + $0xc8] ss:$16 sps:$4 sm:$0xff]  }
  0xd0   : > { %v375_v5 = vld [vmem:[%s6657_s16 + $0x128] sm:$0xff] }
  0xd4   : > { %2629 = vmatmul.mubr.bf16.vlgmr.msra.gmra.mxu0 %v7225_v46  ;;  %v6151_v46 = vld [vmem:[%s9180_s1 + $0xac] ss:$16 sps:$4 sm:$0xff]  }
  0xd5   : > { %2822 = vmatmul.mubr.bf16.vlgmr.msra.gmra.mxu1 %v7227_v47  ;;  %2983 = vmatpush1.bf16.msra.mxu0 %v6137_v10  ;;  %v385_v47 = vld [vmem:[%s6657_s16 + $0x178] sm:$0xff]  ;;  %v7270_v10 = vpack.c.bf16 %v366_v43, %v358_v11  ;;  %v382_v11 = vld [vmem:[%s6657_s16 + $0x160] sm:$0xff]  ;;  %v376_v43 = vld [vmem:[%s6657_s16 + $0x130] sm:$0xff] }
  0xd6   : > { %3176 = vmatpush1.bf16.msra.mxu1 %v6140_v9  ;;  %2638 = vmatprep.mubr.bf16.mxu0 %v7235_v7  ;;  %v6154_v9 = vld [vmem:[%s9180_s1 + $0x2ac] ss:$16 sps:$4 sm:$0xff]   ;;  %v7272_v7 = vpack.c.bf16 %v368_v34, %v360_v44  ;;  %v7276_v48 = vpack.c.bf16 %v385_v47, %v377_v49  ;;  %v384_v44 = vld [vmem:[%s6657_s16 + $0x170] sm:$0xff] }
  0xd7   : > { %5462 = vmatprep.mubr.msk.bf16.mxu1 %vm2148_vm1, %v7237_v6  ;;  %2984 = vmatprep.subr.bf16.mxu0 %v6145_v8  ;;  %9315 = vst [vmem:[#allocation37_spill] sm:$0xff] %v7270_v10  ;;  %v7274_v6 = vpack.c.bf16 %v383_v24, %v375_v5  ;;  %v374_v8 = vld [vmem:[%s6657_s16 + $0x120] sm:$0xff]  ;;  %v6157_v49 = vld [vmem:[%s9180_s1 + $0x8c] ss:$16 sps:$4 sm:$0xff]   ;;  %v6158_v5 = vld [vmem:[%s9180_s1 + $0x288] ss:$16 sps:$4 sm:$0xff]  }
  0xd8   : > { %3177 = vmatprep.subr.bf16.mxu1 %v6148_v25  ;;  %9316 = vst [vmem:[#allocation38_spill] sm:$0xff] %v7272_v7  ;;  %9318 = vst [vmem:[#allocation40_spill] sm:$0xff] %v7276_v48  ;;  %v6152_v25 = vld [vmem:[%s9180_s1 + $0x2a8] ss:$16 sps:$4 sm:$0xff]   ;;  %v6160_v24 = vld [vmem:[%s9180_s1 + $0x28c] ss:$16 sps:$4 sm:$0xff]  }
  0xd9   : > { %2985 = vmatpush1.bf16.msra.mxu0 %v6143_v45  ;;  %9317 = vst [vmem:[#allocation39_spill] sm:$0xff] %v7274_v6  ;;  %v399_v47 = vld [vmem:[%s6657_s16 + $0x1e8] sm:$0xff]  ;;  %v393_v34 = vld [vmem:[%s6657_s16 + $0x1b8] sm:$0xff] }
  0xda   : > { %3178 = vmatpush1.bf16.msra.mxu1 %v6146_v56  ;;  %2986 = vmatprep.subr.bf16.mxu0 %v6151_v46  ;;  %v391_v46 = vld [vmem:[%s6657_s16 + $0x1a8] sm:$0xff]  ;;  %v401_v45 = vld [vmem:[%s6657_s16 + $0x1f8] sm:$0xff] }
  0xdb   : > { %3179 = vmatprep.subr.bf16.mxu1 %v6154_v9  ;;  %v6155_v56 = vld [vmem:[%s9180_s1 + $0x88] ss:$16 sps:$4 sm:$0xff]   ;;  %v6163_v9 = vld [vmem:[%s9180_s1 + $0x6c] ss:$16 sps:$4 sm:$0xff]  }
  0xdc   : > { %2639 = vmatmul.mubr.bf16.gmra.mxu0 %v7270_v10  ;;  %v6167_v10 = vld [vmem:[%s9180_s1 + $0x48] ss:$16 sps:$4 sm:$0xff]  }
  0xdd   : > { %2832 = vmatmul.mubr.bf16.gmra.mxu1 %v7272_v7  ;;  %2648 = vmatprep.mubr.bf16.mxu0 %v7274_v6  ;;  %v7319_v6 = vpack.c.bf16 %v399_v47, %v391_v46  ;;  %v7321_v7 = vpack.c.bf16 %v401_v45, %v393_v34  ;;  %v392_v46 = vld [vmem:[%s6657_s16 + $0x1b0] sm:$0xff]  ;;  %v407_v34 = vld [vmem:[%s6657_s16 + $0x228] sm:$0xff] }
  0xde   : > { %5463 = vmatprep.mubr.msk.bf16.mxu1 %vm2148_vm1, %v7276_v48  ;;  %2987 = vmatpush1.bf16.msra.mxu0 %v6149_v23  ;;  %v6166_v48 = vld [vmem:[%s9180_s1 + $0x26c] ss:$16 sps:$4 sm:$0xff]   ;;  %v7315_v23 = vpack.c.bf16 %v382_v11, %v374_v8  ;;  %v400_v47 = vld [vmem:[%s6657_s16 + $0x1f0] sm:$0xff] }
  0xdf   : > { %3180 = vmatpush1.bf16.msra.mxu1 %v6152_v25  ;;  %2988 = vmatprep.subr.bf16.mxu0 %v6157_v49  ;;  %v7317_v25 = vpack.c.bf16 %v384_v44, %v376_v43  ;;  %9321 = vst [vmem:[#allocation43_spill] sm:$0xff] %v7319_v6  ;;  %9322 = vst [vmem:[#allocation44_spill] sm:$0xff] %v7321_v7  ;;  %v6161_v49 = vld [vmem:[%s9180_s1 + $0x68] ss:$16 sps:$4 sm:$0xff]   ;;  %v6169_v8 = vld [vmem:[%s9180_s1 + $0x4c] ss:$16 sps:$4 sm:$0xff]  }
  0xe0   : > { %3181 = vmatprep.subr.bf16.mxu1 %v6160_v24  ;;  %9319 = vst [vmem:[#allocation41_spill] sm:$0xff] %v7315_v23  ;;  %v6164_v24 = vld [vmem:[%s9180_s1 + $0x268] ss:$16 sps:$4 sm:$0xff]   ;;  %v6172_v11 = vld [vmem:[%s9180_s1 + $0x24c] ss:$16 sps:$4 sm:$0xff]   ;;  %v390_v43 = vld [vmem:[%s6657_s16 + $0x1a0] sm:$0xff] }
  0xe1   : > { %9320 = vst [vmem:[#allocation42_spill] sm:$0xff] %v7317_v25  ;;  %v398_v44 = vld [vmem:[%s6657_s16 + $0x1e0] sm:$0xff]  ;;  %v415_v45 = vld [vmem:[%s6657_s16 + $0x268] sm:$0xff] }
  0xe2   : > { %2989 = vmatpush1.bf16.msra.mxu0 %v6155_v56  ;;  %v409_v56 = vld [vmem:[%s6657_s16 + $0x238] sm:$0xff] }
  0xe3   : > { %3182 = vmatpush1.bf16.msra.mxu1 %v6158_v5  ;;  %2990 = vmatprep.subr.bf16.mxu0 %v6163_v9  ;;  %v417_v5 = vld [vmem:[%s6657_s16 + $0x278] sm:$0xff] }
  0xe4   : > { %3183 = vmatprep.subr.bf16.mxu1 %v6166_v48  ;;  %2649 = vmatmul.mubr.bf16.gmra.mxu0 %v7315_v23  ;;  %v6170_v48 = vld [vmem:[%s9180_s1 + $0x248] ss:$16 sps:$4 sm:$0xff]   ;;  %v6175_v9 = vld [vmem:[%s9180_s1 + $0x2c] ss:$16 sps:$4 sm:$0xff]   ;;  %v408_v23 = vld [vmem:[%s6657_s16 + $0x230] sm:$0xff] }
  0xe5   : > { %2842 = vmatmul.mubr.bf16.gmra.mxu1 %v7317_v25  ;;  %2658 = vmatprep.mubr.bf16.mxu0 %v7319_v6  ;;  %v7360_v6 = vpack.c.bf16 %v398_v44, %v390_v43  ;;  %v7362_v25 = vpack.c.bf16 %v400_v47, %v392_v46  ;;  %v6181_v43 = vld [vmem:[%s9180_s1 + $0xc] ss:$16 sps:$4 sm:$0xff]   ;;  %v406_v46 = vld [vmem:[%s6657_s16 + $0x220] sm:$0xff] }
  0xe6   : > { %5464 = vmatprep.mubr.msk.bf16.mxu1 %vm2148_vm1, %v7321_v7  ;;  %2991 = vmatpush1.bf16.msra.mxu0 %v6161_v49  ;;  %v6178_v7 = vld [vmem:[%s9180_s1 + $0x22c] ss:$16 sps:$4 sm:$0xff]   ;;  %v6173_v49 = vld [vmem:[%s9180_s1 + $0x28] ss:$16 sps:$4 sm:$0xff]   ;;  %v414_v47 = vld [vmem:[%s6657_s16 + $0x260] sm:$0xff] }
  0xe7   : > { %3184 = vmatpush1.bf16.msra.mxu1 %v6164_v24  ;;  %2992 = vmatprep.subr.bf16.mxu0 %v6169_v8  ;;  %9323 = vst [vmem:[#allocation45_spill] sm:$0xff] %v7360_v6  ;;  %9324 = vst [vmem:[#allocation46_spill] sm:$0xff] %v7362_v25  ;;  %v6176_v24 = vld [vmem:[%s9180_s1 + $0x228] ss:$16 sps:$4 sm:$0xff]   ;;  %v7370_v8 = vpack.c.bf16 %v415_v45, %v407_v34  ;;  %v6184_v44 = vld [vmem:[%s9180_s1 + $0x20c] ss:$16 sps:$4 sm:$0xff]  }
  0xe8   : > { %3185 = vmatprep.subr.bf16.mxu1 %v6172_v11  ;;  %v7372_v11 = vpack.c.bf16 %v417_v5, %v409_v56  ;;  %v423_v34 = vld [vmem:[%s6657_s16 + $0x2a8] sm:$0xff]  ;;  %v425_v56 = vld [vmem:[%s6657_s16 + $0x2b8] sm:$0xff] }
  0xe9   : > { %9325 = vst [vmem:[#allocation47_spill] sm:$0xff] %v7370_v8  ;;  %v431_v45 = vld [vmem:[%s6657_s16 + $0x2e8] sm:$0xff]  ;;  %v433_v5 = vld [vmem:[%s6657_s16 + $0x2f8] sm:$0xff] }
  0xea   : > { %9326 = vst [vmem:[#allocation48_spill] sm:$0xff] %v7372_v11  ;;  %2993 = vmatpush1.bf16.msra.mxu0 %v6167_v10  ;;  %v6182_v10 = vld [vmem:[%s9180_s1 + $0x208] ss:$16 sps:$4 sm:$0xff]  }
  0xeb   : > { %3186 = vmatpush1.bf16.msra.mxu1 %v6170_v48  ;;  %2994 = vmatprep.subr.bf16.mxu0 %v6175_v9  ;;  %v6190_v48 = vld [vmem:[%s9180_s1 + $0x3ec] ss:$16 sps:$4 sm:$0xff]   ;;  %v7405_v9 = vpack.c.bf16 %v414_v47, %v406_v46  ;;  %v422_v46 = vld [vmem:[%s6657_s16 + $0x2a0] sm:$0xff] }
  0xec   : > { %3187 = vmatprep.subr.bf16.mxu1 %v6178_v7  ;;  %2659 = vmatmul.mubr.bf16.gmra.mxu0 %v7360_v6  ;;  %v6187_v7 = vld [vmem:[%s9180_s1 + $0x1ec] ss:$16 sps:$4 sm:$0xff]   ;;  %v430_v47 = vld [vmem:[%s6657_s16 + $0x2e0] sm:$0xff]  ;;  %v432_v6 = vld [vmem:[%s6657_s16 + $0x2f0] sm:$0xff] }
  0xed   : > { %2852 = vmatmul.mubr.bf16.gmra.mxu1 %v7362_v25  ;;  %2668 = vmatprep.mubr.bf16.mxu0 %v7370_v8  ;;  %9327 = vst [vmem:[#allocation49_spill] sm:$0xff] %v7405_v9  ;;  %v7407_v8 = vpack.c.bf16 %v416_v22, %v408_v23  ;;  %v6193_v22 = vld [vmem:[%s9180_s1 + $0x1cc] ss:$16 sps:$4 sm:$0xff]   ;;  %v424_v25 = vld [vmem:[%s6657_s16 + $0x2b0] sm:$0xff] }
  0xee   : > { %5465 = vmatprep.mubr.msk.bf16.mxu1 %vm2148_vm1, %v7372_v11  ;;  %2995 = vmatpush1.bf16.msra.mxu0 %v6173_v49  ;;  %v958_v49 = vlaneseq  ;;  %v7417_v11 = vpack.c.bf16 %v433_v5, %v425_v56  ;;  %v6196_v23 = vld [vmem:[%s9180_s1 + $0x3cc] ss:$16 sps:$4 sm:$0xff]  }
  0xef   : > { %3188 = vmatpush1.bf16.msra.mxu1 %v6176_v24  ;;  %2996 = vmatprep.subr.bf16.mxu0 %v6181_v43  ;;  %9328 = vst [vmem:[#allocation50_spill] sm:$0xff] %v7407_v8  ;;  %v6185_v24 = vld [vmem:[%s9180_s1 + $0x1e8] ss:$16 sps:$4 sm:$0xff]  }
  0xf0   : > { %3189 = vmatprep.subr.bf16.mxu1 %v6184_v44  ;;  %v6188_v43 = vld [vmem:[%s9180_s1 + $0x3e8] ss:$16 sps:$4 sm:$0xff]   ;;  %v7415_v44 = vpack.c.bf16 %v431_v45, %v423_v34  ;;  %9330 = vst [vmem:[#allocation52_spill] sm:$0xff] %v7417_v11  ;;  %v7435_v12 = vshrl.u32 %v958_v49, 7  ;;  %v7452_v49 = vpack.c.bf16 %v430_v47, %v422_v46  ;;  %v440_v46 = vld [vmem:[%s6657_s16 + $0x330] sm:$0xff] }
  0xf1   : > { %v439_v34 = vld [vmem:[%s6657_s16 + $0x328] sm:$0xff]  ;;  %v441_v56 = vld [vmem:[%s6657_s16 + $0x338] sm:$0xff]  ;;  %v448_v47 = vld [vmem:[%s6657_s16 + $0x370] sm:$0xff] }
  0xf2   : > { %9329 = vst [vmem:[#allocation51_spill] sm:$0xff] %v7415_v44  ;;  %2997 = vmatpush1.bf16.msra.mxu0 %v6179_v19  ;;  %v447_v45 = vld [vmem:[%s6657_s16 + $0x368] sm:$0xff]  ;;  %v449_v5 = vld [vmem:[%s6657_s16 + $0x378] sm:$0xff]  ;;  %9331 = vst [vmem:[#allocation53_spill] sm:$0xff] %v7435_v12 }
  0xf3   : > { %3190 = vmatpush1.bf16.msra.mxu1 %v6182_v10  ;;  %2998 = vmatprep.subr.bf16.mxu0 %v6187_v7  ;;  %v6191_v19 = vld [vmem:[%s9180_s1 + $0x1c8] ss:$16 sps:$4 sm:$0xff]   ;;  %v6199_v7 = vld [vmem:[%s9180_s1 + $0x1ac] ss:$16 sps:$4 sm:$0xff]   ;;  %9332 = vst [vmem:[#allocation54_spill] sm:$0xff] %v7452_v49 }
  0xf4   : > { %3191 = vmatprep.subr.bf16.mxu1 %v6190_v48  ;;  %2669 = vmatmul.mubr.bf16.gmra.mxu0 %v7405_v9  ;;  %v6194_v10 = vld [vmem:[%s9180_s1 + $0x3c8] ss:$16 sps:$4 sm:$0xff]   ;;  %v6202_v48 = vld [vmem:[%s9180_s1 + $0x3ac] ss:$16 sps:$4 sm:$0xff]  }
  0xf5   : > { %2862 = vmatmul.mubr.bf16.gmra.mxu1 %v7407_v8  ;;  %2678 = vmatprep.mubr.bf16.mxu0 %v7415_v44  ;;  %v7454_v44 = vpack.c.bf16 %v432_v6, %v424_v25  ;;  %v438_v6 = vld [vmem:[%s6657_s16 + $0x320] sm:$0xff]  ;;  %v464_v8 = vld [vmem:[%s6657_s16 + $0x3f0] sm:$0xff]  ;;  %v6215_v9 = vld [vmem:[%s9180_s1 + $0x148] ss:$16 sps:$4 sm:$0xff]  }
  0xf6   : > { %5466 = vmatprep.mubr.msk.bf16.mxu1 %vm2148_vm1, %v7417_v11  ;;  %2999 = vmatpush2.bf16.msra.mxu0 %v6185_v24  ;;  %v6197_v24 = vld [vmem:[%s9180_s1 + $0x1a8] ss:$16 sps:$4 sm:$0xff]   ;;  %v446_v25 = vld [vmem:[%s6657_s16 + $0x360] sm:$0xff]  ;;  %v6205_v11 = vld [vmem:[%s9180_s1 + $0x18c] ss:$16 sps:$4 sm:$0xff]  }
  0xf7   : > { %3192 = vmatpush2.bf16.msra.mxu1 %v6188_v43  ;;  %3000 = vmatprep.subr.bf16.mxu0 %v6193_v22  ;;  %9333 = vst [vmem:[#allocation55_spill] sm:$0xff] %v7454_v44  ;;  %v6200_v43 = vld [vmem:[%s9180_s1 + $0x3a8] ss:$16 sps:$4 sm:$0xff]   ;;  %v7462_v22 = vpack.c.bf16 %v447_v45, %v439_v34  ;;  %v6208_v34 = vld [vmem:[%s9180_s1 + $0x38c] ss:$16 sps:$4 sm:$0xff]  }
  0xf8   : > { %3193 = vmatprep.subr.bf16.mxu1 %v6196_v23  ;;  %v7464_v23 = vpack.c.bf16 %v449_v5, %v441_v56  ;;  %v455_v45 = vld [vmem:[%s6657_s16 + $0x3a8] sm:$0xff]  ;;  %v457_v5 = vld [vmem:[%s6657_s16 + $0x3b8] sm:$0xff] }
  0xf9   : > { %9334 = vst [vmem:[#allocation56_spill] sm:$0xff] %v7462_v22  ;;  %v463_v56 = vld [vmem:[%s6657_s16 + $0x3e8] sm:$0xff] }
  0xfa   : > { %9335 = vst [vmem:[#allocation57_spill] sm:$0xff] %v7464_v23  ;;  %3001 = vmatpush2.bf16.msra.mxu0 %v6191_v19  ;;  %v465_v19 = vld [vmem:[%s6657_s16 + $0x3f8] sm:$0xff] }
  0xfb   : > { %3194 = vmatpush2.bf16.msra.mxu1 %v6194_v10  ;;  %3002 = vmatprep.subr.bf16.mxu0 %v6199_v7  ;;  %v6203_v10 = vld [vmem:[%s9180_s1 + $0x188] ss:$16 sps:$4 sm:$0xff]  }
  0xfc   : > { %3195 = vmatprep.subr.bf16.mxu1 %v6202_v48  ;;  %2679 = vmatmul.mubr.bf16.gmra.mxu0 %v7452_v49  ;;  %v6206_v7 = vld [vmem:[%s9180_s1 + $0x388] ss:$16 sps:$4 sm:$0xff]   ;;  %v6211_v48 = vld [vmem:[%s9180_s1 + $0x16c] ss:$16 sps:$4 sm:$0xff]   ;;  %v7499_v49 = vpack.c.bf16 %v448_v47, %v440_v46  ;;  %v454_v46 = vld [vmem:[%s6657_s16 + $0x3a0] sm:$0xff] }
  0xfd   : > { %2872 = vmatmul.mubr.bf16.gmra.mxu1 %v7454_v44  ;;  %2688 = vmatprep.mubr.bf16.mxu0 %v7462_v22  ;;  %v6214_v44 = vld [vmem:[%s9180_s1 + $0x36c] ss:$16 sps:$4 sm:$0xff]   ;;  %v7497_v22 = vpack.c.bf16 %v446_v25, %v438_v6  ;;  %v462_v47 = vld [vmem:[%s6657_s16 + $0x3e0] sm:$0xff] }
  0xfe   : > { %5467 = vmatprep.mubr.msk.bf16.mxu1 %vm2148_vm1, %v7464_v23  ;;  %3003 = vmatpush2.bf16.msra.mxu0 %v6197_v24  ;;  %9337 = vst [vmem:[#allocation59_spill] sm:$0xff] %v7499_v49  ;;  %v6209_v24 = vld [vmem:[%s9180_s1 + $0x168] ss:$16 sps:$4 sm:$0xff]   ;;  %v6217_v6 = vld [vmem:[%s9180_s1 + $0x14c] ss:$16 sps:$4 sm:$0xff]   ;;  %v456_v23 = vld [vmem:[%s6657_s16 + $0x3b0] sm:$0xff] }
  0xff   : > { %3196 = vmatpush2.bf16.msra.mxu1 %v6200_v43  ;;  %3004 = vmatprep.subr.bf16.mxu0 %v6205_v11  ;;  %9336 = vst [vmem:[#allocation58_spill] sm:$0xff] %v7497_v22  ;;  %v6212_v11 = vld [vmem:[%s9180_s1 + $0x368] ss:$16 sps:$4 sm:$0xff]   ;;  %v7507_v43 = vpack.c.bf16 %v463_v56, %v455_v45  ;;  %v6220_v25 = vld [vmem:[%s9180_s1 + $0x34c] ss:$16 sps:$4 sm:$0xff]  }
 0x100   : > { %3197 = vmatprep.subr.bf16.mxu1 %v6208_v34  ;;  %v7509_v34 = vpack.c.bf16 %v465_v19, %v457_v5  ;;  %v471_v45 = vld [vmem:[%s6657_s16 + $0x428] sm:$0xff]  ;;  %v473_v5 = vld [vmem:[%s6657_s16 + $0x438] sm:$0xff] }
 0x101   : > { %9338 = vst [vmem:[#allocation60_spill] sm:$0xff] %v7507_v43  ;;  %v479_v56 = vld [vmem:[%s6657_s16 + $0x468] sm:$0xff]  ;;  %v481_v19 = vld [vmem:[%s6657_s16 + $0x478] sm:$0xff] }
 0x102   : > { %9339 = vst [vmem:[#allocation61_spill] sm:$0xff] %v7509_v34  ;;  %3005 = vmatpush2.bf16.msra.mxu0 %v6203_v10  ;;  %v6218_v10 = vld [vmem:[%s9180_s1 + $0x348] ss:$16 sps:$4 sm:$0xff]  }
 0x103   : > { %3198 = vmatpush2.bf16.msra.mxu1 %v6206_v7  ;;  %3006 = vmatprep.subr.bf16.mxu0 %v6211_v48  ;;  %v964_v7 = vsub.s32 1, %v7435_v12  ;;  %v6223_v48 = vld [vmem:[%s9180_s1 + $0x12c] ss:$16 sps:$4 sm:$0xff]  }
 0x104   : > { %3199 = vmatprep.subr.bf16.mxu1 %v6214_v44  ;;  %2689 = vmatmul.mubr.bf16.gmra.mxu0 %v7497_v22  ;;  %v960_v44 = vsub.s32 0, %v7435_v12  ;;  %v6221_v12 = vld [vmem:[%s9180_s1 + $0x128] ss:$16 sps:$4 sm:$0xff]  }
 0x105   : > { %2882 = vmatmul.mubr.bf16.gmra.mxu1 %v7499_v49  ;;  %2698 = vmatprep.mubr.bf16.mxu0 %v7507_v43  ;;  %v7556_v43 = vpack.c.bf16 %v481_v19, %v473_v5  ;;  %v472_v49 = vld [vmem:[%s6657_s16 + $0x430] sm:$0xff]  ;;  %v487_v5 = vld [vmem:[%s6657_s16 + $0x4a8] sm:$0xff]  ;;  %v489_v22 = vld [vmem:[%s6657_s16 + $0x4b8] sm:$0xff] }
 0x106   : > { %5468 = vmatprep.mubr.msk.bf16.mxu1 %vm2148_vm1, %v7509_v34  ;;  %3007 = vmatpush2.bf16.msra.mxu0 %v6209_v24  ;;  %v6226_v34 = vld [vmem:[%s9180_s1 + $0x32c] ss:$16 sps:$4 sm:$0xff]   ;;  %v7544_v24 = vpack.c.bf16 %v462_v47, %v454_v46  ;;  %v470_v46 = vld [vmem:[%s6657_s16 + $0x420] sm:$0xff] }
 0x107   : > { %3200 = vmatpush2.bf16.msra.mxu1 %v6212_v11  ;;  %3008 = vmatprep.subr.bf16.mxu0 %v6217_v6  ;;  %v7546_v11 = vpack.c.bf16 %v464_v8, %v456_v23  ;;  %v6224_v6 = vld [vmem:[%s9180_s1 + $0x328] ss:$16 sps:$4 sm:$0xff]   ;;  %9343 = vst [vmem:[#allocation65_spill] sm:$0xff] %v7556_v43  ;;  %v6229_v8 = vld [vmem:[%s9180_s1 + $0x10c] ss:$16 sps:$4 sm:$0xff]   ;;  %v478_v47 = vld [vmem:[%s6657_s16 + $0x460] sm:$0xff] }
 0x108   : > { %3201 = vmatprep.subr.bf16.mxu1 %v6220_v25  ;;  %9340 = vst [vmem:[#allocation62_spill] sm:$0xff] %v7544_v24  ;;  %v7554_v25 = vpack.c.bf16 %v479_v56, %v471_v45  ;;  %v6232_v23 = vld [vmem:[%s9180_s1 + $0x30c] ss:$16 sps:$4 sm:$0xff]   ;;  %v480_v45 = vld [vmem:[%s6657_s16 + $0x470] sm:$0xff]  ;;  %v956_v56 = vld [vmem:[%s9181_s2] sm:$0xf] }
 0x109   : > { %9341 = vst [vmem:[#allocation63_spill] sm:$0xff] %v7546_v11  ;;  %v495_v19 = vld [vmem:[%s6657_s16 + $0x4e8] sm:$0xff] }
 0x10a   : > { %9342 = vst [vmem:[#allocation64_spill] sm:$0xff] %v7554_v25  ;;  %3009 = vmatpush2.bf16.msra.mxu0 %v6215_v9  ;;  %v6227_v9 = vld [vmem:[%s9180_s1 + $0x108] ss:$16 sps:$4 sm:$0xff]  }
 0x10b   : > { %3202 = vmatpush2.bf16.msra.mxu1 %v6218_v10  ;;  %3010 = vmatprep.subr.bf16.mxu0 %v6223_v48  ;;  %v6235_v10 = vld [vmem:[%s9180_s1 + $0x4ec] ss:$16 sps:$4 sm:$0xff]  }
 0x10c   : > { %3203 = vmatprep.subr.bf16.mxu1 %v6226_v34  ;;  %2699 = vmatmul.mubr.bf16.gmra.mxu0 %v7544_v24  ;;  %v6230_v34 = vld [vmem:[%s9180_s1 + $0x308] ss:$16 sps:$4 sm:$0xff]   ;;  %v6238_v48 = vld [vmem:[%s9180_s1 + $0x6ec] ss:$16 sps:$4 sm:$0xff]   ;;  %v494_v24 = vld [vmem:[%s6657_s16 + $0x4e0] sm:$0xff] }
 0x10d   : > { %2892 = vmatmul.mubr.bf16.gmra.mxu1 %v7546_v11  ;;  %2708 = vmatprep.mubr.bf16.mxu0 %v7554_v25  ;;  %v7592_v25 = vpack.c.bf16 %v478_v47, %v470_v46  ;;  %v7594_v11 = vpack.c.bf16 %v480_v45, %v472_v49  ;;  %v488_v46 = vld [vmem:[%s6657_s16 + $0x4b0] sm:$0xff]  ;;  %v505_v45 = vld [vmem:[%s6657_s16 + $0x538] sm:$0xff] }
 0x10e   : > { %5469 = vmatprep.mubr.msk.bf16.mxu1 %vm2148_vm1, %v7556_v43  ;;  %3011 = vmatpush2.bf16.msra.mxu0 %v6221_v12  ;;  %v7596_v43 = vrot.slane %v956_v56, %v960_v44  ;;  %v7598_v12 = vpack.c.bf16 %v495_v19, %v487_v5  ;;  %v496_v47 = vld [vmem:[%s6657_s16 + $0x4f0] sm:$0xff]  ;;  %v513_v5 = vld [vmem:[%s6657_s16 + $0x578] sm:$0xff] }
 0x10f   : > { %3204 = vmatpush2.bf16.msra.mxu1 %v6224_v6  ;;  %3012 = vmatprep.subr.bf16.mxu0 %v6229_v8  ;;  %9344 = vst [vmem:[#allocation66_spill] sm:$0xff] %v7592_v25  ;;  %9345 = vst [vmem:[#allocation67_spill] sm:$0xff] %v7594_v11  ;;  %v7600_v6 = vpack.c.bf16 %v497_v55, %v489_v22  ;;  %v7602_v8 = vrot.slane %v956_v56, %v964_v7  ;;  %v503_v55 = vld [vmem:[%s6657_s16 + $0x528] sm:$0xff] }
 0x110   : > { %3205 = vmatprep.subr.bf16.mxu1 %v6232_v23  ;;  %9346 = vst [vmem:[#allocation68_spill] sm:$0xff] %v7598_v12  ;;  %v486_v23 = vld [vmem:[%s6657_s16 + $0x4a0] sm:$0xff]  ;;  %v511_v22 = vld [vmem:[%s6657_s16 + $0x568] sm:$0xff] }
 0x111   : > { %9347 = vst [vmem:[#allocation69_spill] sm:$0xff] %v7600_v6  ;;  %v7628_v52 = vpack.c.bf16 %v511_v22, %v503_v55  ;;  %v510_v55 = vld [vmem:[%s6657_s16 + $0x560] sm:$0xff] }
 0x112   : > { %3013 = vmatpush2.bf16.msra.mxu0 %v6227_v9 }
 0x113   : > { %3206 = vmatpush2.bf16.msra.mxu1 %v6230_v34  ;;  %3368 = vmatprep.subr.bf16.mxu0 %v6235_v10  ;;  %9350 = vst [vmem:[#allocation72_spill] sm:$0xff] %v7628_v52 }
 0x114   : > { %3561 = vmatprep.subr.bf16.mxu1 %v6238_v48  ;;  %v2244_v49 = vpop.f32.mrf.mxu0  ;;  %2709 = vmatmul.mubr.bf16.gmra.mxu0 %v7592_v25  ;;  %v7623_v25 = vpack.c.bf16 %v496_v47, %v488_v46  ;;  %v502_v47 = vld [vmem:[%s6657_s16 + $0x520] sm:$0xff] }
 0x115   : > { %v2437_v44 = vpop.f32.mrf.mxu1  ;;  %2902 = vmatmul.mubr.bf16.gmra.mxu1 %v7594_v11  ;;  %v2245_v19 = vadd.f32 %v2244_v49, %v7596_v43  ;;  %2718 = vmatprep.mubr.bf16.mxu0 %v7598_v12  ;;  %v7621_v11 = vpack.c.bf16 %v494_v24, %v486_v23 }
 0x116   : > { %5470 = vmatprep.mubr.msk.bf16.mxu1 %vm2148_vm1, %v7600_v6  ;;  %v2246_v7 = vpop.f32.mrf.mxu0  ;;  %9349 = vst [vmem:[#allocation71_spill] sm:$0xff] %v7623_v25  ;;  %v7630_v6 = vpack.c.bf16 %v513_v5, %v505_v45  ;;  %v512_v5 = vld [vmem:[%s6657_s16 + $0x570] sm:$0xff] }
 0x117   : > { %v2439_v56 = vpop.f32.mrf.mxu1  ;;  %v7618_v9 = vadd.f32 %v2437_v44, %v2245_v19  ;;  %v2247_v34 = vadd.f32 %v2246_v7, %v7602_v8  ;;  %9348 = vst [vmem:[#allocation70_spill] sm:$0xff] %v7621_v11 }
 0x118   : > { %v2248_v10 = vpop.f32.mrf.mxu0  ;;  %9351 = vst [vmem:[#allocation73_spill] sm:$0xff] %v7630_v6 }
 0x119   : > { %v2441_v48 = vpop.f32.mrf.mxu1  ;;  %v7625_v49 = vadd.f32 %v2439_v56, %v2247_v34  ;;  %v2249_v12 = vadd.f32 %v2248_v10, %v7596_v43  ;;  %v519_v56 = vld [vmem:[%s6657_s16 + $0x5a8] sm:$0xff] }
 0x11a   : > { %v2250_v44 = vpop.f32.mrf.mxu0 }
 0x11b   : > { %v2443_v19 = vpop.f32.mrf.mxu1  ;;  %v7632_v7 = vadd.f32 %v2441_v48, %v2249_v12  ;;  %v2251_v24 = vadd.f32 %v2250_v44, %v7602_v8  ;;  %v504_v12 = vld [vmem:[%s6657_s16 + $0x530] sm:$0xff]  ;;  %v527_v48 = vld [vmem:[%s6657_s16 + $0x5e8] sm:$0xff]  ;;  %v521_v44 = vld [vmem:[%s6657_s16 + $0x5b8] sm:$0xff] }
 0x11c   : > { %v2254_v23 = vpop.f32.mrf.mxu0  ;;  %2719 = vmatmul.mubr.bf16.gmra.mxu0 %v7621_v11  ;;  %v529_v11 = vld [vmem:[%s6657_s16 + $0x5f8] sm:$0xff]  ;;  %v7656_v51 = vpack.c.bf16 %v512_v5, %v504_v12  ;;  %v518_v5 = vld [vmem:[%s6657_s16 + $0x5a0] sm:$0xff] }
 0x11d   : > { %9352 = vst [vmem:[#allocation74_spill] sm:$0xff] %v7632_v7  ;;  %v2447_v46 = vpop.f32.mrf.mxu1  ;;  %2912 = vmatmul.mubr.bf16.gmra.mxu1 %v7623_v25  ;;  %v7639_v22 = vadd.f32 %v2443_v19, %v2251_v24  ;;  %v2255_v45 = vadd.f32 %v2254_v23, %v7596_v43  ;;  %2728 = vmatprep.mubr.bf16.mxu0 %v7628_v52 }
 0x11e   : > { %5471 = vmatprep.mubr.msk.bf16.mxu1 %vm2148_vm1, %v7630_v6  ;;  %v2256_v34 = vpop.f32.mrf.mxu0  ;;  %v7654_v52 = vpack.c.bf16 %v510_v55, %v502_v47  ;;  %9356 = vst [vmem:[#allocation78_spill] sm:$0xff] %v7656_v51  ;;  %v7663_v7 = vpack.c.bf16 %v529_v11, %v521_v44  ;;  %v526_v11 = vld [vmem:[%s6657_s16 + $0x5e0] sm:$0xff]  ;;  %v535_v44 = vld [vmem:[%s6657_s16 + $0x628] sm:$0xff] }
 0x11f   : > { %9353 = vst [vmem:[#allocation75_spill] sm:$0xff] %v7639_v22  ;;  %v2449_v10 = vpop.f32.mrf.mxu1  ;;  %v7651_v25 = vadd.f32 %v2447_v46, %v2255_v45  ;;  %v2257_v19 = vadd.f32 %v2256_v34, %v7602_v8  ;;  %v7661_v22 = vpack.c.bf16 %v527_v48, %v519_v56  ;;  %v528_v48 = vld [vmem:[%s6657_s16 + $0x5f0] sm:$0xff] }
 0x120   : > { %v2258_v24 = vpop.f32.mrf.mxu0  ;;  %9355 = vst [vmem:[#allocation77_spill] sm:$0xff] %v7654_v52  ;;  %9359 = vst [vmem:[#allocation81_spill] sm:$0xff] %v7663_v7 }
 0x121   : > { %9354 = vst [vmem:[#allocation76_spill] sm:$0xff] %v7651_v25  ;;  %v2451_v23 = vpop.f32.mrf.mxu1  ;;  %v7658_v6 = vadd.f32 %v2449_v10, %v2257_v19  ;;  %v2259_v50 = vadd.f32 %v2258_v24, %v7596_v43  ;;  %9358 = vst [vmem:[#allocation80_spill] sm:$0xff] %v7661_v22 }
 0x122   : > { %v2260_v46 = vpop.f32.mrf.mxu0 }
 0x123   : > { %9357 = vst [vmem:[#allocation79_spill] sm:$0xff] %v7658_v6  ;;  %v2453_v45 = vpop.f32.mrf.mxu1  ;;  %v7665_v34 = vadd.f32 %v2451_v23, %v2259_v50  ;;  %v2261_v47 = vadd.f32 %v2260_v46, %v7602_v8  ;;  %v520_v50 = vld [vmem:[%s6657_s16 + $0x5b0] sm:$0xff]  ;;  %v543_v23 = vld [vmem:[%s6657_s16 + $0x668] sm:$0xff]  ;;  %v537_v46 = vld [vmem:[%s6657_s16 + $0x638] sm:$0xff] }
 0x124   : > { %v2264_v55 = vpop.f32.mrf.mxu0  ;;  %2729 = vmatmul.mubr.bf16.gmra.mxu0 %v7654_v52  ;;  %v545_v52 = vld [vmem:[%s6657_s16 + $0x678] sm:$0xff]  ;;  %v7694_v6 = vpack.c.bf16 %v543_v23, %v535_v44  ;;  %v544_v23 = vld [vmem:[%s6657_s16 + $0x670] sm:$0xff] }
 0x125   : > { %9360 = vst [vmem:[#allocation82_spill] sm:$0xff] %v7665_v34  ;;  %v2457_v12 = vpop.f32.mrf.mxu1  ;;  %2922 = vmatmul.mubr.bf16.gmra.mxu1 %v7656_v51  ;;  %v7672_v56 = vadd.f32 %v2453_v45, %v2261_v47  ;;  %v2265_v10 = vadd.f32 %v2264_v55, %v7596_v43  ;;  %2738 = vmatprep.mubr.bf16.mxu0 %v7661_v22 }
 0x126   : > { %5472 = vmatprep.mubr.msk.bf16.mxu1 %vm2148_vm1, %v7663_v7  ;;  %v2266_v19 = vpop.f32.mrf.mxu0  ;;  %v7687_v22 = vpack.c.bf16 %v526_v11, %v518_v5  ;;  %9366 = vst [vmem:[#allocation88_spill] sm:$0xff] %v7694_v6  ;;  %v7696_v25 = vpack.c.bf16 %v545_v52, %v537_v46  ;;  %v542_v52 = vld [vmem:[%s6657_s16 + $0x660] sm:$0xff]  ;;  %v551_v46 = vld [vmem:[%s6657_s16 + $0x6a8] sm:$0xff] }
 0x127   : > { %9361 = vst [vmem:[#allocation83_spill] sm:$0xff] %v7672_v56  ;;  %v2459_v24 = vpop.f32.mrf.mxu1  ;;  %v7684_v51 = vadd.f32 %v2457_v12, %v2265_v10  ;;  %v2267_v45 = vadd.f32 %v2266_v19, %v7602_v8  ;;  %v7689_v56 = vpack.c.bf16 %v528_v48, %v520_v50  ;;  %v534_v48 = vld [vmem:[%s6657_s16 + $0x620] sm:$0xff] }
 0x128   : > { %v2268_v47 = vpop.f32.mrf.mxu0  ;;  %9363 = vst [vmem:[#allocation85_spill] sm:$0xff] %v7687_v22  ;;  %9367 = vst [vmem:[#allocation89_spill] sm:$0xff] %v7696_v25 }
 0x129   : > { %9362 = vst [vmem:[#allocation84_spill] sm:$0xff] %v7684_v51  ;;  %v2461_v55 = vpop.f32.mrf.mxu1  ;;  %9364 = vst [vmem:[#allocation86_spill] sm:$0xff] %v7689_v56  ;;  %v7691_v7 = vadd.f32 %v2459_v24, %v2267_v45  ;;  %v2269_v34 = vadd.f32 %v2268_v47, %v7596_v43 }
 0x12a   : > { %v2270_v12 = vpop.f32.mrf.mxu0 }
 0x12b   : > { %9365 = vst [vmem:[#allocation87_spill] sm:$0xff] %v7691_v7  ;;  %v2463_v10 = vpop.f32.mrf.mxu1  ;;  %v7698_v19 = vadd.f32 %v2461_v55, %v2269_v34  ;;  %v2271_v5 = vadd.f32 %v2270_v12, %v7602_v8  ;;  %v536_v34 = vld [vmem:[%s6657_s16 + $0x630] sm:$0xff]  ;;  %v559_v55 = vld [vmem:[%s6657_s16 + $0x6e8] sm:$0xff]  ;;  %v553_v12 = vld [vmem:[%s6657_s16 + $0x6b8] sm:$0xff] }
 0x12c   : > { %v2274_v11 = vpop.f32.mrf.mxu0  ;;  %2739 = vmatmul.mubr.bf16.gmra.mxu0 %v7687_v22  ;;  %v561_v22 = vld [vmem:[%s6657_s16 + $0x6f8] sm:$0xff]  ;;  %v7727_v7 = vpack.c.bf16 %v559_v55, %v551_v46  ;;  %v560_v55 = vld [vmem:[%s6657_s16 + $0x6f0] sm:$0xff] }
 0x12d   : > { %9368 = vst [vmem:[#allocation90_spill] sm:$0xff] %v7698_v19  ;;  %v2467_v50 = vpop.f32.mrf.mxu1  ;;  %2932 = vmatmul.mubr.bf16.gmra.mxu1 %v7689_v56  ;;  %v7705_v44 = vadd.f32 %v2463_v10, %v2271_v5  ;;  %v2275_v24 = vadd.f32 %v2274_v11, %v7596_v43  ;;  %2748 = vmatprep.mubr.bf16.mxu0 %v7694_v6 }
 0x12e   : > { %5473 = vmatprep.mubr.msk.bf16.mxu1 %vm2148_vm1, %v7696_v25  ;;  %v2276_v45 = vpop.f32.mrf.mxu0  ;;  %v7720_v6 = vpack.c.bf16 %v542_v52, %v534_v48  ;;  %9374 = vst [vmem:[#allocation96_spill] sm:$0xff] %v7727_v7  ;;  %v7729_v51 = vpack.c.bf16 %v561_v22, %v553_v12  ;;  %v558_v22 = vld [vmem:[%s6657_s16 + $0x6e0] sm:$0xff]  ;;  %v567_v12 = vld [vmem:[%s6657_s16 + $0x728] sm:$0xff] }
 0x12f   : > { %9369 = vst [vmem:[#allocation91_spill] sm:$0xff] %v7705_v44  ;;  %v2469_v47 = vpop.f32.mrf.mxu1  ;;  %v7717_v56 = vadd.f32 %v2467_v50, %v2275_v24  ;;  %v2277_v10 = vadd.f32 %v2276_v45, %v7602_v8  ;;  %v7722_v44 = vpack.c.bf16 %v544_v23, %v536_v34  ;;  %v550_v23 = vld [vmem:[%s6657_s16 + $0x6a0] sm:$0xff] }
 0x130   : > { %v2278_v5 = vpop.f32.mrf.mxu0  ;;  %9371 = vst [vmem:[#allocation93_spill] sm:$0xff] %v7720_v6  ;;  %9375 = vst [vmem:[#allocation97_spill] sm:$0xff] %v7729_v51 }
 0x131   : > { %9370 = vst [vmem:[#allocation92_spill] sm:$0xff] %v7717_v56  ;;  %v2471_v11 = vpop.f32.mrf.mxu1  ;;  %9372 = vst [vmem:[#allocation94_spill] sm:$0xff] %v7722_v44  ;;  %v7724_v25 = vadd.f32 %v2469_v47, %v2277_v10  ;;  %v2279_v19 = vadd.f32 %v2278_v5, %v7596_v43 }
 0x132   : > { %v2280_v50 = vpop.f32.mrf.mxu0 }
 0x133   : > { %9373 = vst [vmem:[#allocation95_spill] sm:$0xff] %v7724_v25  ;;  %v2473_v24 = vpop.f32.mrf.mxu1  ;;  %v7731_v45 = vadd.f32 %v2471_v11, %v2279_v19  ;;  %v2281_v48 = vadd.f32 %v2280_v50, %v7602_v8  ;;  %v552_v19 = vld [vmem:[%s6657_s16 + $0x6b0] sm:$0xff]  ;;  %v575_v11 = vld [vmem:[%s6657_s16 + $0x768] sm:$0xff]  ;;  %v569_v50 = vld [vmem:[%s6657_s16 + $0x738] sm:$0xff] }
 0x134   : > { %v2284_v52 = vpop.f32.mrf.mxu0  ;;  %2749 = vmatmul.mubr.bf16.gmra.mxu0 %v7720_v6  ;;  %v577_v6 = vld [vmem:[%s6657_s16 + $0x778] sm:$0xff]  ;;  %v7760_v25 = vpack.c.bf16 %v575_v11, %v567_v12  ;;  %v576_v11 = vld [vmem:[%s6657_s16 + $0x770] sm:$0xff] }
 0x135   : > { %9376 = vst [vmem:[#allocation98_spill] sm:$0xff] %v7731_v45  ;;  %v2477_v34 = vpop.f32.mrf.mxu1  ;;  %2942 = vmatmul.mubr.bf16.gmra.mxu1 %v7722_v44  ;;  %v7738_v46 = vadd.f32 %v2473_v24, %v2281_v48  ;;  %v2285_v47 = vadd.f32 %v2284_v52, %v7596_v43  ;;  %2758 = vmatprep.mubr.bf16.mxu0 %v7727_v7 }
 0x136   : > { %5474 = vmatprep.mubr.msk.bf16.mxu1 %vm2148_vm1, %v7729_v51  ;;  %v2286_v10 = vpop.f32.mrf.mxu0  ;;  %v7753_v7 = vpack.c.bf16 %v558_v22, %v550_v23  ;;  %9382 = vst [vmem:[#allocation104_spill] sm:$0xff] %v7760_v25  ;;  %v7762_v56 = vpack.c.bf16 %v577_v6, %v569_v50  ;;  %v574_v6 = vld [vmem:[%s6657_s16 + $0x760] sm:$0xff]  ;;  %v583_v50 = vld [vmem:[%s6657_s16 + $0x7a8] sm:$0xff] }
 0x137   : > { %9377 = vst [vmem:[#allocation99_spill] sm:$0xff] %v7738_v46  ;;  %v2479_v5 = vpop.f32.mrf.mxu1  ;;  %v7750_v44 = vadd.f32 %v2477_v34, %v2285_v47  ;;  %v2287_v24 = vadd.f32 %v2286_v10, %v7602_v8  ;;  %v7755_v46 = vpack.c.bf16 %v560_v55, %v552_v19  ;;  %v566_v55 = vld [vmem:[%s6657_s16 + $0x720] sm:$0xff] }
 0x138   : > { %v2288_v48 = vpop.f32.mrf.mxu0  ;;  %9379 = vst [vmem:[#allocation101_spill] sm:$0xff] %v7753_v7  ;;  %9383 = vst [vmem:[#allocation105_spill] sm:$0xff] %v7762_v56 }
 0x139   : > { %9378 = vst [vmem:[#allocation100_spill] sm:$0xff] %v7750_v44  ;;  %v2481_v52 = vpop.f32.mrf.mxu1  ;;  %9380 = vst [vmem:[#allocation102_spill] sm:$0xff] %v7755_v46  ;;  %v7757_v51 = vadd.f32 %v2479_v5, %v2287_v24  ;;  %v2289_v45 = vadd.f32 %v2288_v48, %v7596_v43 }
 0x13a   : > { %v2290_v34 = vpop.f32.mrf.mxu0 }
 0x13b   : > { %9381 = vst [vmem:[#allocation103_spill] sm:$0xff] %v7757_v51  ;;  %v2483_v47 = vpop.f32.mrf.mxu1  ;;  %v7764_v10 = vadd.f32 %v2481_v52, %v2289_v45  ;;  %v2291_v23 = vadd.f32 %v2290_v34, %v7602_v8  ;;  %v568_v45 = vld [vmem:[%s6657_s16 + $0x730] sm:$0xff]  ;;  %v591_v52 = vld [vmem:[%s6657_s16 + $0x7e8] sm:$0xff]  ;;  %v585_v34 = vld [vmem:[%s6657_s16 + $0x7b8] sm:$0xff] }
 0x13c   : > { %v2294_v22 = vpop.f32.mrf.mxu0  ;;  %2759 = vmatmul.mubr.bf16.gmra.mxu0 %v7753_v7  ;;  %v593_v7 = vld [vmem:[%s6657_s16 + $0x7f8] sm:$0xff]  ;;  %v7793_v51 = vpack.c.bf16 %v591_v52, %v583_v50  ;;  %v592_v52 = vld [vmem:[%s6657_s16 + $0x7f0] sm:$0xff] }
 0x13d   : > { %9384 = vst [vmem:[#allocation106_spill] sm:$0xff] %v7764_v10  ;;  %v2487_v19 = vpop.f32.mrf.mxu1  ;;  %2952 = vmatmul.mubr.bf16.gmra.mxu1 %v7755_v46  ;;  %v7771_v12 = vadd.f32 %v2483_v47, %v2291_v23  ;;  %v2295_v5 = vadd.f32 %v2294_v22, %v7596_v43  ;;  %2768 = vmatprep.mubr.bf16.mxu0 %v7760_v25 }
 0x13e   : > { %5475 = vmatprep.mubr.msk.bf16.mxu1 %vm2148_vm1, %v7762_v56  ;;  %v2296_v24 = vpop.f32.mrf.mxu0  ;;  %v7788_v25 = vpack.c.bf16 %v576_v11, %v568_v45  ;;  %9388 = vst [vmem:[#allocation110_spill] sm:$0xff] %v7793_v51  ;;  %v7795_v44 = vpack.c.bf16 %v593_v7, %v585_v34  ;;  %v582_v11 = vld [vmem:[%s6657_s16 + $0x7a0] sm:$0xff] }
 0x13f   : > { %9385 = vst [vmem:[#allocation107_spill] sm:$0xff] %v7771_v12  ;;  %v2489_v48 = vpop.f32.mrf.mxu1  ;;  %v7783_v46 = vadd.f32 %v2487_v19, %v2295_v5  ;;  %v2297_v47 = vadd.f32 %v2296_v24, %v7602_v8  ;;  %v7786_v12 = vpack.c.bf16 %v574_v6, %v566_v55  ;;  %v590_v7 = vld [vmem:[%s6657_s16 + $0x7e0] sm:$0xff] }
 0x140   : > { %v2298_v23 = vpop.f32.mrf.mxu0  ;;  %9387 = vst [vmem:[#allocation109_spill] sm:$0xff] %v7788_v25  ;;  %9389 = vst [vmem:[#allocation111_spill] sm:$0xff] %v7795_v44 }
 0x141   : > { %v2491_v22 = vpop.f32.mrf.mxu1  ;;  %9386 = vst [vmem:[#allocation108_spill] sm:$0xff] %v7786_v12  ;;  %v7790_v56 = vadd.f32 %v2489_v48, %v2297_v47  ;;  %v2299_v10 = vadd.f32 %v2298_v23, %v7596_v43 }
 0x142   : > { %v2300_v19 = vpop.f32.mrf.mxu0 }
 0x143   : > { %v2493_v5 = vpop.f32.mrf.mxu1  ;;  %v7797_v24 = vadd.f32 %v2491_v22, %v2299_v10  ;;  %v2301_v55 = vadd.f32 %v2300_v19, %v7602_v8  ;;  %v584_v10 = vld [vmem:[%s6657_s16 + $0x7b0] sm:$0xff] }
 0x144   : > { %v2304_v6 = vpop.f32.mrf.mxu0  ;;  %2769 = vmatmul.mubr.bf16.gmra.mxu0 %v7786_v12 }
 0x145   : > { %9390 = vst [vmem:[#allocation112_spill] sm:$0xff] %v7797_v24  ;;  %v2497_v45 = vpop.f32.mrf.mxu1  ;;  %2962 = vmatmul.mubr.bf16.gmra.mxu1 %v7788_v25  ;;  %v7803_v48 = vadd.f32 %v2493_v5, %v2301_v55  ;;  %v2305_v50 = vadd.f32 %v2304_v6, %v7596_v43  ;;  %2778 = vmatprep.mubr.bf16.mxu0 %v7793_v51 }
 0x146   : > { %5476 = vmatprep.mubr.msk.bf16.mxu1 %vm2148_vm1, %v7795_v44  ;;  %v2306_v34 = vpop.f32.mrf.mxu0  ;;  %v7815_v5 = vpack.c.bf16 %v590_v7, %v582_v11  ;;  %v7817_v55 = vpack.c.bf16 %v592_v52, %v584_v10 }
 0x147   : > { %9391 = vst [vmem:[#allocation113_spill] sm:$0xff] %v7803_v48  ;;  %v2499_v47 = vpop.f32.mrf.mxu1  ;;  %v7812_v23 = vadd.f32 %v2497_v45, %v2305_v50  ;;  %v2307_v22 = vadd.f32 %v2306_v34, %v7602_v8 }
 0x148   : > { %v2308_v19 = vpop.f32.mrf.mxu0  ;;  %9392 = vst [vmem:[#allocation114_spill] sm:$0xff] %v7815_v5  ;;  %9393 = vst [vmem:[#allocation115_spill] sm:$0xff] %v7817_v55 }
 0x149   : > { %v2501_v25 = vpop.f32.mrf.mxu1  ;;  %v7819_v6 = vadd.f32 %v2499_v47, %v2307_v22  ;;  %v2309_v51 = vadd.f32 %v2308_v19, %v7596_v43 }
 0x14a   : > { %v2310_v44 = vpop.f32.mrf.mxu0 }
 0x14b   : > { %v2503_v12 = vpop.f32.mrf.mxu1  ;;  %v7822_v48 = vadd.f32 %v2501_v25, %v2309_v51  ;;  %v2311_v24 = vadd.f32 %v2310_v44, %v7602_v8 }
 0x14c   : > { %v2314_v45 = vpop.f32.mrf.mxu0  ;;  %2779 = vmatmul.mubr.bf16.gmra.mxu0 %v7815_v5 }
 0x14d   : > { %v2507_v50 = vpop.f32.mrf.mxu1  ;;  %2972 = vmatmul.mubr.bf16.gmra.mxu1 %v7817_v55  ;;  %v7827_v11 = vadd.f32 %v2503_v12, %v2311_v24  ;;  %v2315_v7 = vadd.f32 %v2314_v45, %v7596_v43  ;;  %3014 = vmatprep.mubr.bf16.mxu0 %v6678_v53  ;;  %v6233_v12 = vld [vmem:[%s9180_s1 + $0x4e8] ss:$16 sps:$4 sm:$0xff]  }
 0x14e   : > { %3207 = vmatprep.mubr.bf16.mxu1 %v6680_v54  ;;  %v2316_v10 = vpop.f32.mrf.mxu0  ;;  %v6236_v53 = vld [vmem:[%s9180_s1 + $0x6e8] ss:$16 sps:$4 sm:$0xff]  }
 0x14f   : > { %v2509_v52 = vpop.f32.mrf.mxu1  ;;  %v7832_v51 = vadd.f32 %v2507_v50, %v2315_v7  ;;  %v2317_v25 = vadd.f32 %v2316_v10, %v7602_v8  ;;  %v6241_v50 = vld [vmem:[%s9180_s1 + $0x4cc] ss:$16 sps:$4 sm:$0xff]  }
 0x150   : > { %v2318_v44 = vpop.f32.mrf.mxu0  ;;  %v6244_v7 = vld [vmem:[%s9180_s1 + $0x6cc] ss:$16 sps:$4 sm:$0xff]  }
 0x151   : > { %v2511_v34 = vpop.f32.mrf.mxu1  ;;  %v7835_v47 = vadd.f32 %v2509_v52, %v2317_v25  ;;  %v2319_v22 = vadd.f32 %v2318_v44, %v7596_v43 }
 0x152   : > { %v2320_v54 = vpop.f32.mrf.mxu0 }
 0x153   : > { %v2513_v24 = vpop.f32.mrf.mxu1  ;;  %v7844_v19 = vadd.f32 %v2511_v34, %v2319_v22  ;;  %v2321_v45 = vadd.f32 %v2320_v54, %v7602_v8  ;;  %v6239_v34 = vld [vmem:[%s9180_s1 + $0x4c8] ss:$16 sps:$4 sm:$0xff]  }
 0x154   : > { %v2324_v10 = vpop.f32.mrf.mxu0  ;;  %3015 = vmatmul.mubr.bf16.vlgmr.msra.gmra.mxu0 %v6743_v16  ;;  %v6242_v22 = vld [vmem:[%s9180_s1 + $0x6c8] ss:$16 sps:$4 sm:$0xff]   ;;  %v6247_v16 = vld [vmem:[%s9180_s1 + $0x4ac] ss:$16 sps:$4 sm:$0xff]  }
 0x155   : > { %v2517_v52 = vpop.f32.mrf.mxu1  ;;  %3208 = vmatmul.mubr.bf16.vlgmr.msra.gmra.mxu1 %v6745_v17  ;;  %v7855_v25 = vadd.f32 %v2513_v24, %v2321_v45  ;;  %v2325_v44 = vadd.f32 %v2324_v10, %v7596_v43  ;;  %3369 = vmatpush1.bf16.msra.mxu0 %v6233_v12  ;;  %v6253_v17 = vld [vmem:[%s9180_s1 + $0x6ac] ss:$16 sps:$4 sm:$0xff]  }
 0x156   : > { %3562 = vmatpush1.bf16.msra.mxu1 %v6236_v53  ;;  %v2326_v54 = vpop.f32.mrf.mxu0  ;;  %3024 = vmatprep.mubr.bf16.mxu0 %v6753_v20 }
 0x157   : > { %9394 = vst [vmem:[#allocation116_spill] sm:$0xff] %v7855_v25  ;;  %v2519_v55 = vpop.f32.mrf.mxu1  ;;  %3217 = vmatprep.mubr.bf16.mxu1 %v6755_v21  ;;  %v7872_v12 = vadd.f32 %v2517_v52, %v2325_v44  ;;  %v2327_v53 = vadd.f32 %v2326_v54, %v7602_v8  ;;  %3370 = vmatprep.subr.bf16.mxu0 %v6241_v50  ;;  %v6245_v25 = vld [vmem:[%s9180_s1 + $0x4a8] ss:$16 sps:$4 sm:$0xff]   ;;  %v6250_v52 = vld [vmem:[%s9180_s1 + $0x48c] ss:$16 sps:$4 sm:$0xff]  }
 0x158   : > { %3563 = vmatprep.subr.bf16.mxu1 %v6244_v7  ;;  %v2328_v24 = vpop.f32.mrf.mxu0  ;;  %v6251_v50 = vld [vmem:[%s9180_s1 + $0x6a8] ss:$16 sps:$4 sm:$0xff]   ;;  %v6259_v44 = vld [vmem:[%s9180_s1 + $0x68c] ss:$16 sps:$4 sm:$0xff]  }
 0x159   : > { %v2521_v45 = vpop.f32.mrf.mxu1  ;;  %v7875_v10 = vadd.f32 %v2519_v55, %v2327_v53  ;;  %v2329_v20 = vadd.f32 %v2328_v24, %v7596_v43  ;;  %3371 = vmatpush1.bf16.msra.mxu0 %v6239_v34  ;;  %v6248_v24 = vld [vmem:[%s9180_s1 + $0x488] ss:$16 sps:$4 sm:$0xff]  }
 0x15a   : > { %3564 = vmatpush1.bf16.msra.mxu1 %v6242_v22  ;;  %v2330_v21 = vpop.f32.mrf.mxu0  ;;  %3372 = vmatprep.subr.bf16.mxu0 %v6247_v16 }
 0x15b   : > { %v2523_v5 = vpop.f32.mrf.mxu1  ;;  %3565 = vmatprep.subr.bf16.mxu1 %v6253_v17  ;;  %v7884_v7 = vadd.f32 %v2521_v45, %v2329_v20  ;;  %v2331_v55 = vadd.f32 %v2330_v21, %v7602_v8 }
 0x15c   : > { %v2334_v34 = vpop.f32.mrf.mxu0  ;;  %3025 = vmatmul.mubr.bf16.gmra.mxu0 %v6787_v36  ;;  %v6257_v36 = vld [vmem:[%s9180_s1 + $0x688] ss:$16 sps:$4 sm:$0xff]  }
 0x15d   : > { %v2527_v22 = vpop.f32.mrf.mxu1  ;;  %3218 = vmatmul.mubr.bf16.gmra.mxu1 %v6789_v37  ;;  %v7895_v54 = vadd.f32 %v2523_v5, %v2331_v55  ;;  %v2335_v16 = vadd.f32 %v2334_v34, %v7596_v43  ;;  %3034 = vmatprep.mubr.bf16.mxu0 %v6791_v38  ;;  %v6256_v38 = vld [vmem:[%s9180_s1 + $0x46c] ss:$16 sps:$4 sm:$0xff]  }
 0x15e   : > { %3227 = vmatprep.mubr.bf16.mxu1 %v6793_v39  ;;  %v2336_v17 = vpop.f32.mrf.mxu0  ;;  %3373 = vmatpush1.bf16.msra.mxu0 %v6245_v25  ;;  %v6268_v39 = vld [vmem:[%s9180_s1 + $0x66c] ss:$16 sps:$4 sm:$0xff]  }
 0x15f   : > { %v2529_v53 = vpop.f32.mrf.mxu1  ;;  %3566 = vmatpush1.bf16.msra.mxu1 %v6251_v50  ;;  %v7906_v37 = vadd.f32 %v2527_v22, %v2335_v16  ;;  %v2337_v5 = vadd.f32 %v2336_v17, %v7602_v8  ;;  %3374 = vmatprep.subr.bf16.mxu0 %v6250_v52  ;;  %v6254_v52 = vld [vmem:[%s9180_s1 + $0x468] ss:$16 sps:$4 sm:$0xff]   ;;  %v6262_v16 = vld [vmem:[%s9180_s1 + $0x44c] ss:$16 sps:$4 sm:$0xff]  }
 0x160   : > { %3567 = vmatprep.subr.bf16.mxu1 %v6259_v44  ;;  %v2338_v25 = vpop.f32.mrf.mxu0  ;;  %v6266_v44 = vld [vmem:[%s9180_s1 + $0x668] ss:$16 sps:$4 sm:$0xff]   ;;  %v6274_v17 = vld [vmem:[%s9180_s1 + $0x64c] ss:$16 sps:$4 sm:$0xff]  }
 0x161   : > { %v2531_v45 = vpop.f32.mrf.mxu1  ;;  %v7915_v20 = vadd.f32 %v2529_v53, %v2337_v5  ;;  %v2339_v21 = vadd.f32 %v2338_v25, %v7596_v43  ;;  %v6260_v25 = vld [vmem:[%s9180_s1 + $0x448] ss:$16 sps:$4 sm:$0xff]  }
 0x162   : > { %v2340_v50 = vpop.f32.mrf.mxu0  ;;  %3375 = vmatpush1.bf16.msra.mxu0 %v6248_v24 }
 0x163   : > { %v2533_v55 = vpop.f32.mrf.mxu1  ;;  %3568 = vmatpush1.bf16.msra.mxu1 %v6257_v36  ;;  %v7924_v34 = vadd.f32 %v2531_v45, %v2339_v21  ;;  %v2341_v22 = vadd.f32 %v2340_v50, %v7602_v8  ;;  %3376 = vmatprep.subr.bf16.mxu0 %v6256_v38 }
 0x164   : > { %3569 = vmatprep.subr.bf16.mxu1 %v6268_v39  ;;  %v2344_v53 = vpop.f32.mrf.mxu0  ;;  %3035 = vmatmul.mubr.bf16.gmra.mxu0 %v6831_v58  ;;  %v6272_v58 = vld [vmem:[%s9180_s1 + $0x648] ss:$16 sps:$4 sm:$0xff]  }
 0x165   : > { %v2537_v24 = vpop.f32.mrf.mxu1  ;;  %3228 = vmatmul.mubr.bf16.gmra.mxu1 %v6833_v59  ;;  %v7935_v36 = vadd.f32 %v2533_v55, %v2341_v22  ;;  %v2345_v5 = vadd.f32 %v2344_v53, %v7596_v43  ;;  %3044 = vmatprep.mubr.bf16.mxu0 %v6835_v60  ;;  %v6265_v60 = vld [vmem:[%s9180_s1 + $0x42c] ss:$16 sps:$4 sm:$0xff]  }
 0x166   : > { %3237 = vmatprep.mubr.bf16.mxu1 %v6837_v61  ;;  %v2346_v38 = vpop.f32.mrf.mxu0  ;;  %3377 = vmatpush1.bf16.msra.mxu0 %v6254_v52  ;;  %v6283_v61 = vld [vmem:[%s9180_s1 + $0x62c] ss:$16 sps:$4 sm:$0xff]  }
 0x167   : > { %v2539_v39 = vpop.f32.mrf.mxu1  ;;  %3570 = vmatpush1.bf16.msra.mxu1 %v6266_v44  ;;  %v7946_v59 = vadd.f32 %v2537_v24, %v2345_v5  ;;  %v2347_v45 = vadd.f32 %v2346_v38, %v7602_v8  ;;  %3378 = vmatprep.subr.bf16.mxu0 %v6262_v16  ;;  %v6263_v16 = vld [vmem:[%s9180_s1 + $0x428] ss:$16 sps:$4 sm:$0xff]   ;;  %v6271_v5 = vld [vmem:[%s9180_s1 + $0x40c] ss:$16 sps:$4 sm:$0xff]  }
 0x168   : > { %3571 = vmatprep.subr.bf16.mxu1 %v6274_v17  ;;  %v2348_v21 = vpop.f32.mrf.mxu0  ;;  %v6281_v17 = vld [vmem:[%s9180_s1 + $0x628] ss:$16 sps:$4 sm:$0xff]   ;;  %v6289_v38 = vld [vmem:[%s9180_s1 + $0x60c] ss:$16 sps:$4 sm:$0xff]  }
 0x169   : > { %v2541_v50 = vpop.f32.mrf.mxu1  ;;  %v7955_v55 = vadd.f32 %v2539_v39, %v2347_v45  ;;  %v2349_v52 = vadd.f32 %v2348_v21, %v7596_v43  ;;  %v955_v39 = vld [vmem:[%s9180_s1 + $0x748] sm:$0xff] }
 0x16a   : > { %v2350_v44 = vpop.f32.mrf.mxu0  ;;  %3379 = vmatpush1.bf16.msra.mxu0 %v6260_v25 }
 0x16b   : > { %v2543_v22 = vpop.f32.mrf.mxu1  ;;  %3572 = vmatpush1.bf16.msra.mxu1 %v6272_v58  ;;  %v7964_v53 = vadd.f32 %v2541_v50, %v2349_v52  ;;  %v2351_v24 = vadd.f32 %v2350_v44, %v7602_v8  ;;  %3380 = vmatprep.subr.bf16.mxu0 %v6265_v60  ;;  %v6269_v50 = vld [vmem:[%s9180_s1 + $0x408] ss:$16 sps:$4 sm:$0xff]  }
 0x16c   : > { %3573 = vmatprep.subr.bf16.mxu1 %v6283_v61  ;;  %v2354_v25 = vpop.f32.mrf.mxu0  ;;  %3045 = vmatmul.mubr.bf16.gmra.mxu0 %v6872_v13  ;;  %v6287_v13 = vld [vmem:[%s9180_s1 + $0x608] ss:$16 sps:$4 sm:$0xff]  }
 0x16d   : > { %v2547_v58 = vpop.f32.mrf.mxu1  ;;  %3238 = vmatmul.mubr.bf16.gmra.mxu1 %v6874_v14  ;;  %v7978_v45 = vadd.f32 %v2543_v22, %v2351_v24  ;;  %v2355_v60 = vadd.f32 %v2354_v25, %v7596_v43  ;;  %3054 = vmatprep.mubr.bf16.mxu0 %v6876_v15  ;;  %v5459_v14 = vcombine.high %v955_v39, %v955_v39  ;;  %v6277_v15 = vld [vmem:[%s9180_s1 + $0x5ec] ss:$16 sps:$4 sm:$0xff]  }
 0x16e   : > { %3247 = vmatprep.mubr.bf16.mxu1 %v6878_v18  ;;  %v2356_v61 = vpop.f32.mrf.mxu0  ;;  %3381 = vmatpush1.bf16.msra.mxu0 %v6263_v16  ;;  %v5458_v18 = vcombine.low %v955_v39, %v955_v39 }
 0x16f   : > { %9395 = vst [vmem:[#allocation117_spill] sm:$0xff] %v7978_v45  ;;  %v2549_v21 = vpop.f32.mrf.mxu1  ;;  %3574 = vmatpush1.bf16.msra.mxu1 %v6281_v17  ;;  %v7989_v52 = vadd.f32 %v2547_v58, %v2355_v60  ;;  %v2357_v44 = vadd.f32 %v2356_v61, %v7602_v8  ;;  %3382 = vmatprep.subr.bf16.mxu0 %v6271_v5  ;;  %v6275_v58 = vld [vmem:[%s9180_s1 + $0x5e8] ss:$16 sps:$4 sm:$0xff]   ;;  %v6303_v61 = vld [vmem:[%s9180_s1 + $0x72c] ss:$16 sps:$4 sm:$0xff]  }
 0x170   : > { %3575 = vmatprep.subr.bf16.mxu1 %v6289_v38  ;;  %v2358_v22 = vpop.f32.mrf.mxu0  ;;  %v6280_v38 = vld [vmem:[%s9180_s1 + $0x5cc] ss:$16 sps:$4 sm:$0xff]   ;;  %v2205_v39 = vsel %vm2197_vm0, %v5458_v18, 0  ;;  %v6278_v18 = vld [vmem:[%s9180_s1 + $0x5c8] ss:$16 sps:$4 sm:$0xff]  }
 0x171   : > { %v2551_v16 = vpop.f32.mrf.mxu1  ;;  %v7995_v24 = vadd.f32 %v2549_v21, %v2357_v44  ;;  %v2359_v17 = vadd.f32 %v2358_v22, %v7596_v43 }
 0x172   : > { %v2360_v25 = vpop.f32.mrf.mxu0  ;;  %3383 = vmatpush1.bf16.msra.mxu0 %v6269_v50 }
 0x173   : > { %v2553_v45 = vpop.f32.mrf.mxu1  ;;  %3576 = vmatpush1.bf16.msra.mxu1 %v6287_v13  ;;  %v8001_v5 = vadd.f32 %v2551_v16, %v2359_v17  ;;  %v2361_v60 = vadd.f32 %v2360_v25, %v7602_v8  ;;  %3384 = vmatprep.subr.bf16.mxu0 %v6277_v15 }
 0x174   : > { %5477 = vmatprep.subr.msk.bf16.mxu1 %vm2197_vm0, %v5459_v14  ;;  %v2364_v21 = vpop.f32.mrf.mxu0  ;;  %3055 = vmatmul.mubr.bf16.gmra.mxu0 %v6910_v35  ;;  %v6301_v35 = vld [vmem:[%s9180_s1 + $0x728] ss:$16 sps:$4 sm:$0xff]  }
 0x175   : > { %v2557_v50 = vpop.f32.mrf.mxu1  ;;  %3248 = vmatmul.mubr.bf16.gmra.mxu1 %v6912_v40  ;;  %v8014_v13 = vadd.f32 %v2553_v45, %v2361_v60  ;;  %v2365_v44 = vadd.f32 %v2364_v21, %v7596_v43  ;;  %3064 = vmatprep.mubr.bf16.mxu0 %v6914_v41  ;;  %v6286_v41 = vld [vmem:[%s9180_s1 + $0x5ac] ss:$16 sps:$4 sm:$0xff]  }
 0x176   : > { %3257 = vmatprep.mubr.bf16.mxu1 %v6916_v42  ;;  %v2366_v14 = vpop.f32.mrf.mxu0  ;;  %3385 = vmatpush2.bf16.msra.mxu0 %v6275_v58  ;;  %v6309_v42 = vld [vmem:[%s9180_s1 + $0x70c] ss:$16 sps:$4 sm:$0xff]  }
 0x177   : > { %v2559_v15 = vpop.f32.mrf.mxu1  ;;  %3588 = vmatpush2.bf16.msra.mxu1 %v2205_v39  ;;  %v8025_v40 = vadd.f32 %v2557_v50, %v2365_v44  ;;  %v2367_v45 = vadd.f32 %v2366_v14, %v7602_v8  ;;  %3386 = vmatprep.subr.bf16.mxu0 %v6280_v38  ;;  %v6284_v38 = vld [vmem:[%s9180_s1 + $0x5a8] ss:$16 sps:$4 sm:$0xff]   ;;  %v6292_v50 = vld [vmem:[%s9180_s1 + $0x58c] ss:$16 sps:$4 sm:$0xff]  }
 0x178   : > { %3589 = vmatprep.subr.bf16.mxu1 %v6303_v61  ;;  %v2368_v22 = vpop.f32.mrf.mxu0  ;;  %v6307_v39 = vld [vmem:[%s9180_s1 + $0x708] ss:$16 sps:$4 sm:$0xff]  }
 0x179   : > { %v2561_v16 = vpop.f32.mrf.mxu1  ;;  %v8034_v17 = vadd.f32 %v2559_v15, %v2367_v45  ;;  %v2369_v25 = vadd.f32 %v2368_v22, %v7596_v43 }
 0x17a   : > { %v2370_v58 = vpop.f32.mrf.mxu0  ;;  %3387 = vmatpush2.bf16.msra.mxu0 %v6278_v18 }
 0x17b   : > { %v2563_v60 = vpop.f32.mrf.mxu1  ;;  %3590 = vmatpush2.bf16.msra.mxu1 %v6301_v35  ;;  %v8043_v61 = vadd.f32 %v2561_v16, %v2369_v25  ;;  %v2371_v21 = vadd.f32 %v2370_v58, %v7602_v8  ;;  %3388 = vmatprep.subr.bf16.mxu0 %v6286_v41  ;;  %v6290_v41 = vld [vmem:[%s9180_s1 + $0x588] ss:$16 sps:$4 sm:$0xff]  }
 0x17c   : > { %3591 = vmatprep.subr.bf16.mxu1 %v6309_v42  ;;  %v2374_v44 = vpop.f32.mrf.mxu0  ;;  %3065 = vmatmul.mubr.bf16.gmra.mxu0 %v6948_v63 }
 0x17d   : > { %v2567_v14 = vpop.f32.mrf.mxu1  ;;  %3258 = vmatmul.mubr.bf16.gmra.mxu1 %v6950_v0  ;;  %v8051_v15 = vadd.f32 %v2563_v60, %v2371_v21  ;;  %v2375_v18 = vadd.f32 %v2374_v44, %v7596_v43  ;;  %3074 = vmatprep.mubr.bf16.mxu0 %v6952_v1  ;;  %v6295_v0 = vld [vmem:[%s9180_s1 + $0x56c] ss:$16 sps:$4 sm:$0xff]   ;;  %v6293_v60 = vld [vmem:[%s9180_s1 + $0x568] ss:$16 sps:$4 sm:$0xff]  }
 0x17e   : > { %3267 = vmatprep.mubr.bf16.mxu1 %v6954_v2  ;;  %v2376_v35 = vpop.f32.mrf.mxu0  ;;  %3389 = vmatpush2.bf16.msra.mxu0 %v6284_v38  ;;  %v6300_v21 = vld [vmem:[%s9180_s1 + $0x54c] ss:$16 sps:$4 sm:$0xff]  }
 0x17f   : > { %v2569_v45 = vpop.f32.mrf.mxu1  ;;  %3592 = vmatpush2.bf16.msra.mxu1 %v6307_v39  ;;  %v8059_v42 = vadd.f32 %v2567_v14, %v2375_v18  ;;  %v2377_v63 = vadd.f32 %v2376_v35, %v7602_v8  ;;  %3390 = vmatprep.subr.bf16.mxu0 %v6292_v50 }
 0x180   : > { %v2378_v1 = vpop.f32.mrf.mxu0 }
 0x181   : > { %v2571_v22 = vpop.f32.mrf.mxu1  ;;  %v8065_v2 = vadd.f32 %v2569_v45, %v2377_v63  ;;  %v2379_v16 = vadd.f32 %v2378_v1, %v7596_v43 }
 0x182   : > { %v2380_v25 = vpop.f32.mrf.mxu0  ;;  %3391 = vmatpush2.bf16.msra.mxu0 %v6290_v41  ;;  %v6298_v41 = vld [vmem:[%s9180_s1 + $0x548] ss:$16 sps:$4 sm:$0xff]  }
 0x183   : > { %v2573_v58 = vpop.f32.mrf.mxu1  ;;  %v8071_v38 = vadd.f32 %v2571_v22, %v2379_v16  ;;  %v2381_v39 = vadd.f32 %v2380_v25, %v7602_v8  ;;  %3392 = vmatprep.subr.bf16.mxu0 %v6295_v0  ;;  %v6304_v25 = vld [vmem:[%s9180_s1 + $0x528] ss:$16 sps:$4 sm:$0xff]  }
 0x184   : > { %v2384_v50 = vpop.f32.mrf.mxu0  ;;  %3075 = vmatmul.mubr.bf16.gmra.mxu0 %v6991_v29 }
 0x185   : > { %v2577_v44 = vpop.f32.mrf.mxu1  ;;  %3268 = vmatmul.mubr.bf16.gmra.mxu1 %v6993_v30  ;;  %v8079_v14 = vadd.f32 %v2573_v58, %v2381_v39  ;;  %v2385_v18 = vadd.f32 %v2384_v50, %v7596_v43  ;;  %3084 = vmatprep.mubr.bf16.mxu0 %v6995_v31  ;;  %v6306_v30 = vld [vmem:[%s9180_s1 + $0x52c] ss:$16 sps:$4 sm:$0xff]  }
 0x186   : > { %3277 = vmatprep.mubr.bf16.mxu1 %v6997_v32  ;;  %v2386_v35 = vpop.f32.mrf.mxu0  ;;  %3393 = vmatpush2.bf16.msra.mxu0 %v6293_v60  ;;  %v6312_v39 = vld [vmem:[%s9180_s1 + $0x50c] ss:$16 sps:$4 sm:$0xff]  }
 0x187   : > { %v2579_v45 = vpop.f32.mrf.mxu1  ;;  %v8087_v63 = vadd.f32 %v2577_v44, %v2385_v18  ;;  %v2387_v29 = vadd.f32 %v2386_v35, %v7602_v8  ;;  %3394 = vmatprep.subr.bf16.mxu0 %v6300_v21 }
 0x188   : > { %v2388_v0 = vpop.f32.mrf.mxu0 }
 0x189   : > { %v2581_v31 = vpop.f32.mrf.mxu1  ;;  %v8093_v1 = vadd.f32 %v2579_v45, %v2387_v29  ;;  %v2389_v32 = vadd.f32 %v2388_v0, %v7596_v43 }
 0x18a   : > { %v2390_v22 = vpop.f32.mrf.mxu0  ;;  %3395 = vmatpush2.bf16.msra.mxu0 %v6298_v41  ;;  %v6310_v41 = vld [vmem:[%s9180_s1 + $0x508] ss:$16 sps:$4 sm:$0xff]  }
 0x18b   : > { %v2583_v16 = vpop.f32.mrf.mxu1  ;;  %v8099_v58 = vadd.f32 %v2581_v31, %v2389_v32  ;;  %v2391_v60 = vadd.f32 %v2390_v22, %v7602_v8  ;;  %3396 = vmatprep.subr.bf16.mxu0 %v6306_v30 }
 0x18c   : > { %v2394_v21 = vpop.f32.mrf.mxu0  ;;  %3085 = vmatmul.mubr.bf16.gmra.mxu0 %v7029_v57 }
 0x18d   : > { %v2587_v50 = vpop.f32.mrf.mxu1  ;;  %3278 = vmatmul.mubr.bf16.gmra.mxu1 %v7031_v62  ;;  %v8107_v44 = vadd.f32 %v2583_v16, %v2391_v60  ;;  %v2395_v18 = vadd.f32 %v2394_v21, %v7596_v43  ;;  %3094 = vmatprep.mubr.bf16.mxu0 %v7033_v3 }
 0x18e   : > { %3287 = vmatprep.mubr.bf16.mxu1 %v7035_v4  ;;  %v2396_v35 = vpop.f32.mrf.mxu0  ;;  %3397 = vmatpush2.bf16.msra.mxu0 %v6304_v25 }
 0x18f   : > { %v2589_v45 = vpop.f32.mrf.mxu1  ;;  %v8115_v29 = vadd.f32 %v2587_v50, %v2395_v18  ;;  %v2397_v57 = vadd.f32 %v2396_v35, %v7602_v8  ;;  %3398 = vmatprep.subr.bf16.mxu0 %v6312_v39 }
 0x190   : > { %v2398_v62 = vpop.f32.mrf.mxu0 }
 0x191   : > { %v2591_v30 = vpop.f32.mrf.mxu1  ;;  %v8118_v0 = vadd.f32 %v2589_v45, %v2397_v57  ;;  %v2399_v3 = vadd.f32 %v2398_v62, %v7596_v43 }
 0x192   : > { %v2400_v31 = vpop.f32.mrf.mxu0  ;;  %3399 = vmatpush2.bf16.msra.mxu0 %v6310_v41  ;;  %v9398_v41 = vld [vmem:[#allocation74_spill] sm:$0xff] }
 0x193   : > { %v2593_v4 = vpop.f32.mrf.mxu1  ;;  %v8121_v32 = vadd.f32 %v2591_v30, %v2399_v3  ;;  %v2401_v22 = vadd.f32 %v2400_v31, %v7602_v8  ;;  %v9399_v30 = vld [vmem:[#allocation75_spill] sm:$0xff] }
 0x194   : > { %v2630_v16 = vpop.f32.mrf.mxu0  ;;  %3095 = vmatmul.mubr.bf16.gmra.mxu0 %v7064_v26 }
 0x195   : > { %9396 = vst [vmem:[#allocation118_spill] sm:$0xff] %v8121_v32  ;;  %v2823_v25 = vpop.f32.mrf.mxu1  ;;  %3288 = vmatmul.mubr.bf16.gmra.mxu1 %v7066_v27  ;;  %v8126_v60 = vadd.f32 %v2593_v4, %v2401_v22  ;;  %v2631_v39 = vadd.f32 %v2630_v16, %v7618_v9  ;;  %3104 = vmatprep.mubr.bf16.mxu0 %v7068_v28  ;;  %v9400_v28 = vld [vmem:[#allocation5_spill] sm:$0xff] }
 0x196   : > { %3297 = vmatprep.mubr.bf16.mxu1 %v7070_v33  ;;  %v2632_v43 = vpop.f32.mrf.mxu0  ;;  %v9401_v33 = vld [vmem:[#allocation6_spill] sm:$0xff] }
 0x197   : > { %9397 = vst [vmem:[#allocation119_spill] sm:$0xff] %v8126_v60  ;;  %v2825_v21 = vpop.f32.mrf.mxu1  ;;  %v2824_v50 = vadd.f32 %v2823_v25, %v2631_v39  ;;  %v2633_v18 = vadd.f32 %v2632_v43, %v7625_v49  ;;  %v9402_v49 = vld [vmem:[#allocation76_spill] sm:$0xff]  ;;  %v9403_v39 = vld [vmem:[#allocation7_spill] sm:$0xff] }
 0x198   : > { %v2634_v8 = vpop.f32.mrf.mxu0  ;;  %v9404_v43 = vld [vmem:[#allocation8_spill] sm:$0xff] }
 0x199   : > { %v2827_v35 = vpop.f32.mrf.mxu1  ;;  %v2826_v45 = vadd.f32 %v2825_v21, %v2633_v18  ;;  %v2635_v26 = vadd.f32 %v2634_v8, %v9398_v41  ;;  %v3754_v4 = vmax.f32 %v2824_v50, 0.0 }
 0x19a   : > { %v2636_v57 = vpop.f32.mrf.mxu0 }
 0x19b   : > { %v2829_v27 = vpop.f32.mrf.mxu1  ;;  %v2828_v62 = vadd.f32 %v2827_v35, %v2635_v26  ;;  %v2637_v3 = vadd.f32 %v2636_v57, %v9399_v30  ;;  %v3755_v21 = vmax.f32 %v2826_v45, 0.0  ;;  %v9406_v57 = vld [vmem:[#allocation79_spill] sm:$0xff] }
 0x19c   : > { %v2640_v9 = vpop.f32.mrf.mxu0  ;;  %3105 = vmatmul.mubr.bf16.gmra.mxu0 %v9400_v28 }
 0x19d   : > { %v2833_v31 = vpop.f32.mrf.mxu1  ;;  %3298 = vmatmul.mubr.bf16.gmra.mxu1 %v9401_v33  ;;  %v3758_v22 = vmax.f32 %v2828_v62, 0.0  ;;  %v2830_v16 = vadd.f32 %v2829_v27, %v2637_v3  ;;  %v2641_v25 = vadd.f32 %v2640_v9, %v9402_v49  ;;  %3114 = vmatprep.mubr.bf16.mxu0 %v9403_v39  ;;  %v9407_v62 = vld [vmem:[#allocation82_spill] sm:$0xff] }
 0x19e   : > { %3307 = vmatprep.mubr.bf16.mxu1 %v9404_v43  ;;  %v2642_v18 = vpop.f32.mrf.mxu0  ;;  %v9409_v43 = vld [vmem:[#allocation83_spill] sm:$0xff] }
 0x19f   : > { %v2835_v8 = vpop.f32.mrf.mxu1  ;;  %v8139_v35 = vpack.c.bf16 %v3758_v22, %v3754_v4  ;;  %v3759_v41 = vmax.f32 %v2830_v16, 0.0  ;;  %v2834_v26 = vadd.f32 %v2833_v31, %v2641_v25  ;;  %v2643_v30 = vadd.f32 %v2642_v18, %v9406_v57  ;;  %v9410_v4 = vld [vmem:[#allocation9_spill] sm:$0xff]  ;;  %v9411_v22 = vld [vmem:[#allocation10_spill] sm:$0xff]  ;;  %v9412_v18 = vld [vmem:[#allocation84_spill] sm:$0xff] }
 0x1a0   : > { %v2644_v28 = vpop.f32.mrf.mxu0  ;;  %v9413_v57 = vld [vmem:[#allocation11_spill] sm:$0xff] }
 0x1a1   : > { %9405 = vst [vmem:[#allocation74_spill] sm:$0xff] %v8139_v35  ;;  %v2837_v33 = vpop.f32.mrf.mxu1  ;;  %v2836_v50 = vadd.f32 %v2835_v8, %v2643_v30  ;;  %v2645_v27 = vadd.f32 %v2644_v28, %v9407_v62  ;;  %v8143_v3 = vpack.c.bf16 %v3759_v41, %v3755_v21  ;;  %v3762_v31 = vmax.f32 %v2834_v26, 0.0  ;;  %v9414_v21 = vld [vmem:[#allocation12_spill] sm:$0xff]  ;;  %v9416_v26 = vld [vmem:[#allocation87_spill] sm:$0xff] }
 0x1a2   : > { %v2646_v9 = vpop.f32.mrf.mxu0  ;;  %v6313_v41 = vld [vmem:[%s9182_s3 + $0x78] sm:$0xff]  }
 0x1a3   : > { %9408 = vst [vmem:[#allocation75_spill] sm:$0xff] %v8143_v3  ;;  %v2839_v49 = vpop.f32.mrf.mxu1  ;;  %v2838_v39 = vadd.f32 %v2837_v33, %v2645_v27  ;;  %v2647_v45 = vadd.f32 %v2646_v9, %v9409_v43  ;;  %v3763_v30 = vmax.f32 %v2836_v50, 0.0  ;;  %5564 = vmatprep.subr.bf16.mxu0 %v6313_v41  ;;  %v9421_v41 = vld [vmem:[#allocation14_spill] sm:$0xff] }
 0x1a4   : > { %v2650_v60 = vpop.f32.mrf.mxu0  ;;  %3115 = vmatmul.mubr.bf16.gmra.mxu0 %v9410_v4  ;;  %v9417_v4 = vld [vmem:[#allocation90_spill] sm:$0xff] }
 0x1a5   : > { %v2843_v32 = vpop.f32.mrf.mxu1  ;;  %3308 = vmatmul.mubr.bf16.gmra.mxu1 %v9411_v22  ;;  %v3766_v16 = vmax.f32 %v2838_v39, 0.0  ;;  %v2840_v25 = vadd.f32 %v2839_v49, %v2647_v45  ;;  %v2651_v8 = vadd.f32 %v2650_v60, %v9412_v18  ;;  %3124 = vmatprep.mubr.bf16.mxu0 %v9413_v57  ;;  %v6315_v60 = vld [vmem:[%s9182_s3 + $0xf8] sm:$0xff]  }
 0x1a6   : > { %3317 = vmatprep.mubr.bf16.mxu1 %v9414_v21  ;;  %v2652_v28 = vpop.f32.mrf.mxu0  ;;  %5676 = vmatprep.subr.bf16.mxu1 %v6315_v60  ;;  %v9420_v21 = vld [vmem:[#allocation13_spill] sm:$0xff] }
 0x1a7   : > { %v2845_v33 = vpop.f32.mrf.mxu1  ;;  %v8154_v62 = vpack.c.bf16 %v3766_v16, %v3762_v31  ;;  %v3767_v27 = vmax.f32 %v2840_v25, 0.0  ;;  %v2844_v9 = vadd.f32 %v2843_v32, %v2651_v8  ;;  %v2653_v39 = vadd.f32 %v2652_v28, %v9416_v26  ;;  %v9419_v25 = vld [vmem:[#allocation91_spill] sm:$0xff] }
 0x1a8   : > { %v2654_v49 = vpop.f32.mrf.mxu0 }
 0x1a9   : > { %9415 = vst [vmem:[#allocation5_spill] sm:$0xff] %v8154_v62  ;;  %v2847_v43 = vpop.f32.mrf.mxu1  ;;  %v2846_v45 = vadd.f32 %v2845_v33, %v2653_v39  ;;  %v2655_v22 = vadd.f32 %v2654_v49, %v9417_v4  ;;  %v8161_v50 = vpack.c.bf16 %v3767_v27, %v3763_v30  ;;  %v3770_v28 = vmax.f32 %v2844_v9, 0.0  ;;  %v9422_v33 = vld [vmem:[#allocation92_spill] sm:$0xff]  ;;  %v9423_v49 = vld [vmem:[#allocation15_spill] sm:$0xff] }
 0x1aa   : > { %v2656_v18 = vpop.f32.mrf.mxu0  ;;  %v9424_v30 = vld [vmem:[#allocation16_spill] sm:$0xff] }
 0x1ab   : > { %9418 = vst [vmem:[#allocation6_spill] sm:$0xff] %v8161_v50  ;;  %v2849_v31 = vpop.f32.mrf.mxu1  ;;  %v2848_v16 = vadd.f32 %v2847_v43, %v2655_v22  ;;  %v2657_v32 = vadd.f32 %v2656_v18, %v9419_v25  ;;  %v3771_v27 = vmax.f32 %v2846_v45, 0.0  ;;  %v9426_v25 = vld [vmem:[#allocation95_spill] sm:$0xff] }
 0x1ac   : > { %v2660_v8 = vpop.f32.mrf.mxu0  ;;  %3125 = vmatmul.mubr.bf16.gmra.mxu0 %v9420_v21 }
 0x1ad   : > { %v2853_v57 = vpop.f32.mrf.mxu1  ;;  %3318 = vmatmul.mubr.bf16.gmra.mxu1 %v9421_v41  ;;  %v3774_v26 = vmax.f32 %v2848_v16, 0.0  ;;  %v2850_v62 = vadd.f32 %v2849_v31, %v2657_v32  ;;  %v2661_v39 = vadd.f32 %v2660_v8, %v9422_v33  ;;  %3134 = vmatprep.mubr.bf16.mxu0 %v9423_v49  ;;  %v9427_v16 = vld [vmem:[#allocation98_spill] sm:$0xff] }
 0x1ae   : > { %3327 = vmatprep.mubr.bf16.mxu1 %v9424_v30  ;;  %v2662_v60 = vpop.f32.mrf.mxu0  ;;  %v9429_v30 = vld [vmem:[#allocation99_spill] sm:$0xff] }
 0x1af   : > { %v2855_v43 = vpop.f32.mrf.mxu1  ;;  %v8169_v4 = vpack.c.bf16 %v3774_v26, %v3770_v28  ;;  %v3775_v22 = vmax.f32 %v2850_v62, 0.0  ;;  %v2854_v18 = vadd.f32 %v2853_v57, %v2661_v39  ;;  %v2663_v21 = vadd.f32 %v2662_v60, %v9426_v25  ;;  %v9430_v28 = vld [vmem:[#allocation17_spill] sm:$0xff]  ;;  %v9431_v62 = vld [vmem:[#allocation18_spill] sm:$0xff]  ;;  %v9432_v60 = vld [vmem:[#allocation100_spill] sm:$0xff] }
 0x1b0   : > { %v2664_v50 = vpop.f32.mrf.mxu0  ;;  %v9433_v25 = vld [vmem:[#allocation19_spill] sm:$0xff] }
 0x1b1   : > { %9425 = vst [vmem:[#allocation76_spill] sm:$0xff] %v8169_v4  ;;  %v2857_v41 = vpop.f32.mrf.mxu1  ;;  %v2856_v9 = vadd.f32 %v2855_v43, %v2663_v21  ;;  %v2665_v31 = vadd.f32 %v2664_v50, %v9427_v16  ;;  %v8173_v32 = vpack.c.bf16 %v3775_v22, %v3771_v27  ;;  %v3778_v57 = vmax.f32 %v2854_v18, 0.0  ;;  %v9434_v50 = vld [vmem:[#allocation20_spill] sm:$0xff] }
 0x1b2   : > { %v2666_v8 = vpop.f32.mrf.mxu0 }
 0x1b3   : > { %9428 = vst [vmem:[#allocation7_spill] sm:$0xff] %v8173_v32  ;;  %v2859_v33 = vpop.f32.mrf.mxu1  ;;  %v2858_v49 = vadd.f32 %v2857_v41, %v2665_v31  ;;  %v2667_v45 = vadd.f32 %v2666_v8, %v9429_v30  ;;  %v3779_v27 = vmax.f32 %v2856_v9, 0.0  ;;  %v9435_v8 = vld [vmem:[#allocation103_spill] sm:$0xff] }
 0x1b4   : > { %v2670_v35 = vpop.f32.mrf.mxu0  ;;  %3135 = vmatmul.mubr.bf16.gmra.mxu0 %v9430_v28 }
 0x1b5   : > { %v2863_v3 = vpop.f32.mrf.mxu1  ;;  %3328 = vmatmul.mubr.bf16.gmra.mxu1 %v9431_v62  ;;  %v3782_v26 = vmax.f32 %v2858_v49, 0.0  ;;  %v2860_v39 = vadd.f32 %v2859_v33, %v2667_v45  ;;  %v2671_v43 = vadd.f32 %v2670_v35, %v9432_v60  ;;  %3144 = vmatprep.mubr.bf16.mxu0 %v9433_v25  ;;  %v9436_v49 = vld [vmem:[#allocation106_spill] sm:$0xff] }
 0x1b6   : > { %3337 = vmatprep.mubr.bf16.mxu1 %v9434_v50  ;;  %v2672_v22 = vpop.f32.mrf.mxu0  ;;  %v9437_v50 = vld [vmem:[#allocation107_spill] sm:$0xff] }
 0x1b7   : > { %v2865_v21 = vpop.f32.mrf.mxu1  ;;  %v8181_v41 = vpack.c.bf16 %v3782_v26, %v3778_v57  ;;  %v3783_v16 = vmax.f32 %v2860_v39, 0.0  ;;  %v2864_v31 = vadd.f32 %v2863_v3, %v2671_v43  ;;  %v2673_v30 = vadd.f32 %v2672_v22, %v9435_v8  ;;  %v9438_v57 = vld [vmem:[#allocation21_spill] sm:$0xff]  ;;  %v9439_v26 = vld [vmem:[#allocation22_spill] sm:$0xff] }
 0x1b8   : > { %v2674_v28 = vpop.f32.mrf.mxu0 }
 0x1b9   : > { %v2867_v62 = vpop.f32.mrf.mxu1  ;;  %v2866_v18 = vadd.f32 %v2865_v21, %v2673_v30  ;;  %v2675_v33 = vadd.f32 %v2674_v28, %v9436_v49  ;;  %v8185_v45 = vpack.c.bf16 %v3783_v16, %v3779_v27  ;;  %v3786_v3 = vmax.f32 %v2864_v31, 0.0  ;;  %v9440_v21 = vld [vmem:[#allocation23_spill] sm:$0xff]  ;;  %v9441_v27 = vld [vmem:[#allocation24_spill] sm:$0xff] }
 0x1ba   : > { %v2676_v35 = vpop.f32.mrf.mxu0 }
 0x1bb   : > { %v2869_v60 = vpop.f32.mrf.mxu1  ;;  %v2868_v25 = vadd.f32 %v2867_v62, %v2675_v33  ;;  %v2677_v9 = vadd.f32 %v2676_v35, %v9437_v50  ;;  %v3787_v16 = vmax.f32 %v2866_v18, 0.0 }
 0x1bc   : > { %v2680_v4 = vpop.f32.mrf.mxu0  ;;  %3145 = vmatmul.mubr.bf16.gmra.mxu0 %v9438_v57 }
 0x1bd   : > { %v2873_v32 = vpop.f32.mrf.mxu1  ;;  %3338 = vmatmul.mubr.bf16.gmra.mxu1 %v9439_v26  ;;  %v3790_v39 = vmax.f32 %v2868_v25, 0.0  ;;  %v2870_v43 = vadd.f32 %v2869_v60, %v2677_v9  ;;  %v2681_v22 = vadd.f32 %v2680_v4, %v7783_v46  ;;  %3154 = vmatprep.mubr.bf16.mxu0 %v9440_v21  ;;  %v9442_v25 = vld [vmem:[#allocation112_spill] sm:$0xff]  ;;  %v9443_v26 = vld [vmem:[#allocation113_spill] sm:$0xff] }
 0x1be   : > { %3347 = vmatprep.mubr.bf16.mxu1 %v9441_v27  ;;  %v2682_v8 = vpop.f32.mrf.mxu0 }
 0x1bf   : > { %v2875_v30 = vpop.f32.mrf.mxu1  ;;  %v8193_v28 = vpack.c.bf16 %v3790_v39, %v3786_v3  ;;  %v3791_v62 = vmax.f32 %v2870_v43, 0.0  ;;  %v2874_v49 = vadd.f32 %v2873_v32, %v2681_v22  ;;  %v2683_v33 = vadd.f32 %v2682_v8, %v7790_v56  ;;  %v9444_v3 = vld [vmem:[#allocation25_spill] sm:$0xff]  ;;  %v9445_v39 = vld [vmem:[#allocation26_spill] sm:$0xff]  ;;  %v9446_v8 = vld [vmem:[#allocation27_spill] sm:$0xff] }
 0x1c0   : > { %v2684_v35 = vpop.f32.mrf.mxu0 }
 0x1c1   : > { %v2877_v50 = vpop.f32.mrf.mxu1  ;;  %v2876_v31 = vadd.f32 %v2875_v30, %v2683_v33  ;;  %v2685_v60 = vadd.f32 %v2684_v35, %v9442_v25  ;;  %v8197_v9 = vpack.c.bf16 %v3791_v62, %v3787_v16  ;;  %v3794_v32 = vmax.f32 %v2874_v49, 0.0  ;;  %v9447_v16 = vld [vmem:[#allocation28_spill] sm:$0xff] }
 0x1c2   : > { %v2686_v46 = vpop.f32.mrf.mxu0 }
 0x1c3   : > { %v2879_v4 = vpop.f32.mrf.mxu1  ;;  %v2878_v57 = vadd.f32 %v2877_v50, %v2685_v60  ;;  %v2687_v18 = vadd.f32 %v2686_v46, %v9443_v26  ;;  %v3795_v30 = vmax.f32 %v2876_v31, 0.0 }
 0x1c4   : > { %v2690_v21 = vpop.f32.mrf.mxu0  ;;  %3155 = vmatmul.mubr.bf16.gmra.mxu0 %v9444_v3 }
 0x1c5   : > { %v2883_v27 = vpop.f32.mrf.mxu1  ;;  %3348 = vmatmul.mubr.bf16.gmra.mxu1 %v9445_v39  ;;  %v3798_v56 = vmax.f32 %v2878_v57, 0.0  ;;  %v2880_v43 = vadd.f32 %v2879_v4, %v2687_v18  ;;  %v2691_v22 = vadd.f32 %v2690_v21, %v7812_v23  ;;  %3164 = vmatprep.mubr.bf16.mxu0 %v9446_v8  ;;  %v9450_v8 = vld [vmem:[#allocation31_spill] sm:$0xff] }
 0x1c6   : > { %3357 = vmatprep.mubr.bf16.mxu1 %v9447_v16  ;;  %v2692_v62 = vpop.f32.mrf.mxu0 }
 0x1c7   : > { %v2885_v33 = vpop.f32.mrf.mxu1  ;;  %v8205_v35 = vpack.c.bf16 %v3798_v56, %v3794_v32  ;;  %v3799_v50 = vmax.f32 %v2880_v43, 0.0  ;;  %v2884_v25 = vadd.f32 %v2883_v27, %v2691_v22  ;;  %v2693_v60 = vadd.f32 %v2692_v62, %v7819_v6  ;;  %v9448_v32 = vld [vmem:[#allocation29_spill] sm:$0xff]  ;;  %v9449_v56 = vld [vmem:[#allocation30_spill] sm:$0xff] }
 0x1c8   : > { %v2694_v46 = vpop.f32.mrf.mxu0 }
 0x1c9   : > { %v2887_v26 = vpop.f32.mrf.mxu1  ;;  %v2886_v49 = vadd.f32 %v2885_v33, %v2693_v60  ;;  %v2695_v4 = vadd.f32 %v2694_v46, %v7822_v48  ;;  %v8209_v57 = vpack.c.bf16 %v3799_v50, %v3795_v30  ;;  %v3802_v27 = vmax.f32 %v2884_v25, 0.0  ;;  %v9451_v48 = vld [vmem:[#allocation32_spill] sm:$0xff] }
 0x1ca   : > { %v2696_v23 = vpop.f32.mrf.mxu0 }
 0x1cb   : > { %v2889_v18 = vpop.f32.mrf.mxu1  ;;  %v2888_v21 = vadd.f32 %v2887_v26, %v2695_v4  ;;  %v2697_v31 = vadd.f32 %v2696_v23, %v7827_v11  ;;  %v3803_v16 = vmax.f32 %v2886_v49, 0.0  ;;  %v6314_v49 = vld [vmem:[%s9182_s3 + $0x38] sm:$0xff]  }
 0x1cc   : > { %v2700_v3 = vpop.f32.mrf.mxu0  ;;  %3165 = vmatmul.mubr.bf16.gmra.mxu0 %v9448_v32 }
 0x1cd   : > { %v2893_v39 = vpop.f32.mrf.mxu1  ;;  %3358 = vmatmul.mubr.bf16.gmra.mxu1 %v9449_v56  ;;  %v3806_v6 = vmax.f32 %v2888_v21, 0.0  ;;  %v2890_v43 = vadd.f32 %v2889_v18, %v2697_v31  ;;  %v2701_v22 = vadd.f32 %v2700_v3, %v7832_v51  ;;  %3400 = vmatprep.mubr.bf16.mxu0 %v9450_v8  ;;  %v6316_v21 = vld [vmem:[%s9182_s3 + $0xb8] sm:$0xff]  }
 0x1ce   : > { %5478 = vmatprep.mubr.msk.bf16.mxu1 %vm2148_vm1, %v9451_v48  ;;  %v2702_v30 = vpop.f32.mrf.mxu0  ;;  %v9452_v3 = vld [vmem:[#allocation116_spill] sm:$0xff] }
 0x1cf   : > { %v2895_v62 = vpop.f32.mrf.mxu1  ;;  %v8218_v11 = vpack.c.bf16 %v3806_v6, %v3802_v27  ;;  %v3807_v33 = vmax.f32 %v2890_v43, 0.0  ;;  %v2894_v50 = vadd.f32 %v2893_v39, %v2701_v22  ;;  %v2703_v60 = vadd.f32 %v2702_v30, %v7835_v47  ;;  %v6317_v39 = vld [vmem:[%s9182_s3 + $0x70] sm:$0xff]   ;;  %v9453_v27 = vld [vmem:[#allocation33_spill] sm:$0xff]  ;;  %v9454_v6 = vld [vmem:[#allocation34_spill] sm:$0xff] }
 0x1d0   : > { %v2704_v46 = vpop.f32.mrf.mxu0  ;;  %v9456_v30 = vld [vmem:[#allocation36_spill] sm:$0xff] }
 0x1d1   : > { %v2897_v25 = vpop.f32.mrf.mxu1  ;;  %v2896_v26 = vadd.f32 %v2895_v62, %v2703_v60  ;;  %v2705_v4 = vadd.f32 %v2704_v46, %v7844_v19  ;;  %v8222_v51 = vpack.c.bf16 %v3807_v33, %v3803_v16  ;;  %v6319_v19 = vld [vmem:[%s9182_s3 + $0xf0] sm:$0xff]   ;;  %v3810_v43 = vmax.f32 %v2894_v50, 0.0 }
 0x1d2   : > { %v2706_v23 = vpop.f32.mrf.mxu0  ;;  %v9455_v16 = vld [vmem:[#allocation35_spill] sm:$0xff] }
 0x1d3   : > { %v2899_v18 = vpop.f32.mrf.mxu1  ;;  %v2898_v31 = vadd.f32 %v2897_v25, %v2705_v4  ;;  %v2707_v47 = vadd.f32 %v2706_v23, %v9452_v3  ;;  %v3811_v62 = vmax.f32 %v2896_v26, 0.0  ;;  %v6318_v46 = vld [vmem:[%s9182_s3 + $0x30] sm:$0xff]   ;;  %v6321_v26 = vld [vmem:[%s9182_s3 + $0x68] sm:$0xff]  }
 0x1d4   : > { %v2710_v32 = vpop.f32.mrf.mxu0  ;;  %3401 = vmatmul.mubr.bf16.vlgmr.msra.gmra.mxu0 %v9453_v27  ;;  %v6320_v50 = vld [vmem:[%s9182_s3 + $0xb0] sm:$0xff]  }
 0x1d5   : > { %v2903_v56 = vpop.f32.mrf.mxu1  ;;  %3594 = vmatmul.mubr.bf16.vlgmr.msra.gmra.mxu1 %v9454_v6  ;;  %v3814_v22 = vmax.f32 %v2898_v31, 0.0  ;;  %v2900_v8 = vadd.f32 %v2899_v18, %v2707_v47  ;;  %v2711_v48 = vadd.f32 %v2710_v32, %v7872_v12  ;;  %3410 = vmatprep.mubr.bf16.mxu0 %v9455_v16  ;;  %v6326_v18 = vld [vmem:[%s9182_s3 + $0xe8] sm:$0xff]   ;;  %v6335_v6 = vld [vmem:[%s9182_s3 + $0xe0] sm:$0xff]  }
 0x1d6   : > { %5479 = vmatprep.mubr.msk.bf16.mxu1 %vm2148_vm1, %v9456_v30  ;;  %v2712_v33 = vpop.f32.mrf.mxu0  ;;  %5565 = vmatpush3.bf16.msra.mxu0 %v6314_v49 }
 0x1d7   : > { %v2905_v60 = vpop.f32.mrf.mxu1  ;;  %5677 = vmatpush3.bf16.msra.mxu1 %v6316_v21  ;;  %v8249_v25 = vpack.c.bf16 %v3814_v22, %v3810_v43  ;;  %v3815_v12 = vmax.f32 %v2900_v8, 0.0  ;;  %v2904_v4 = vadd.f32 %v2903_v56, %v2711_v48  ;;  %v2713_v23 = vadd.f32 %v2712_v33, %v7875_v10  ;;  %5566 = vmatprep.subr.bf16.mxu0 %v6317_v39  ;;  %v6322_v10 = vld [vmem:[%s9182_s3 + $0x28] sm:$0xff]   ;;  %v9457_v8 = vld [vmem:[#allocation37_spill] sm:$0xff]  ;;  %v9459_v33 = vld [vmem:[#allocation39_spill] sm:$0xff] }
 0x1d8   : > { %5678 = vmatprep.subr.bf16.mxu1 %v6319_v19  ;;  %v2714_v49 = vpop.f32.mrf.mxu0  ;;  %v6328_v39 = vld [vmem:[%s9182_s3 + $0xa8] sm:$0xff]  }
 0x1d9   : > { %v2907_v21 = vpop.f32.mrf.mxu1  ;;  %v2906_v31 = vadd.f32 %v2905_v60, %v2713_v23  ;;  %v2715_v3 = vadd.f32 %v2714_v49, %v7884_v7  ;;  %v8259_v47 = vpack.c.bf16 %v3815_v12, %v3811_v62  ;;  %v6323_v7 = vld [vmem:[%s9182_s3 + $0x60] sm:$0xff]   ;;  %v9458_v48 = vld [vmem:[#allocation38_spill] sm:$0xff]  ;;  %v3818_v16 = vmax.f32 %v2904_v4, 0.0  ;;  %v9460_v60 = vld [vmem:[#allocation40_spill] sm:$0xff] }
 0x1da   : > { %v2716_v32 = vpop.f32.mrf.mxu0  ;;  %5567 = vmatpush3.bf16.msra.mxu0 %v6318_v46  ;;  %v6324_v23 = vld [vmem:[%s9182_s3 + $0x20] sm:$0xff]  }
 0x1db   : > { %v2909_v56 = vpop.f32.mrf.mxu1  ;;  %5679 = vmatpush3.bf16.msra.mxu1 %v6320_v50  ;;  %v2908_v19 = vadd.f32 %v2907_v21, %v2715_v3  ;;  %v2717_v27 = vadd.f32 %v2716_v32, %v7895_v54  ;;  %5568 = vmatprep.subr.bf16.mxu0 %v6321_v26  ;;  %v3819_v46 = vmax.f32 %v2906_v31, 0.0  ;;  %v6336_v4 = vld [vmem:[%s9182_s3 + $0xa0] sm:$0xff]   ;;  %v6325_v21 = vld [vmem:[%s9182_s3 + $0x58] sm:$0xff]  }
 0x1dc   : > { %5680 = vmatprep.subr.bf16.mxu1 %v6326_v18  ;;  %v2720_v43 = vpop.f32.mrf.mxu0  ;;  %3411 = vmatmul.mubr.bf16.gmra.mxu0 %v9457_v8  ;;  %v9462_v8 = vld [vmem:[#allocation42_spill] sm:$0xff] }
 0x1dd   : > { %v2913_v22 = vpop.f32.mrf.mxu1  ;;  %3604 = vmatmul.mubr.bf16.gmra.mxu1 %v9458_v48  ;;  %v3822_v30 = vmax.f32 %v2908_v19, 0.0  ;;  %v2910_v62 = vadd.f32 %v2909_v56, %v2717_v27  ;;  %v2721_v54 = vadd.f32 %v2720_v43, %v7906_v37  ;;  %3420 = vmatprep.mubr.bf16.mxu0 %v9459_v33  ;;  %v9464_v33 = vld [vmem:[#allocation44_spill] sm:$0xff] }
 0x1de   : > { %5480 = vmatprep.mubr.msk.bf16.mxu1 %vm2148_vm1, %v9460_v60  ;;  %v2722_v50 = vpop.f32.mrf.mxu0  ;;  %5569 = vmatpush3.bf16.msra.mxu0 %v6322_v10 }
 0x1df   : > { %v2915_v12 = vpop.f32.mrf.mxu1  ;;  %5681 = vmatpush3.bf16.msra.mxu1 %v6328_v39  ;;  %v8286_v26 = vpack.c.bf16 %v3822_v30, %v3818_v16  ;;  %v3823_v37 = vmax.f32 %v2910_v62, 0.0  ;;  %v2914_v18 = vadd.f32 %v2913_v22, %v2721_v54  ;;  %v2723_v49 = vadd.f32 %v2722_v50, %v7915_v20  ;;  %5570 = vmatprep.subr.bf16.mxu0 %v6323_v7  ;;  %v6327_v20 = vld [vmem:[%s9182_s3 + $0x18] sm:$0xff]   ;;  %v9461_v22 = vld [vmem:[#allocation41_spill] sm:$0xff]  ;;  %v9463_v54 = vld [vmem:[#allocation43_spill] sm:$0xff] }
 0x1e0   : > { %5682 = vmatprep.subr.bf16.mxu1 %v6335_v6  ;;  %v2724_v31 = vpop.f32.mrf.mxu0  ;;  %v6329_v6 = vld [vmem:[%s9182_s3 + $0x50] sm:$0xff]  }
 0x1e1   : > { %v2917_v3 = vpop.f32.mrf.mxu1  ;;  %v2916_v32 = vadd.f32 %v2915_v12, %v2723_v49  ;;  %v2725_v56 = vadd.f32 %v2724_v31, %v7924_v34  ;;  %v8293_v10 = vpack.c.bf16 %v3823_v37, %v3819_v46  ;;  %v3826_v48 = vmax.f32 %v2914_v18, 0.0  ;;  %v6330_v50 = vld [vmem:[%s9182_s3 + $0x10] sm:$0xff]   ;;  %v6337_v18 = vld [vmem:[%s9182_s3 + $0xd8] sm:$0xff]  }
 0x1e2   : > { %v2726_v39 = vpop.f32.mrf.mxu0  ;;  %5571 = vmatpush3.bf16.msra.mxu0 %v6324_v23  ;;  %v6338_v49 = vld [vmem:[%s9182_s3 + $0x98] sm:$0xff]  }
 0x1e3   : > { %v2919_v19 = vpop.f32.mrf.mxu1  ;;  %5683 = vmatpush3.bf16.msra.mxu1 %v6336_v4  ;;  %v2918_v27 = vadd.f32 %v2917_v3, %v2725_v56  ;;  %v2727_v7 = vadd.f32 %v2726_v39, %v7935_v36  ;;  %5572 = vmatprep.subr.bf16.mxu0 %v6325_v21  ;;  %v3827_v36 = vmax.f32 %v2916_v32, 0.0 }
 0x1e4   : > { %v2730_v43 = vpop.f32.mrf.mxu0  ;;  %3421 = vmatmul.mubr.bf16.gmra.mxu0 %v9461_v22  ;;  %5684 = vmatprep.subr.bf16.mxu1 %v6337_v18  ;;  %v9467_v22 = vld [vmem:[#allocation46_spill] sm:$0xff] }
 0x1e5   : > { %v2923_v34 = vpop.f32.mrf.mxu1  ;;  %3614 = vmatmul.mubr.bf16.gmra.mxu1 %v9462_v8  ;;  %v3830_v16 = vmax.f32 %v2918_v27, 0.0  ;;  %v2920_v30 = vadd.f32 %v2919_v19, %v2727_v7  ;;  %v2731_v62 = vadd.f32 %v2730_v43, %v7946_v59  ;;  %3430 = vmatprep.mubr.bf16.mxu0 %v9463_v54  ;;  %v6331_v59 = vld [vmem:[%s9182_s3 + $0x48] sm:$0xff]   ;;  %v9465_v27 = vld [vmem:[#allocation117_spill] sm:$0xff]  ;;  %v9469_v54 = vld [vmem:[#allocation48_spill] sm:$0xff] }
 0x1e6   : > { %5481 = vmatprep.mubr.msk.bf16.mxu1 %vm2148_vm1, %v9464_v33  ;;  %v2732_v60 = vpop.f32.mrf.mxu0  ;;  %5573 = vmatpush3.bf16.msra.mxu0 %v6327_v20  ;;  %v6332_v19 = vld [vmem:[%s9182_s3 + $0x8] sm:$0xff]  }
 0x1e7   : > { %v2925_v46 = vpop.f32.mrf.mxu1  ;;  %v8311_v12 = vpack.c.bf16 %v3830_v16, %v3826_v48  ;;  %v3831_v23 = vmax.f32 %v2920_v30, 0.0  ;;  %v2924_v4 = vadd.f32 %v2923_v34, %v2731_v62  ;;  %v2733_v37 = vadd.f32 %v2732_v60, %v7955_v55  ;;  %5574 = vmatprep.subr.bf16.mxu0 %v6329_v6  ;;  %5685 = vmatpush3.bf16.msra.mxu1 %v6338_v49  ;;  %v6333_v6 = vld [vmem:[%s9182_s3 + $0x40] sm:$0xff]   ;;  %v9468_v62 = vld [vmem:[#allocation47_spill] sm:$0xff] }
 0x1e8   : > { %v2734_v21 = vpop.f32.mrf.mxu0  ;;  %v9466_v34 = vld [vmem:[#allocation45_spill] sm:$0xff] }
 0x1e9   : > { %v2927_v31 = vpop.f32.mrf.mxu1  ;;  %v2926_v3 = vadd.f32 %v2925_v46, %v2733_v37  ;;  %v2735_v32 = vadd.f32 %v2734_v21, %v7964_v53  ;;  %v8324_v55 = vpack.c.bf16 %v3831_v23, %v3827_v36  ;;  %v3834_v8 = vmax.f32 %v2924_v4, 0.0  ;;  %v6334_v46 = vld [vmem:[%s9182_s3] sm:$0xff]  }
 0x1ea   : > { %v2736_v56 = vpop.f32.mrf.mxu0  ;;  %5575 = vmatpush3.bf16.msra.mxu0 %v6330_v50 }
 0x1eb   : > { %v2929_v39 = vpop.f32.mrf.mxu1  ;;  %v2928_v20 = vadd.f32 %v2927_v31, %v2735_v32  ;;  %v2737_v7 = vadd.f32 %v2736_v56, %v9465_v27  ;;  %5576 = vmatprep.subr.bf16.mxu0 %v6331_v59  ;;  %v3835_v33 = vmax.f32 %v2926_v3, 0.0  ;;  %v9471_v27 = vld [vmem:[#allocation50_spill] sm:$0xff] }
 0x1ec   : > { %v2740_v53 = vpop.f32.mrf.mxu0  ;;  %3431 = vmatmul.mubr.bf16.gmra.mxu0 %v9466_v34 }
 0x1ed   : > { %v2933_v43 = vpop.f32.mrf.mxu1  ;;  %3624 = vmatmul.mubr.bf16.gmra.mxu1 %v9467_v22  ;;  %v3838_v48 = vmax.f32 %v2928_v20, 0.0  ;;  %v2930_v16 = vadd.f32 %v2929_v39, %v2737_v7  ;;  %v2741_v30 = vadd.f32 %v2740_v53, %v7989_v52  ;;  %3440 = vmatprep.mubr.bf16.mxu0 %v9468_v62  ;;  %v9470_v20 = vld [vmem:[#allocation49_spill] sm:$0xff]  ;;  %v6339_v62 = vld [vmem:[%s9182_s3 + $0xd0] sm:$0xff]  }
 0x1ee   : > { %5482 = vmatprep.mubr.msk.bf16.mxu1 %vm2148_vm1, %v9469_v54  ;;  %v2742_v36 = vpop.f32.mrf.mxu0  ;;  %5577 = vmatpush3.bf16.msra.mxu0 %v6332_v19 }
 0x1ef   : > { %v2935_v60 = vpop.f32.mrf.mxu1  ;;  %v8342_v50 = vpack.c.bf16 %v3838_v48, %v3834_v8  ;;  %v3839_v23 = vmax.f32 %v2930_v16, 0.0  ;;  %v2934_v4 = vadd.f32 %v2933_v43, %v2741_v30  ;;  %v2743_v37 = vadd.f32 %v2742_v36, %v7995_v24  ;;  %5578 = vmatprep.subr.bf16.mxu0 %v6333_v6  ;;  %v9473_v43 = vld [vmem:[#allocation52_spill] sm:$0xff]  ;;  %5686 = vmatprep.subr.bf16.mxu1 %v6339_v62 }
 0x1f0   : > { %v2744_v52 = vpop.f32.mrf.mxu0 }
 0x1f1   : > { %v2937_v59 = vpop.f32.mrf.mxu1  ;;  %v2936_v18 = vadd.f32 %v2935_v60, %v2743_v37  ;;  %v2745_v49 = vadd.f32 %v2744_v52, %v8001_v5  ;;  %v8346_v21 = vpack.c.bf16 %v3839_v23, %v3835_v33  ;;  %v3842_v24 = vmax.f32 %v2934_v4, 0.0  ;;  %v9472_v5 = vld [vmem:[#allocation51_spill] sm:$0xff] }
 0x1f2   : > { %v2746_v31 = vpop.f32.mrf.mxu0  ;;  %5579 = vmatpush3.bf16.msra.mxu0 %v6334_v46 }
 0x1f3   : > { %v2939_v3 = vpop.f32.mrf.mxu1  ;;  %v2938_v32 = vadd.f32 %v2937_v59, %v2745_v49  ;;  %v2747_v56 = vadd.f32 %v2746_v31, %v8014_v13  ;;  %v3843_v34 = vmax.f32 %v2936_v18, 0.0  ;;  %v9474_v18 = vld [vmem:[#allocation54_spill] sm:$0xff]  ;;  %v9475_v49 = vld [vmem:[#allocation55_spill] sm:$0xff] }
 0x1f4   : > { %v2750_v39 = vpop.f32.mrf.mxu0  ;;  %3441 = vmatmul.mubr.bf16.gmra.mxu0 %v9470_v20 }
 0x1f5   : > { %v2943_v19 = vpop.f32.mrf.mxu1  ;;  %3634 = vmatmul.mubr.bf16.gmra.mxu1 %v9471_v27  ;;  %v3846_v7 = vmax.f32 %v2938_v32, 0.0  ;;  %v2940_v6 = vadd.f32 %v2939_v3, %v2747_v56  ;;  %v2751_v53 = vadd.f32 %v2750_v39, %v8025_v40  ;;  %3450 = vmatprep.mubr.bf16.mxu0 %v9472_v5  ;;  %v6340_v40 = vld [vmem:[%s9182_s3 + $0x90] sm:$0xff]   ;;  %v9476_v56 = vld [vmem:[#allocation56_spill] sm:$0xff]  ;;  %v9477_v39 = vld [vmem:[#allocation57_spill] sm:$0xff] }
 0x1f6   : > { %5483 = vmatprep.mubr.msk.bf16.mxu1 %vm2148_vm1, %v9473_v43  ;;  %v2752_v22 = vpop.f32.mrf.mxu0  ;;  %5687 = vmatpush3.bf16.msra.mxu1 %v6340_v40  ;;  %v9478_v40 = vld [vmem:[#allocation58_spill] sm:$0xff] }
 0x1f7   : > { %v2945_v8 = vpop.f32.mrf.mxu1  ;;  %v8355_v13 = vpack.c.bf16 %v3846_v7, %v3842_v24  ;;  %v3847_v48 = vmax.f32 %v2940_v6, 0.0  ;;  %v2944_v16 = vadd.f32 %v2943_v19, %v2751_v53  ;;  %v2753_v30 = vadd.f32 %v2752_v22, %v8034_v17 }
 0x1f8   : > { %v2754_v54 = vpop.f32.mrf.mxu0 }
 0x1f9   : > { %v2947_v33 = vpop.f32.mrf.mxu1  ;;  %v2946_v36 = vadd.f32 %v2945_v8, %v2753_v30  ;;  %v2755_v60 = vadd.f32 %v2754_v54, %v8043_v61  ;;  %v8365_v46 = vpack.c.bf16 %v3847_v48, %v3843_v34  ;;  %v3850_v31 = vmax.f32 %v2944_v16, 0.0  ;;  %v9479_v54 = vld [vmem:[#allocation59_spill] sm:$0xff] }
 0x1fa   : > { %v2756_v23 = vpop.f32.mrf.mxu0 }
 0x1fb   : > { %v2949_v4 = vpop.f32.mrf.mxu1  ;;  %v2948_v17 = vadd.f32 %v2947_v33, %v2755_v60  ;;  %v2757_v37 = vadd.f32 %v2756_v23, %v8051_v15  ;;  %v3851_v19 = vmax.f32 %v2946_v36, 0.0  ;;  %v9480_v23 = vld [vmem:[#allocation60_spill] sm:$0xff] }
 0x1fc   : > { %v2760_v52 = vpop.f32.mrf.mxu0  ;;  %3451 = vmatmul.mubr.bf16.gmra.mxu0 %v9474_v18 }
 0x1fd   : > { %v2953_v59 = vpop.f32.mrf.mxu1  ;;  %3644 = vmatmul.mubr.bf16.gmra.mxu1 %v9475_v49  ;;  %v3854_v3 = vmax.f32 %v2948_v17, 0.0  ;;  %v2950_v32 = vadd.f32 %v2949_v4, %v2757_v37  ;;  %v2761_v61 = vadd.f32 %v2760_v52, %v8059_v42  ;;  %3460 = vmatprep.mubr.bf16.mxu0 %v9476_v56  ;;  %v6341_v49 = vld [vmem:[%s9182_s3 + $0xc8] sm:$0xff]  }
 0x1fe   : > { %5484 = vmatprep.mubr.msk.bf16.mxu1 %vm2148_vm1, %v9477_v39  ;;  %v2762_v20 = vpop.f32.mrf.mxu0  ;;  %5688 = vmatprep.subr.bf16.mxu1 %v6341_v49  ;;  %v9489_v49 = vld [vmem:[#allocation119_spill] sm:$0xff] }
 0x1ff   : > { %v2955_v27 = vpop.f32.mrf.mxu1  ;;  %v8374_v15 = vpack.c.bf16 %v3854_v3, %v3850_v31  ;;  %v3855_v24 = vmax.f32 %v2950_v32, 0.0  ;;  %v2954_v7 = vadd.f32 %v2953_v59, %v2761_v61  ;;  %v2763_v6 = vadd.f32 %v2762_v20, %v8065_v2 }
 0x200   : > { %v2764_v53 = vpop.f32.mrf.mxu0 }
 0x201   : > { %v2957_v5 = vpop.f32.mrf.mxu1  ;;  %v2956_v43 = vadd.f32 %v2955_v27, %v2763_v6  ;;  %v2765_v34 = vadd.f32 %v2764_v53, %v8071_v38  ;;  %v8378_v42 = vpack.c.bf16 %v3855_v24, %v3851_v19  ;;  %v3858_v33 = vmax.f32 %v2954_v7, 0.0  ;;  %v9481_v38 = vld [vmem:[#allocation61_spill] sm:$0xff]  ;;  %v9482_v7 = vld [vmem:[#allocation62_spill] sm:$0xff]  ;;  %v9483_v6 = vld [vmem:[#allocation63_spill] sm:$0xff] }
 0x202   : > { %v2766_v22 = vpop.f32.mrf.mxu0  ;;  %v9484_v53 = vld [vmem:[#allocation53_spill] sm:$0xff] }
 0x203   : > { %v2959_v8 = vpop.f32.mrf.mxu1  ;;  %v2958_v48 = vadd.f32 %v2957_v5, %v2765_v34  ;;  %v2767_v16 = vadd.f32 %v2766_v22, %v8079_v14  ;;  %v3859_v4 = vmax.f32 %v2956_v43, 0.0  ;;  %v968_v5 = vsub.s32 2, %v9484_v53 }
 0x204   : > { %v2770_v30 = vpop.f32.mrf.mxu0  ;;  %3461 = vmatmul.mubr.bf16.gmra.mxu0 %v9478_v40 }
 0x205   : > { %v2963_v62 = vpop.f32.mrf.mxu1  ;;  %3654 = vmatmul.mubr.bf16.gmra.mxu1 %v9479_v54  ;;  %v3862_v2 = vmax.f32 %v2958_v48, 0.0  ;;  %v2960_v36 = vadd.f32 %v2959_v8, %v2767_v16  ;;  %v2771_v60 = vadd.f32 %v2770_v30, %v8087_v63  ;;  %3470 = vmatprep.mubr.bf16.mxu0 %v9480_v23  ;;  %v6342_v63 = vld [vmem:[%s9182_s3 + $0x88] sm:$0xff]   ;;  %v9485_v8 = vld [vmem:[#allocation64_spill] sm:$0xff]  ;;  %v9486_v48 = vld [vmem:[#allocation65_spill] sm:$0xff] }
 0x206   : > { %5485 = vmatprep.mubr.msk.bf16.mxu1 %vm2148_vm1, %v9481_v38  ;;  %v2772_v17 = vpop.f32.mrf.mxu0  ;;  %5689 = vmatpush3.bf16.msra.mxu1 %v6342_v63 }
 0x207   : > { %v2965_v37 = vpop.f32.mrf.mxu1  ;;  %v8387_v14 = vpack.c.bf16 %v3862_v2, %v3858_v33  ;;  %v3863_v52 = vmax.f32 %v2960_v36, 0.0  ;;  %v2964_v59 = vadd.f32 %v2963_v62, %v2771_v60  ;;  %v2773_v18 = vadd.f32 %v2772_v17, %v8093_v1 }
 0x208   : > { %v2774_v31 = vpop.f32.mrf.mxu0  ;;  %v972_v62 = vsub.s32 3, %v9484_v53 }
 0x209   : > { %v2967_v3 = vpop.f32.mrf.mxu1  ;;  %v2966_v32 = vadd.f32 %v2965_v37, %v2773_v18  ;;  %v2775_v61 = vadd.f32 %v2774_v31, %v8099_v58  ;;  %v8397_v56 = vpack.c.bf16 %v3863_v52, %v3859_v4  ;;  %v3866_v43 = vmax.f32 %v2964_v59, 0.0  ;;  %v6357_v4 = vld [vmem:[%s9181_s2] sm:$0xf] }
 0x20a   : > { %v2776_v39 = vpop.f32.mrf.mxu0  ;;  %v8415_v17 = vrot.slane %v6357_v4, %v968_v5  ;;  %v8420_v31 = vrot.slane %v6357_v4, %v972_v62 }
 0x20b   : > { %v2969_v19 = vpop.f32.mrf.mxu1  ;;  %v2968_v1 = vadd.f32 %v2967_v3, %v2775_v61  ;;  %v2777_v20 = vadd.f32 %v2776_v39, %v8107_v44  ;;  %v3867_v16 = vmax.f32 %v2966_v32, 0.0  ;;  %v9490_v32 = vld [vmem:[#allocation66_spill] sm:$0xff]  ;;  %v9491_v61 = vld [vmem:[#allocation67_spill] sm:$0xff] }
 0x20c   : > { %v2780_v27 = vpop.f32.mrf.mxu0  ;;  %3471 = vmatmul.mubr.bf16.gmra.mxu0 %v9482_v7 }
 0x20d   : > { %v2973_v24 = vpop.f32.mrf.mxu1  ;;  %3664 = vmatmul.mubr.bf16.gmra.mxu1 %v9483_v6  ;;  %v3870_v34 = vmax.f32 %v2968_v1, 0.0  ;;  %v2970_v58 = vadd.f32 %v2969_v19, %v2777_v20  ;;  %v2781_v22 = vadd.f32 %v2780_v27, %v8115_v29  ;;  %3480 = vmatprep.mubr.bf16.mxu0 %v9485_v8  ;;  %v9488_v29 = vld [vmem:[#allocation118_spill] sm:$0xff]  ;;  %v9492_v27 = vld [vmem:[#allocation68_spill] sm:$0xff] }
 0x20e   : > { %5486 = vmatprep.mubr.msk.bf16.mxu1 %vm2148_vm1, %v9486_v48  ;;  %v2782_v44 = vpop.f32.mrf.mxu0 }
 0x20f   : > { %v2975_v30 = vpop.f32.mrf.mxu1  ;;  %v8408_v40 = vpack.c.bf16 %v3870_v34, %v3866_v43  ;;  %v3871_v54 = vmax.f32 %v2970_v58, 0.0  ;;  %v2974_v33 = vadd.f32 %v2973_v24, %v2781_v22  ;;  %v2783_v2 = vadd.f32 %v2782_v44, %v8118_v0  ;;  %v9493_v24 = vld [vmem:[#allocation69_spill] sm:$0xff] }
 0x210   : > { %v2784_v36 = vpop.f32.mrf.mxu0  ;;  %v6343_v44 = vld [vmem:[%s9182_s3 + $0xc0] sm:$0xff]  }
 0x211   : > { %9487 = vst [vmem:[#allocation8_spill] sm:$0xff] %v8408_v40  ;;  %v2977_v60 = vpop.f32.mrf.mxu1  ;;  %v2976_v23 = vadd.f32 %v2975_v30, %v2783_v2  ;;  %v2785_v38 = vadd.f32 %v2784_v36, %v9488_v29  ;;  %v8417_v37 = vpack.c.bf16 %v3871_v54, %v3867_v16  ;;  %v3874_v39 = vmax.f32 %v2974_v33, 0.0  ;;  %v6344_v33 = vld [vmem:[%s9182_s3 + $0x80] sm:$0xff]   ;;  %5690 = vmatprep.subr.bf16.mxu1 %v6343_v44  ;;  %v9496_v29 = vld [vmem:[#allocation70_spill] sm:$0xff] }
 0x212   : > { %v2786_v52 = vpop.f32.mrf.mxu0  ;;  %5691 = vmatpush3.bf16.msra.mxu1 %v6344_v33 }
 0x213   : > { %v2979_v59 = vpop.f32.mrf.mxu1  ;;  %v2978_v18 = vadd.f32 %v2977_v60, %v2785_v38  ;;  %v2787_v63 = vadd.f32 %v2786_v52, %v9489_v49  ;;  %v3875_v7 = vmax.f32 %v2976_v23, 0.0  ;;  %v9497_v38 = vld [vmem:[#allocation71_spill] sm:$0xff] }
 0x214   : > { %v3016_v0 = vpop.f32.mrf.mxu0  ;;  %3481 = vmatmul.mubr.bf16.gmra.mxu0 %v9490_v32 }
 0x215   : > { %v3209_v3 = vpop.f32.mrf.mxu1  ;;  %3674 = vmatmul.mubr.bf16.gmra.mxu1 %v9491_v61  ;;  %v3878_v19 = vmax.f32 %v2978_v18, 0.0  ;;  %v2980_v1 = vadd.f32 %v2979_v59, %v2787_v63  ;;  %v3017_v20 = vadd.f32 %v3016_v0, %v8415_v17  ;;  %3490 = vmatprep.mubr.bf16.mxu0 %v9492_v27  ;;  %v9498_v59 = vld [vmem:[#allocation72_spill] sm:$0xff]  ;;  %v9499_v18 = vld [vmem:[#allocation73_spill] sm:$0xff] }
 0x216   : > { %5487 = vmatprep.mubr.msk.bf16.mxu1 %vm2148_vm1, %v9493_v24  ;;  %v3018_v6 = vpop.f32.mrf.mxu0 }
 0x217   : > { %v3211_v53 = vpop.f32.mrf.mxu1  ;;  %v8428_v5 = vpack.c.bf16 %v3878_v19, %v3874_v39  ;;  %v3879_v43 = vmax.f32 %v2980_v1, 0.0  ;;  %v8430_v34 = vadd.f32 %v3209_v3, %v3017_v20  ;;  %v3019_v58 = vadd.f32 %v3018_v6, %v8420_v31 }
 0x218   : > { %v3020_v22 = vpop.f32.mrf.mxu0 }
 0x219   : > { %9494 = vst [vmem:[#allocation79_spill] sm:$0xff] %v8428_v5  ;;  %v3213_v8 = vpop.f32.mrf.mxu1  ;;  %v8433_v48 = vadd.f32 %v3211_v53, %v3019_v58  ;;  %v3021_v16 = vadd.f32 %v3020_v22, %v8415_v17  ;;  %v8439_v30 = vpack.c.bf16 %v3879_v43, %v3875_v7  ;;  %v9500_v53 = vld [vmem:[#allocation77_spill] sm:$0xff]  ;;  %v9501_v43 = vld [vmem:[#allocation78_spill] sm:$0xff]  ;;  %v9519_v5 = vld [vmem:[#allocation108_spill] sm:$0xff] }
 0x21a   : > { %v3022_v62 = vpop.f32.mrf.mxu0 }
 0x21b   : > { %9495 = vst [vmem:[#allocation82_spill] sm:$0xff] %v8439_v30  ;;  %v3215_v54 = vpop.f32.mrf.mxu1  ;;  %v8444_v2 = vadd.f32 %v3213_v8, %v3021_v16  ;;  %v3023_v36 = vadd.f32 %v3022_v62, %v8420_v31  ;;  %v9502_v8 = vld [vmem:[#allocation80_spill] sm:$0xff]  ;;  %v9503_v16 = vld [vmem:[#allocation81_spill] sm:$0xff] }
 0x21c   : > { %v3026_v60 = vpop.f32.mrf.mxu0  ;;  %3491 = vmatmul.mubr.bf16.gmra.mxu0 %v9496_v29 }
 0x21d   : > { %v3219_v23 = vpop.f32.mrf.mxu1  ;;  %3684 = vmatmul.mubr.bf16.gmra.mxu1 %v9497_v38  ;;  %v8449_v4 = vadd.f32 %v3215_v54, %v3023_v36  ;;  %v3027_v52 = vadd.f32 %v3026_v60, %v8415_v17  ;;  %3500 = vmatprep.mubr.bf16.mxu0 %v9498_v59 }
 0x21e   : > { %5488 = vmatprep.mubr.msk.bf16.mxu1 %vm2148_vm1, %v9499_v18  ;;  %v3028_v49 = vpop.f32.mrf.mxu0 }
 0x21f   : > { %v3221_v63 = vpop.f32.mrf.mxu1  ;;  %v8455_v0 = vadd.f32 %v3219_v23, %v3027_v52  ;;  %v3029_v3 = vadd.f32 %v3028_v49, %v8420_v31 }
 0x220   : > { %v3030_v32 = vpop.f32.mrf.mxu0 }
 0x221   : > { %v3223_v61 = vpop.f32.mrf.mxu1  ;;  %v8458_v39 = vadd.f32 %v3221_v63, %v3029_v3  ;;  %v3031_v19 = vadd.f32 %v3030_v32, %v8415_v17  ;;  %v9504_v3 = vld [vmem:[#allocation85_spill] sm:$0xff]  ;;  %v9505_v32 = vld [vmem:[#allocation86_spill] sm:$0xff] }
 0x222   : > { %v3032_v1 = vpop.f32.mrf.mxu0 }
 0x223   : > { %v3225_v20 = vpop.f32.mrf.mxu1  ;;  %v8461_v27 = vadd.f32 %v3223_v61, %v3031_v19  ;;  %v3033_v24 = vadd.f32 %v3032_v1, %v8420_v31  ;;  %v9506_v1 = vld [vmem:[#allocation88_spill] sm:$0xff] }
 0x224   : > { %v3036_v7 = vpop.f32.mrf.mxu0  ;;  %3501 = vmatmul.mubr.bf16.gmra.mxu0 %v9500_v53 }
 0x225   : > { %v3229_v6 = vpop.f32.mrf.mxu1  ;;  %3694 = vmatmul.mubr.bf16.gmra.mxu1 %v9501_v43  ;;  %v8466_v58 = vadd.f32 %v3225_v20, %v3033_v24  ;;  %v3037_v22 = vadd.f32 %v3036_v7, %v8415_v17  ;;  %3510 = vmatprep.mubr.bf16.mxu0 %v9502_v8  ;;  %v9507_v20 = vld [vmem:[#allocation89_spill] sm:$0xff] }
 0x226   : > { %5489 = vmatprep.mubr.msk.bf16.mxu1 %vm2148_vm1, %v9503_v16  ;;  %v3038_v44 = vpop.f32.mrf.mxu0 }
 0x227   : > { %v3231_v62 = vpop.f32.mrf.mxu1  ;;  %v8472_v54 = vadd.f32 %v3229_v6, %v3037_v22  ;;  %v3039_v33 = vadd.f32 %v3038_v44, %v8420_v31 }
 0x228   : > { %v3040_v36 = vpop.f32.mrf.mxu0 }
 0x229   : > { %v3233_v60 = vpop.f32.mrf.mxu1  ;;  %v8475_v23 = vadd.f32 %v3231_v62, %v3039_v33  ;;  %v3041_v29 = vadd.f32 %v3040_v36, %v8415_v17 }
 0x22a   : > { %v3042_v38 = vpop.f32.mrf.mxu0 }
 0x22b   : > { %v3235_v52 = vpop.f32.mrf.mxu1  ;;  %v8478_v59 = vadd.f32 %v3233_v60, %v3041_v29  ;;  %v3043_v18 = vadd.f32 %v3042_v38, %v8420_v31  ;;  %v9508_v38 = vld [vmem:[#allocation93_spill] sm:$0xff] }
 0x22c   : > { %v3046_v49 = vpop.f32.mrf.mxu0  ;;  %3511 = vmatmul.mubr.bf16.gmra.mxu0 %v9504_v3  ;;  %v9511_v3 = vld [vmem:[#allocation97_spill] sm:$0xff] }
 0x22d   : > { %v3239_v63 = vpop.f32.mrf.mxu1  ;;  %3704 = vmatmul.mubr.bf16.gmra.mxu1 %v9505_v32  ;;  %v8483_v61 = vadd.f32 %v3235_v52, %v3043_v18  ;;  %v3047_v19 = vadd.f32 %v3046_v49, %v8415_v17  ;;  %3520 = vmatprep.mubr.bf16.mxu0 %v9506_v1  ;;  %v9509_v52 = vld [vmem:[#allocation94_spill] sm:$0xff] }
 0x22e   : > { %5490 = vmatprep.mubr.msk.bf16.mxu1 %vm2148_vm1, %v9507_v20  ;;  %v3048_v24 = vpop.f32.mrf.mxu0 }
 0x22f   : > { %v3241_v7 = vpop.f32.mrf.mxu1  ;;  %v8489_v6 = vadd.f32 %v3239_v63, %v3047_v19  ;;  %v3049_v53 = vadd.f32 %v3048_v24, %v8420_v31  ;;  %v9510_v63 = vld [vmem:[#allocation96_spill] sm:$0xff] }
 0x230   : > { %v3050_v43 = vpop.f32.mrf.mxu0 }
 0x231   : > { %v3243_v22 = vpop.f32.mrf.mxu1  ;;  %v8492_v8 = vadd.f32 %v3241_v7, %v3049_v53  ;;  %v3051_v16 = vadd.f32 %v3050_v43, %v8415_v17 }
 0x232   : > { %v3052_v44 = vpop.f32.mrf.mxu0 }
 0x233   : > { %v3245_v62 = vpop.f32.mrf.mxu1  ;;  %v8495_v33 = vadd.f32 %v3243_v22, %v3051_v16  ;;  %v3053_v36 = vadd.f32 %v3052_v44, %v8420_v31 }
 0x234   : > { %v3056_v60 = vpop.f32.mrf.mxu0  ;;  %3521 = vmatmul.mubr.bf16.gmra.mxu0 %v9508_v38 }
 0x235   : > { %v3249_v29 = vpop.f32.mrf.mxu1  ;;  %3714 = vmatmul.mubr.bf16.gmra.mxu1 %v9509_v52  ;;  %v8500_v18 = vadd.f32 %v3245_v62, %v3053_v36  ;;  %v3057_v49 = vadd.f32 %v3056_v60, %v8415_v17  ;;  %3530 = vmatprep.mubr.bf16.mxu0 %v9510_v63  ;;  %v9512_v60 = vld [vmem:[#allocation101_spill] sm:$0xff]  ;;  %v9514_v52 = vld [vmem:[#allocation104_spill] sm:$0xff] }
 0x236   : > { %5491 = vmatprep.mubr.msk.bf16.mxu1 %vm2148_vm1, %v9511_v3  ;;  %v3058_v32 = vpop.f32.mrf.mxu0 }
 0x237   : > { %v3251_v19 = vpop.f32.mrf.mxu1  ;;  %v8506_v1 = vadd.f32 %v3249_v29, %v3057_v49  ;;  %v3059_v20 = vadd.f32 %v3058_v32, %v8420_v31  ;;  %v9513_v29 = vld [vmem:[#allocation102_spill] sm:$0xff]  ;;  %v9515_v49 = vld [vmem:[#allocation105_spill] sm:$0xff] }
 0x238   : > { %v3060_v24 = vpop.f32.mrf.mxu0 }
 0x239   : > { %v3253_v7 = vpop.f32.mrf.mxu1  ;;  %v8509_v53 = vadd.f32 %v3251_v19, %v3059_v20  ;;  %v3061_v43 = vadd.f32 %v3060_v24, %v8415_v17 }
 0x23a   : > { %v8512_v22 = vpop.f32.mrf.mxu0 }
 0x23b   : > { %v8514_v16 = vpop.f32.mrf.mxu1  ;;  %v8516_v44 = vadd.f32 %v3253_v7, %v3061_v43 }
 0x23c   : > { %v3066_v62 = vpop.f32.mrf.mxu0  ;;  %3531 = vmatmul.mubr.bf16.gmra.mxu0 %v9512_v60 }
 0x23d   : > { %v3259_v36 = vpop.f32.mrf.mxu1  ;;  %3724 = vmatmul.mubr.bf16.gmra.mxu1 %v9513_v29  ;;  %v3067_v38 = vadd.f32 %v3066_v62, %v8415_v17  ;;  %3540 = vmatprep.mubr.bf16.mxu0 %v9514_v52 }
 0x23e   : > { %5492 = vmatprep.mubr.msk.bf16.mxu1 %vm2148_vm1, %v9515_v49  ;;  %v3068_v63 = vpop.f32.mrf.mxu0 }
 0x23f   : > { %v3261_v3 = vpop.f32.mrf.mxu1  ;;  %v8524_v32 = vadd.f32 %v3259_v36, %v3067_v38  ;;  %v3069_v19 = vadd.f32 %v3068_v63, %v8420_v31  ;;  %v9520_v36 = vld [vmem:[#allocation109_spill] sm:$0xff]  ;;  %v9521_v63 = vld [vmem:[#allocation110_spill] sm:$0xff] }
 0x240   : > { %v3070_v20 = vpop.f32.mrf.mxu0 }
 0x241   : > { %v3263_v24 = vpop.f32.mrf.mxu1  ;;  %v8527_v7 = vadd.f32 %v3261_v3, %v3069_v19  ;;  %v3071_v43 = vadd.f32 %v3070_v20, %v8415_v17  ;;  %v9522_v3 = vld [vmem:[#allocation111_spill] sm:$0xff] }
 0x242   : > { %v8530_v60 = vpop.f32.mrf.mxu0 }
 0x243   : > { %9516 = vst [vmem:[#allocation83_spill] sm:$0xff] %v8527_v7  ;;  %v8532_v62 = vpop.f32.mrf.mxu1  ;;  %v8534_v29 = vadd.f32 %v3263_v24, %v3071_v43  ;;  %v9528_v7 = vld [vmem:[#allocation114_spill] sm:$0xff] }
 0x244   : > { %9517 = vst [vmem:[#allocation9_spill] sm:$0xff] %v8532_v62  ;;  %v3076_v52 = vpop.f32.mrf.mxu0  ;;  %3541 = vmatmul.mubr.bf16.gmra.mxu0 %v9519_v5 }
 0x245   : > { %9518 = vst [vmem:[#allocation10_spill] sm:$0xff] %v8534_v29  ;;  %v3269_v49 = vpop.f32.mrf.mxu1  ;;  %3734 = vmatmul.mubr.bf16.gmra.mxu1 %v9520_v36  ;;  %v3077_v38 = vadd.f32 %v3076_v52, %v8415_v17  ;;  %3550 = vmatprep.mubr.bf16.mxu0 %v9521_v63 }
 0x246   : > { %5493 = vmatprep.mubr.msk.bf16.mxu1 %vm2148_vm1, %v9522_v3  ;;  %v3078_v19 = vpop.f32.mrf.mxu0 }
 0x247   : > { %v3271_v20 = vpop.f32.mrf.mxu1  ;;  %v8542_v30 = vadd.f32 %v3269_v49, %v3077_v38  ;;  %v3079_v24 = vadd.f32 %v3078_v19, %v8420_v31  ;;  %v9529_v49 = vld [vmem:[#allocation115_spill] sm:$0xff] }
 0x248   : > { %v3080_v43 = vpop.f32.mrf.mxu0  ;;  %v9530_v19 = vld [vmem:[#allocation75_spill] sm:$0xff] }
 0x249   : > { %9523 = vst [vmem:[#allocation84_spill] sm:$0xff] %v8542_v30  ;;  %v3273_v40 = vpop.f32.mrf.mxu1  ;;  %v8545_v29 = vadd.f32 %v3271_v20, %v3079_v24  ;;  %v3081_v5 = vadd.f32 %v3080_v43, %v8415_v17 }
 0x24a   : > { %v8548_v36 = vpop.f32.mrf.mxu0 }
 0x24b   : > { %9524 = vst [vmem:[#allocation11_spill] sm:$0xff] %v8545_v29  ;;  %9525 = vst [vmem:[#allocation12_spill] sm:$0xff] %v8548_v36  ;;  %v8550_v52 = vpop.f32.mrf.mxu1  ;;  %v8552_v63 = vadd.f32 %v3273_v40, %v3081_v5  ;;  %v9536_v36 = vld [vmem:[#allocation74_spill] sm:$0xff] }
 0x24c   : > { %9526 = vst [vmem:[#allocation87_spill] sm:$0xff] %v8550_v52  ;;  %v3086_v62 = vpop.f32.mrf.mxu0  ;;  %3551 = vmatmul.mubr.bf16.gmra.mxu0 %v9528_v7 }
 0x24d   : > { %9527 = vst [vmem:[#allocation90_spill] sm:$0xff] %v8552_v63  ;;  %v3279_v3 = vpop.f32.mrf.mxu1  ;;  %3744 = vmatmul.mubr.bf16.gmra.mxu1 %v9529_v49  ;;  %v3087_v38 = vadd.f32 %v3086_v62, %v8415_v17  ;;  %4241 = vmatprep.mubr.bf16.mxu0 %v9530_v19 }
 0x24e   : > { %v3088_v20 = vpop.f32.mrf.mxu0 }
 0x24f   : > { %v3281_v24 = vpop.f32.mrf.mxu1  ;;  %v8558_v29 = vadd.f32 %v3279_v3, %v3087_v38  ;;  %v3089_v43 = vadd.f32 %v3088_v20, %v8420_v31  ;;  %v9537_v38 = vld [vmem:[#allocation6_spill] sm:$0xff] }
 0x250   : > { %v3090_v30 = vpop.f32.mrf.mxu0 }
 0x251   : > { %9531 = vst [vmem:[#allocation91_spill] sm:$0xff] %v8558_v29  ;;  %v3283_v52 = vpop.f32.mrf.mxu1  ;;  %v8561_v40 = vadd.f32 %v3281_v24, %v3089_v43  ;;  %v3091_v5 = vadd.f32 %v3090_v30, %v8415_v17 }
 0x252   : > { %v8564_v63 = vpop.f32.mrf.mxu0 }
 0x253   : > { %9532 = vst [vmem:[#allocation13_spill] sm:$0xff] %v8561_v40  ;;  %9533 = vst [vmem:[#allocation14_spill] sm:$0xff] %v8564_v63  ;;  %v8566_v7 = vpop.f32.mrf.mxu1  ;;  %v8568_v49 = vadd.f32 %v3283_v52, %v3091_v5 }
 0x254   : > { %9534 = vst [vmem:[#allocation92_spill] sm:$0xff] %v8566_v7  ;;  %v3096_v62 = vpop.f32.mrf.mxu0  ;;  %4242 = vmatmul.mubr.bf16.vlgmr.msra.gmra.mxu0 %v9536_v36  ;;  %v9543_v7 = vld [vmem:[#allocation5_spill] sm:$0xff] }
 0x255   : > { %9535 = vst [vmem:[#allocation15_spill] sm:$0xff] %v8568_v49  ;;  %v3289_v19 = vpop.f32.mrf.mxu1  ;;  %v3097_v3 = vadd.f32 %v3096_v62, %v8415_v17  ;;  %4249 = vmatprep.mubr.bf16.mxu0 %v9537_v38 }
 0x256   : > { %v3098_v20 = vpop.f32.mrf.mxu0 }
 0x257   : > { %v3291_v29 = vpop.f32.mrf.mxu1  ;;  %v8573_v24 = vadd.f32 %v3289_v19, %v3097_v3  ;;  %v3099_v30 = vadd.f32 %v3098_v20, %v8420_v31  ;;  %v9544_v3 = vld [vmem:[#allocation7_spill] sm:$0xff] }
 0x258   : > { %v3100_v43 = vpop.f32.mrf.mxu0 }
 0x259   : > { %9538 = vst [vmem:[#allocation16_spill] sm:$0xff] %v8573_v24  ;;  %v3293_v40 = vpop.f32.mrf.mxu1  ;;  %v8576_v63 = vadd.f32 %v3291_v29, %v3099_v30  ;;  %v3101_v52 = vadd.f32 %v3100_v43, %v8415_v17 }
 0x25a   : > { %v8579_v5 = vpop.f32.mrf.mxu0 }
 0x25b   : > { %9539 = vst [vmem:[#allocation95_spill] sm:$0xff] %v8576_v63  ;;  %9540 = vst [vmem:[#allocation98_spill] sm:$0xff] %v8579_v5  ;;  %v8581_v49 = vpop.f32.mrf.mxu1  ;;  %v8583_v36 = vadd.f32 %v3293_v40, %v3101_v52 }
 0x25c   : > { %9541 = vst [vmem:[#allocation99_spill] sm:$0xff] %v8581_v49  ;;  %v3106_v62 = vpop.f32.mrf.mxu0  ;;  %4250 = vmatmul.mubr.bf16.gmra.mxu0 %v9543_v7  ;;  %v9548_v49 = vld [vmem:[#allocation76_spill] sm:$0xff] }
 0x25d   : > { %9542 = vst [vmem:[#allocation17_spill] sm:$0xff] %v8583_v36  ;;  %v3299_v38 = vpop.f32.mrf.mxu1  ;;  %v3107_v19 = vadd.f32 %v3106_v62, %v8415_v17  ;;  %4257 = vmatprep.mubr.bf16.mxu0 %v9544_v3 }
 0x25e   : > { %v3108_v20 = vpop.f32.mrf.mxu0 }
 0x25f   : > { %v3301_v24 = vpop.f32.mrf.mxu1  ;;  %v8588_v29 = vadd.f32 %v3299_v38, %v3107_v19  ;;  %v3109_v30 = vadd.f32 %v3108_v20, %v8420_v31 }
 0x260   : > { %v3110_v43 = vpop.f32.mrf.mxu0 }
 0x261   : > { %9545 = vst [vmem:[#allocation18_spill] sm:$0xff] %v8588_v29  ;;  %v3303_v63 = vpop.f32.mrf.mxu1  ;;  %v8591_v5 = vadd.f32 %v3301_v24, %v3109_v30  ;;  %v3111_v40 = vadd.f32 %v3110_v43, %v8415_v17 }
 0x262   : > { %v8594_v52 = vpop.f32.mrf.mxu0 }
 0x263   : > { %9546 = vst [vmem:[#allocation100_spill] sm:$0xff] %v8591_v5  ;;  %v8596_v36 = vpop.f32.mrf.mxu1  ;;  %v8598_v7 = vadd.f32 %v3303_v63, %v3111_v40 }
 0x264   : > { %v3116_v62 = vpop.f32.mrf.mxu0  ;;  %4258 = vmatmul.mubr.bf16.gmra.mxu0 %v9548_v49 }
 0x265   : > { %9547 = vst [vmem:[#allocation19_spill] sm:$0xff] %v8598_v7  ;;  %v3309_v3 = vpop.f32.mrf.mxu1  ;;  %v3117_v38 = vadd.f32 %v3116_v62, %v8415_v17  ;;  %4265 = vmatprep.mubr.bf16.mxu0 %v8185_v45 }
 0x266   : > { %v3118_v19 = vpop.f32.mrf.mxu0 }
 0x267   : > { %v3311_v20 = vpop.f32.mrf.mxu1  ;;  %v8603_v24 = vadd.f32 %v3309_v3, %v3117_v38  ;;  %v3119_v30 = vadd.f32 %v3118_v19, %v8420_v31 }
 0x268   : > { %v3120_v43 = vpop.f32.mrf.mxu0 }
 0x269   : > { %9549 = vst [vmem:[#allocation20_spill] sm:$0xff] %v8603_v24  ;;  %v3313_v5 = vpop.f32.mrf.mxu1  ;;  %v8606_v29 = vadd.f32 %v3311_v20, %v3119_v30  ;;  %v3121_v63 = vadd.f32 %v3120_v43, %v8415_v17 }
 0x26a   : > { %v8609_v40 = vpop.f32.mrf.mxu0 }
 0x26b   : > { %9550 = vst [vmem:[#allocation103_spill] sm:$0xff] %v8606_v29  ;;  %v8611_v7 = vpop.f32.mrf.mxu1  ;;  %v8613_v49 = vadd.f32 %v3313_v5, %v3121_v63 }
 0x26c   : > { %v3126_v62 = vpop.f32.mrf.mxu0  ;;  %4266 = vmatmul.mubr.bf16.gmra.mxu0 %v8181_v41 }
 0x26d   : > { %9551 = vst [vmem:[#allocation106_spill] sm:$0xff] %v8613_v49  ;;  %v3319_v45 = vpop.f32.mrf.mxu1  ;;  %v3127_v3 = vadd.f32 %v3126_v62, %v8415_v17  ;;  %4273 = vmatprep.mubr.bf16.mxu0 %v8197_v9 }
 0x26e   : > { %v3128_v38 = vpop.f32.mrf.mxu0 }
 0x26f   : > { %v3321_v19 = vpop.f32.mrf.mxu1  ;;  %v8618_v20 = vadd.f32 %v3319_v45, %v3127_v3  ;;  %v3129_v30 = vadd.f32 %v3128_v38, %v8420_v31 }
 0x270   : > { %v3130_v43 = vpop.f32.mrf.mxu0 }
 0x271   : > { %9552 = vst [vmem:[#allocation107_spill] sm:$0xff] %v8618_v20  ;;  %v3323_v29 = vpop.f32.mrf.mxu1  ;;  %v8621_v24 = vadd.f32 %v3321_v19, %v3129_v30  ;;  %v3131_v5 = vadd.f32 %v3130_v43, %v8415_v17 }
 0x272   : > { %v8624_v63 = vpop.f32.mrf.mxu0 }
 0x273   : > { %9553 = vst [vmem:[#allocation21_spill] sm:$0xff] %v8621_v24  ;;  %v8626_v49 = vpop.f32.mrf.mxu1  ;;  %v8628_v41 = vadd.f32 %v3323_v29, %v3131_v5 }
 0x274   : > { %v3136_v62 = vpop.f32.mrf.mxu0  ;;  %4274 = vmatmul.mubr.bf16.gmra.mxu0 %v8193_v28 }
 0x275   : > { %9554 = vst [vmem:[#allocation22_spill] sm:$0xff] %v8628_v41  ;;  %v3329_v9 = vpop.f32.mrf.mxu1  ;;  %v3137_v45 = vadd.f32 %v3136_v62, %v8415_v17  ;;  %4281 = vmatprep.mubr.bf16.mxu0 %v8209_v57 }
 0x276   : > { %v3138_v3 = vpop.f32.mrf.mxu0 }
 0x277   : > { %v3331_v38 = vpop.f32.mrf.mxu1  ;;  %v8633_v19 = vadd.f32 %v3329_v9, %v3137_v45  ;;  %v3139_v30 = vadd.f32 %v3138_v3, %v8420_v31 }
 0x278   : > { %v3140_v43 = vpop.f32.mrf.mxu0 }
 0x279   : > { %9555 = vst [vmem:[#allocation23_spill] sm:$0xff] %v8633_v19  ;;  %v3333_v24 = vpop.f32.mrf.mxu1  ;;  %v8636_v20 = vadd.f32 %v3331_v38, %v3139_v30  ;;  %v3141_v29 = vadd.f32 %v3140_v43, %v8415_v17 }
 0x27a   : > { %v8639_v5 = vpop.f32.mrf.mxu0 }
 0x27b   : > { %9556 = vst [vmem:[#allocation24_spill] sm:$0xff] %v8636_v20  ;;  %v8641_v41 = vpop.f32.mrf.mxu1  ;;  %v8643_v28 = vadd.f32 %v3333_v24, %v3141_v29 }
 0x27c   : > { %v3146_v62 = vpop.f32.mrf.mxu0  ;;  %4282 = vmatmul.mubr.bf16.gmra.mxu0 %v8205_v35 }
 0x27d   : > { %9557 = vst [vmem:[#allocation112_spill] sm:$0xff] %v8643_v28  ;;  %v3339_v57 = vpop.f32.mrf.mxu1  ;;  %v3147_v9 = vadd.f32 %v3146_v62, %v8415_v17  ;;  %4289 = vmatprep.mubr.bf16.mxu0 %v8222_v51 }
 0x27e   : > { %v3148_v45 = vpop.f32.mrf.mxu0 }
 0x27f   : > { %v3341_v3 = vpop.f32.mrf.mxu1  ;;  %v8648_v38 = vadd.f32 %v3339_v57, %v3147_v9  ;;  %v3149_v30 = vadd.f32 %v3148_v45, %v8420_v31 }
 0x280   : > { %v3150_v43 = vpop.f32.mrf.mxu0 }
 0x281   : > { %9558 = vst [vmem:[#allocation113_spill] sm:$0xff] %v8648_v38  ;;  %v3343_v20 = vpop.f32.mrf.mxu1  ;;  %v8651_v19 = vadd.f32 %v3341_v3, %v3149_v30  ;;  %v3151_v24 = vadd.f32 %v3150_v43, %v8415_v17 }
 0x282   : > { %v8654_v29 = vpop.f32.mrf.mxu0 }
 0x283   : > { %9559 = vst [vmem:[#allocation25_spill] sm:$0xff] %v8651_v19  ;;  %v8656_v28 = vpop.f32.mrf.mxu1  ;;  %v8658_v35 = vadd.f32 %v3343_v20, %v3151_v24 }
 0x284   : > { %v3156_v62 = vpop.f32.mrf.mxu0  ;;  %4290 = vmatmul.mubr.bf16.gmra.mxu0 %v8218_v11 }
 0x285   : > { %9560 = vst [vmem:[#allocation26_spill] sm:$0xff] %v8658_v35  ;;  %v3349_v51 = vpop.f32.mrf.mxu1  ;;  %v3157_v57 = vadd.f32 %v3156_v62, %v8415_v17  ;;  %4297 = vmatprep.mubr.bf16.mxu0 %v8259_v47 }
 0x286   : > { %v3158_v9 = vpop.f32.mrf.mxu0 }
 0x287   : > { %v3351_v45 = vpop.f32.mrf.mxu1  ;;  %v8663_v3 = vadd.f32 %v3349_v51, %v3157_v57  ;;  %v3159_v30 = vadd.f32 %v3158_v9, %v8420_v31 }
 0x288   : > { %v3160_v43 = vpop.f32.mrf.mxu0 }
 0x289   : > { %9561 = vst [vmem:[#allocation27_spill] sm:$0xff] %v8663_v3  ;;  %v3353_v19 = vpop.f32.mrf.mxu1  ;;  %v8666_v38 = vadd.f32 %v3351_v45, %v3159_v30  ;;  %v3161_v20 = vadd.f32 %v3160_v43, %v8415_v17 }
 0x28a   : > { %v8669_v24 = vpop.f32.mrf.mxu0 }
 0x28b   : > { %9562 = vst [vmem:[#allocation28_spill] sm:$0xff] %v8666_v38  ;;  %v8671_v35 = vpop.f32.mrf.mxu1  ;;  %v8673_v11 = vadd.f32 %v3353_v19, %v3161_v20 }
 0x28c   : > { %v3166_v62 = vpop.f32.mrf.mxu0  ;;  %4298 = vmatmul.mubr.bf16.gmra.mxu0 %v8249_v25 }
 0x28d   : > { %9563 = vst [vmem:[#allocation29_spill] sm:$0xff] %v8673_v11  ;;  %v3359_v47 = vpop.f32.mrf.mxu1  ;;  %v3167_v51 = vadd.f32 %v3166_v62, %v8415_v17  ;;  %4305 = vmatprep.mubr.bf16.mxu0 %v8293_v10 }
 0x28e   : > { %v3168_v57 = vpop.f32.mrf.mxu0 }
 0x28f   : > { %v3361_v9 = vpop.f32.mrf.mxu1  ;;  %v8678_v45 = vadd.f32 %v3359_v47, %v3167_v51  ;;  %v3169_v30 = vadd.f32 %v3168_v57, %v8420_v31 }
 0x290   : > { %v3170_v43 = vpop.f32.mrf.mxu0 }
 0x291   : > { %9564 = vst [vmem:[#allocation30_spill] sm:$0xff] %v8678_v45  ;;  %v3363_v38 = vpop.f32.mrf.mxu1  ;;  %v8681_v3 = vadd.f32 %v3361_v9, %v3169_v30  ;;  %v3171_v19 = vadd.f32 %v3170_v43, %v8415_v17 }
 0x292   : > { %v8684_v20 = vpop.f32.mrf.mxu0 }
 0x293   : > { %9565 = vst [vmem:[#allocation31_spill] sm:$0xff] %v8681_v3  ;;  %9566 = vst [vmem:[#allocation32_spill] sm:$0xff] %v8684_v20  ;;  %v8686_v11 = vpop.f32.mrf.mxu1  ;;  %v8688_v25 = vadd.f32 %v3363_v38, %v3171_v19 }
 0x294   : > { %9567 = vst [vmem:[#allocation116_spill] sm:$0xff] %v8686_v11  ;;  %v3402_v62 = vpop.f32.mrf.mxu0  ;;  %4306 = vmatmul.mubr.bf16.gmra.mxu0 %v8286_v26 }
 0x295   : > { %9568 = vst [vmem:[#allocation33_spill] sm:$0xff] %v8688_v25  ;;  %v3595_v10 = vpop.f32.mrf.mxu1  ;;  %v3403_v47 = vadd.f32 %v3402_v62, %v8430_v34  ;;  %4313 = vmatprep.mubr.bf16.mxu0 %v8324_v55 }
 0x296   : > { %v3404_v51 = vpop.f32.mrf.mxu0 }
 0x297   : > { %v3597_v57 = vpop.f32.mrf.mxu1  ;;  %v3405_v9 = vadd.f32 %v3404_v51, %v8433_v48  ;;  %v3596_v43 = vadd.f32 %v3595_v10, %v3403_v47 }
 0x298   : > { %v3406_v30 = vpop.f32.mrf.mxu0 }
 0x299   : > { %v3599_v17 = vpop.f32.mrf.mxu1  ;;  %v3407_v3 = vadd.f32 %v3406_v30, %v8444_v2  ;;  %v3598_v19 = vadd.f32 %v3597_v57, %v3405_v9  ;;  %v3756_v55 = vmax.f32 %v3596_v43, 0.0 }
 0x29a   : > { %v3408_v11 = vpop.f32.mrf.mxu0 }
 0x29b   : > { %v3601_v38 = vpop.f32.mrf.mxu1  ;;  %v3600_v25 = vadd.f32 %v3599_v17, %v3407_v3  ;;  %v3409_v45 = vadd.f32 %v3408_v11, %v8449_v4  ;;  %v3757_v2 = vmax.f32 %v3598_v19, 0.0 }
 0x29c   : > { %v3412_v26 = vpop.f32.mrf.mxu0  ;;  %4314 = vmatmul.mubr.bf16.gmra.mxu0 %v8311_v12 }
 0x29d   : > { %v3605_v20 = vpop.f32.mrf.mxu1  ;;  %v3760_v34 = vmax.f32 %v3600_v25, 0.0  ;;  %v3602_v62 = vadd.f32 %v3601_v38, %v3409_v45  ;;  %v3413_v48 = vadd.f32 %v3412_v26, %v8455_v0  ;;  %4321 = vmatprep.mubr.bf16.mxu0 %v8346_v21 }
 0x29e   : > { %v3414_v10 = vpop.f32.mrf.mxu0 }
 0x29f   : > { %v3607_v47 = vpop.f32.mrf.mxu1  ;;  %v3884_v51 = vpack.c.bf16 %v3760_v34, %v3756_v55  ;;  %v3761_v30 = vmax.f32 %v3602_v62, 0.0  ;;  %v3415_v3 = vadd.f32 %v3414_v10, %v8458_v39  ;;  %v3606_v11 = vadd.f32 %v3605_v20, %v3413_v48 }
 0x2a0   : > { %v3416_v57 = vpop.f32.mrf.mxu0 }
 0x2a1   : > { %v3609_v4 = vpop.f32.mrf.mxu1  ;;  %v3417_v9 = vadd.f32 %v3416_v57, %v8461_v27  ;;  %v3885_v12 = vpack.c.bf16 %v3761_v30, %v3757_v2  ;;  %v3608_v45 = vadd.f32 %v3607_v47, %v3415_v3  ;;  %v3764_v19 = vmax.f32 %v3606_v11, 0.0 }
 0x2a2   : > { %v3418_v17 = vpop.f32.mrf.mxu0 }
 0x2a3   : > { %v3611_v25 = vpop.f32.mrf.mxu1  ;;  %v3610_v43 = vadd.f32 %v3609_v4, %v3417_v9  ;;  %v3419_v0 = vadd.f32 %v3418_v17, %v8466_v58  ;;  %4402 = vmatprep.mubr.bf16.mxu1 %v3885_v12  ;;  %v3765_v34 = vmax.f32 %v3608_v45, 0.0 }
 0x2a4   : > { %v3422_v21 = vpop.f32.mrf.mxu0  ;;  %4322 = vmatmul.mubr.bf16.gmra.mxu0 %v8342_v50  ;;  %4403 = vmatmul.mubr.bf16.vlgmr.msra.gmra.mxu1 %v3884_v51 }
 0x2a5   : > { %v3615_v38 = vpop.f32.mrf.mxu1  ;;  %v3768_v39 = vmax.f32 %v3610_v43, 0.0  ;;  %v3612_v26 = vadd.f32 %v3611_v25, %v3419_v0  ;;  %v3423_v20 = vadd.f32 %v3422_v21, %v8472_v54  ;;  %4329 = vmatprep.mubr.bf16.mxu0 %v8365_v46 }
 0x2a6   : > { %v3424_v27 = vpop.f32.mrf.mxu0 }
 0x2a7   : > { %v3617_v55 = vpop.f32.mrf.mxu1  ;;  %v3888_v62 = vpack.c.bf16 %v3768_v39, %v3764_v19  ;;  %v3769_v48 = vmax.f32 %v3612_v26, 0.0  ;;  %v3425_v58 = vadd.f32 %v3424_v27, %v8475_v23  ;;  %v3616_v2 = vadd.f32 %v3615_v38, %v3423_v20 }
 0x2a8   : > { %v3426_v10 = vpop.f32.mrf.mxu0 }
 0x2a9   : > { %v3619_v47 = vpop.f32.mrf.mxu1  ;;  %v3427_v50 = vadd.f32 %v3426_v10, %v8478_v59  ;;  %v3889_v51 = vpack.c.bf16 %v3769_v48, %v3765_v34  ;;  %v3618_v57 = vadd.f32 %v3617_v55, %v3425_v58  ;;  %v3772_v9 = vmax.f32 %v3616_v2, 0.0 }
 0x2aa   : > { %v3428_v30 = vpop.f32.mrf.mxu0 }
 0x2ab   : > { %v3621_v3 = vpop.f32.mrf.mxu1  ;;  %v3620_v4 = vadd.f32 %v3619_v47, %v3427_v50  ;;  %v3429_v54 = vadd.f32 %v3428_v30, %v8483_v61  ;;  %4410 = vmatprep.mubr.bf16.mxu1 %v3889_v51  ;;  %v3773_v45 = vmax.f32 %v3618_v57, 0.0 }
 0x2ac   : > { %v3432_v46 = vpop.f32.mrf.mxu0  ;;  %4330 = vmatmul.mubr.bf16.gmra.mxu0 %v8355_v13  ;;  %4411 = vmatmul.mubr.bf16.gmra.mxu1 %v3888_v62 }
 0x2ad   : > { %v3625_v11 = vpop.f32.mrf.mxu1  ;;  %v3776_v23 = vmax.f32 %v3620_v4, 0.0  ;;  %v3622_v12 = vadd.f32 %v3621_v3, %v3429_v54  ;;  %v3433_v17 = vadd.f32 %v3432_v46, %v8489_v6  ;;  %4337 = vmatprep.mubr.bf16.mxu0 %v8378_v42  ;;  %v3063_v42 = vadd.f32 %v8512_v22, %v8420_v31 }
 0x2ae   : > { %v3434_v59 = vpop.f32.mrf.mxu0 }
 0x2af   : > { %v3627_v25 = vpop.f32.mrf.mxu1  ;;  %v3892_v43 = vpack.c.bf16 %v3776_v23, %v3772_v9  ;;  %v3777_v0 = vmax.f32 %v3622_v12, 0.0  ;;  %v3435_v61 = vadd.f32 %v3434_v59, %v8492_v8  ;;  %v3626_v19 = vadd.f32 %v3625_v11, %v3433_v17 }
 0x2b0   : > { %v3436_v21 = vpop.f32.mrf.mxu0  ;;  %v3256_v3 = vadd.f32 %v8514_v16, %v3063_v42  ;;  %v3073_v23 = vadd.f32 %v8530_v60, %v8420_v31 }
 0x2b1   : > { %v3629_v38 = vpop.f32.mrf.mxu1  ;;  %v3437_v13 = vadd.f32 %v3436_v21, %v8495_v33  ;;  %v3893_v39 = vpack.c.bf16 %v3777_v0, %v3773_v45  ;;  %v3628_v27 = vadd.f32 %v3627_v25, %v3435_v61  ;;  %v3780_v8 = vmax.f32 %v3626_v19, 0.0  ;;  %v9569_v21 = vld [vmem:[#allocation83_spill] sm:$0xff] }
 0x2b2   : > { %v3438_v26 = vpop.f32.mrf.mxu0 }
 0x2b3   : > { %v3631_v20 = vpop.f32.mrf.mxu1  ;;  %v3630_v55 = vadd.f32 %v3629_v38, %v3437_v13  ;;  %v3439_v6 = vadd.f32 %v3438_v26, %v8500_v18  ;;  %4418 = vmatprep.mubr.bf16.mxu1 %v3893_v39  ;;  %v6345_v18 = vld [vmem:[%s9184_s5 + $0x38] sm:$0xff]   ;;  %v3781_v2 = vmax.f32 %v3628_v27, 0.0  ;;  %v9570_v13 = vld [vmem:[#allocation9_spill] sm:$0xff]  ;;  %v9571_v26 = vld [vmem:[#allocation10_spill] sm:$0xff] }
 0x2b4   : > { %v3442_v34 = vpop.f32.mrf.mxu0  ;;  %4338 = vmatmul.mubr.bf16.gmra.mxu0 %v8374_v15  ;;  %4419 = vmatmul.mubr.bf16.gmra.mxu1 %v3892_v43  ;;  %v3266_v39 = vadd.f32 %v9570_v13, %v3073_v23  ;;  %v9578_v23 = vld [vmem:[#allocation90_spill] sm:$0xff]  ;;  %v9581_v13 = vld [vmem:[#allocation91_spill] sm:$0xff] }
 0x2b5   : > { %v3635_v62 = vpop.f32.mrf.mxu1  ;;  %v3784_v48 = vmax.f32 %v3630_v55, 0.0  ;;  %v3632_v58 = vadd.f32 %v3631_v20, %v3439_v6  ;;  %v3443_v33 = vadd.f32 %v3442_v34, %v8506_v1  ;;  %4345 = vmatprep.mubr.bf16.mxu0 %v8397_v56  ;;  %5832 = vmatprep.subr.bf16.mxu0 %v6345_v18  ;;  %v9572_v34 = vld [vmem:[#allocation12_spill] sm:$0xff] }
 0x2b6   : > { %v3444_v10 = vpop.f32.mrf.mxu0  ;;  %5833 = vmatpush3.bf16.msra.mxu0 %v6345_v18 }
 0x2b7   : > { %v3637_v47 = vpop.f32.mrf.mxu1  ;;  %v3896_v22 = vpack.c.bf16 %v3784_v48, %v3780_v8  ;;  %v3785_v50 = vmax.f32 %v3632_v58, 0.0  ;;  %v3445_v51 = vadd.f32 %v3444_v10, %v8509_v53  ;;  %v3636_v1 = vadd.f32 %v3635_v62, %v3443_v33  ;;  %v9573_v58 = vld [vmem:[#allocation8_spill] sm:$0xff] }
 0x2b8   : > { %v3446_v15 = vpop.f32.mrf.mxu0  ;;  %v3083_v62 = vadd.f32 %v9572_v34, %v8420_v31  ;;  %v9583_v34 = vld [vmem:[#allocation92_spill] sm:$0xff] }
 0x2b9   : > { %v3639_v30 = vpop.f32.mrf.mxu1  ;;  %v3447_v56 = vadd.f32 %v3446_v15, %v8516_v44  ;;  %v3897_v57 = vpack.c.bf16 %v3785_v50, %v3781_v2  ;;  %v3638_v46 = vadd.f32 %v3637_v47, %v3445_v51  ;;  %v3788_v17 = vmax.f32 %v3636_v1, 0.0  ;;  %v9574_v47 = vld [vmem:[#allocation84_spill] sm:$0xff]  ;;  %v6346_v50 = vld [vmem:[%s9184_s5 + $0x30] sm:$0xff]  }
 0x2ba   : > { %v3448_v4 = vpop.f32.mrf.mxu0  ;;  %5834 = vmatprep.subr.bf16.mxu0 %v6346_v50 }
 0x2bb   : > { %v3641_v54 = vpop.f32.mrf.mxu1  ;;  %v3640_v11 = vadd.f32 %v3639_v30, %v3447_v56  ;;  %v3449_v9 = vadd.f32 %v3448_v4, %v3256_v3  ;;  %4426 = vmatprep.mubr.bf16.mxu1 %v3897_v57  ;;  %v3789_v43 = vmax.f32 %v3638_v46, 0.0  ;;  %v9576_v56 = vld [vmem:[#allocation11_spill] sm:$0xff]  ;;  %5835 = vmatpush3.bf16.msra.mxu0 %v6346_v50  ;;  %v9585_v50 = vld [vmem:[#allocation98_spill] sm:$0xff] }
 0x2bc   : > { %v3452_v53 = vpop.f32.mrf.mxu0  ;;  %4346 = vmatmul.mubr.bf16.gmra.mxu0 %v8387_v14  ;;  %4427 = vmatmul.mubr.bf16.gmra.mxu1 %v3896_v22  ;;  %v9575_v22 = vld [vmem:[#allocation82_spill] sm:$0xff]  ;;  %v9577_v46 = vld [vmem:[#allocation87_spill] sm:$0xff] }
 0x2bd   : > { %v3645_v12 = vpop.f32.mrf.mxu1  ;;  %v3792_v16 = vmax.f32 %v3640_v11, 0.0  ;;  %v3642_v59 = vadd.f32 %v3641_v54, %v3449_v9  ;;  %v3453_v44 = vadd.f32 %v3452_v53, %v8524_v32  ;;  %4353 = vmatprep.mubr.bf16.mxu0 %v8417_v37  ;;  %v3276_v11 = vadd.f32 %v9577_v46, %v3083_v62 }
 0x2be   : > { %v3454_v25 = vpop.f32.mrf.mxu0 }
 0x2bf   : > { %v3647_v45 = vpop.f32.mrf.mxu1  ;;  %v3900_v0 = vpack.c.bf16 %v3792_v16, %v3788_v17  ;;  %v3793_v61 = vmax.f32 %v3642_v59, 0.0  ;;  %v3455_v38 = vadd.f32 %v3454_v25, %v9569_v21  ;;  %v3646_v14 = vadd.f32 %v3645_v12, %v3453_v44  ;;  %v9580_v21 = vld [vmem:[#allocation79_spill] sm:$0xff] }
 0x2c0   : > { %v3456_v60 = vpop.f32.mrf.mxu0 }
 0x2c1   : > { %v3649_v19 = vpop.f32.mrf.mxu1  ;;  %v3457_v20 = vadd.f32 %v3456_v60, %v9571_v26  ;;  %v3901_v27 = vpack.c.bf16 %v3793_v61, %v3789_v43  ;;  %v3648_v32 = vadd.f32 %v3647_v45, %v3455_v38  ;;  %v3796_v33 = vmax.f32 %v3646_v14, 0.0  ;;  %v9579_v45 = vld [vmem:[#allocation14_spill] sm:$0xff] }
 0x2c2   : > { %v3458_v55 = vpop.f32.mrf.mxu0  ;;  %v3093_v43 = vadd.f32 %v9579_v45, %v8420_v31 }
 0x2c3   : > { %v3651_v6 = vpop.f32.mrf.mxu1  ;;  %v3650_v42 = vadd.f32 %v3649_v19, %v3457_v20  ;;  %v3459_v37 = vadd.f32 %v3458_v55, %v3266_v39  ;;  %4434 = vmatprep.mubr.bf16.mxu1 %v3901_v27  ;;  %v3797_v30 = vmax.f32 %v3648_v32, 0.0 }
 0x2c4   : > { %v3462_v8 = vpop.f32.mrf.mxu0  ;;  %4354 = vmatmul.mubr.bf16.gmra.mxu0 %v9573_v58  ;;  %4435 = vmatmul.mubr.bf16.gmra.mxu1 %v3900_v0  ;;  %v3286_v62 = vadd.f32 %v9583_v34, %v3093_v43  ;;  %v9589_v43 = vld [vmem:[#allocation17_spill] sm:$0xff] }
 0x2c5   : > { %v3655_v48 = vpop.f32.mrf.mxu1  ;;  %v3800_v18 = vmax.f32 %v3650_v42, 0.0  ;;  %v3652_v10 = vadd.f32 %v3651_v6, %v3459_v37  ;;  %v3463_v2 = vadd.f32 %v3462_v8, %v9574_v47  ;;  %4361 = vmatprep.mubr.bf16.mxu0 %v9575_v22  ;;  %v9582_v6 = vld [vmem:[#allocation13_spill] sm:$0xff] }
 0x2c6   : > { %v3464_v51 = vpop.f32.mrf.mxu0 }
 0x2c7   : > { %v3657_v15 = vpop.f32.mrf.mxu1  ;;  %v3904_v3 = vpack.c.bf16 %v3800_v18, %v3796_v33  ;;  %v3801_v1 = vmax.f32 %v3652_v10, 0.0  ;;  %v3465_v57 = vadd.f32 %v3464_v51, %v9576_v56  ;;  %v3656_v9 = vadd.f32 %v3655_v48, %v3463_v2  ;;  %v9584_v48 = vld [vmem:[#allocation15_spill] sm:$0xff] }
 0x2c8   : > { %v3466_v4 = vpop.f32.mrf.mxu0  ;;  %v3103_v51 = vadd.f32 %v9585_v50, %v8420_v31 }
 0x2c9   : > { %v3659_v54 = vpop.f32.mrf.mxu1  ;;  %v3467_v53 = vadd.f32 %v3466_v4, %v9578_v23  ;;  %v3905_v12 = vpack.c.bf16 %v3801_v1, %v3797_v30  ;;  %v3658_v59 = vadd.f32 %v3657_v15, %v3465_v57  ;;  %v3804_v38 = vmax.f32 %v3656_v9, 0.0  ;;  %v9586_v57 = vld [vmem:[#allocation16_spill] sm:$0xff] }
 0x2ca   : > { %v3468_v17 = vpop.f32.mrf.mxu0 }
 0x2cb   : > { %v3661_v16 = vpop.f32.mrf.mxu1  ;;  %v3660_v44 = vadd.f32 %v3659_v54, %v3467_v53  ;;  %v3469_v25 = vadd.f32 %v3468_v17, %v3276_v11  ;;  %4442 = vmatprep.mubr.bf16.mxu1 %v3905_v12  ;;  %v3805_v20 = vmax.f32 %v3658_v59, 0.0  ;;  %v6347_v54 = vld [vmem:[%s9184_s5 + $0x28] sm:$0xff]   ;;  %v9587_v12 = vld [vmem:[#allocation95_spill] sm:$0xff] }
 0x2cc   : > { %v3472_v0 = vpop.f32.mrf.mxu0  ;;  %4362 = vmatmul.mubr.bf16.gmra.mxu0 %v9580_v21  ;;  %4443 = vmatmul.mubr.bf16.gmra.mxu1 %v3904_v3 }
 0x2cd   : > { %v3665_v61 = vpop.f32.mrf.mxu1  ;;  %v3808_v60 = vmax.f32 %v3660_v44, 0.0  ;;  %v3662_v19 = vadd.f32 %v3661_v16, %v3469_v25  ;;  %v3473_v39 = vadd.f32 %v3472_v0, %v9581_v13  ;;  %5836 = vmatprep.subr.bf16.mxu0 %v6347_v54  ;;  %v9588_v44 = vld [vmem:[#allocation99_spill] sm:$0xff] }
 0x2ce   : > { %v3474_v14 = vpop.f32.mrf.mxu0  ;;  %5837 = vmatpush3.bf16.msra.mxu0 %v6347_v54  ;;  %v3296_v25 = vadd.f32 %v9588_v44, %v3103_v51 }
 0x2cf   : > { %v3667_v26 = vpop.f32.mrf.mxu1  ;;  %v3908_v27 = vpack.c.bf16 %v3808_v60, %v3804_v38  ;;  %v3809_v55 = vmax.f32 %v3662_v19, 0.0  ;;  %v3475_v32 = vadd.f32 %v3474_v14, %v9582_v6  ;;  %v3666_v8 = vadd.f32 %v3665_v61, %v3473_v39  ;;  %v9590_v6 = vld [vmem:[#allocation18_spill] sm:$0xff] }
 0x2d0   : > { %v3476_v42 = vpop.f32.mrf.mxu0  ;;  %v3113_v39 = vadd.f32 %v8594_v52, %v8420_v31 }
 0x2d1   : > { %v3669_v37 = vpop.f32.mrf.mxu1  ;;  %v3477_v58 = vadd.f32 %v3476_v42, %v9584_v48  ;;  %v3909_v33 = vpack.c.bf16 %v3809_v55, %v3805_v20  ;;  %v3668_v47 = vadd.f32 %v3667_v26, %v3475_v32  ;;  %v3812_v3 = vmax.f32 %v3666_v8, 0.0  ;;  %v9591_v48 = vld [vmem:[#allocation100_spill] sm:$0xff] }
 0x2d2   : > { %v3478_v18 = vpop.f32.mrf.mxu0 }
 0x2d3   : > { %v3671_v10 = vpop.f32.mrf.mxu1  ;;  %v3670_v2 = vadd.f32 %v3669_v37, %v3477_v58  ;;  %v3479_v22 = vadd.f32 %v3478_v18, %v3286_v62  ;;  %4450 = vmatprep.mubr.bf16.mxu1 %v3909_v33  ;;  %v3813_v9 = vmax.f32 %v3668_v47, 0.0  ;;  %v9592_v47 = vld [vmem:[#allocation19_spill] sm:$0xff] }
 0x2d4   : > { %v3482_v15 = vpop.f32.mrf.mxu0  ;;  %4451 = vmatmul.mubr.bf16.gmra.mxu1 %v3908_v27 }
 0x2d5   : > { %v3675_v30 = vpop.f32.mrf.mxu1  ;;  %v3816_v1 = vmax.f32 %v3670_v2, 0.0  ;;  %v3672_v56 = vadd.f32 %v3671_v10, %v3479_v22  ;;  %v3483_v4 = vadd.f32 %v3482_v15, %v9586_v57  ;;  %v3306_v10 = vadd.f32 %v8596_v36, %v3113_v39  ;;  %v9593_v36 = vld [vmem:[#allocation20_spill] sm:$0xff] }
 0x2d6   : > { %v3484_v46 = vpop.f32.mrf.mxu0 }
 0x2d7   : > { %v3677_v11 = vpop.f32.mrf.mxu1  ;;  %v3912_v23 = vpack.c.bf16 %v3816_v1, %v3812_v3  ;;  %v3817_v53 = vmax.f32 %v3672_v56, 0.0  ;;  %v3485_v17 = vadd.f32 %v3484_v46, %v9587_v12  ;;  %v3676_v45 = vadd.f32 %v3675_v30, %v3483_v4 }
 0x2d8   : > { %v3486_v16 = vpop.f32.mrf.mxu0  ;;  %v3123_v1 = vadd.f32 %v8609_v40, %v8420_v31 }
 0x2d9   : > { %v3679_v59 = vpop.f32.mrf.mxu1  ;;  %v3487_v0 = vadd.f32 %v3486_v16, %v9589_v43  ;;  %v3913_v61 = vpack.c.bf16 %v3817_v53, %v3813_v9  ;;  %v3678_v60 = vadd.f32 %v3677_v11, %v3485_v17  ;;  %v3820_v20 = vmax.f32 %v3676_v45, 0.0  ;;  %v6348_v9 = vld [vmem:[%s9184_s5 + $0x20] sm:$0xff]  }
 0x2da   : > { %v3488_v21 = vpop.f32.mrf.mxu0  ;;  %5838 = vmatprep.subr.bf16.mxu0 %v6348_v9  ;;  %v3316_v45 = vadd.f32 %v8611_v7, %v3123_v1 }
 0x2db   : > { %v3681_v38 = vpop.f32.mrf.mxu1  ;;  %v3680_v19 = vadd.f32 %v3679_v59, %v3487_v0  ;;  %v3489_v13 = vadd.f32 %v3488_v21, %v3296_v25  ;;  %4458 = vmatprep.mubr.bf16.mxu1 %v3913_v61  ;;  %v3821_v34 = vmax.f32 %v3678_v60, 0.0  ;;  %v9594_v59 = vld [vmem:[#allocation103_spill] sm:$0xff]  ;;  %5839 = vmatpush3.bf16.msra.mxu0 %v6348_v9  ;;  %v9595_v0 = vld [vmem:[#allocation106_spill] sm:$0xff] }
 0x2dc   : > { %v3492_v14 = vpop.f32.mrf.mxu0  ;;  %4459 = vmatmul.mubr.bf16.gmra.mxu1 %v3912_v23 }
 0x2dd   : > { %v3685_v26 = vpop.f32.mrf.mxu1  ;;  %v3824_v27 = vmax.f32 %v3680_v19, 0.0  ;;  %v3682_v55 = vadd.f32 %v3681_v38, %v3489_v13  ;;  %v3493_v32 = vadd.f32 %v3492_v14, %v9590_v6  ;;  %v6349_v38 = vld [vmem:[%s9184_s5 + $0x18] sm:$0xff]  }
 0x2de   : > { %v3494_v42 = vpop.f32.mrf.mxu0  ;;  %5840 = vmatprep.subr.bf16.mxu0 %v6349_v38 }
 0x2df   : > { %v3687_v37 = vpop.f32.mrf.mxu1  ;;  %v3916_v62 = vpack.c.bf16 %v3824_v27, %v3820_v20  ;;  %v3825_v8 = vmax.f32 %v3682_v55, 0.0  ;;  %v3495_v58 = vadd.f32 %v3494_v42, %v9591_v48  ;;  %v3686_v52 = vadd.f32 %v3685_v26, %v3493_v32  ;;  %5841 = vmatpush3.bf16.msra.mxu0 %v6349_v38  ;;  %v9596_v32 = vld [vmem:[#allocation107_spill] sm:$0xff] }
 0x2e0   : > { %v3496_v33 = vpop.f32.mrf.mxu0  ;;  %v3133_v26 = vadd.f32 %v8624_v63, %v8420_v31 }
 0x2e1   : > { %v3689_v18 = vpop.f32.mrf.mxu1  ;;  %v3497_v2 = vadd.f32 %v3496_v33, %v9592_v47  ;;  %v3917_v22 = vpack.c.bf16 %v3825_v8, %v3821_v34  ;;  %v3688_v15 = vadd.f32 %v3687_v37, %v3495_v58  ;;  %v3828_v4 = vmax.f32 %v3686_v52, 0.0  ;;  %v6350_v37 = vld [vmem:[%s9184_s5 + $0x10] sm:$0xff]   ;;  %v9597_v33 = vld [vmem:[#allocation21_spill] sm:$0xff] }
 0x2e2   : > { %v3498_v50 = vpop.f32.mrf.mxu0  ;;  %5842 = vmatprep.subr.bf16.mxu0 %v6350_v37  ;;  %v3326_v52 = vadd.f32 %v8626_v49, %v3133_v26 }
 0x2e3   : > { %v3691_v51 = vpop.f32.mrf.mxu1  ;;  %v3690_v30 = vadd.f32 %v3689_v18, %v3497_v2  ;;  %v3499_v3 = vadd.f32 %v3498_v50, %v3306_v10  ;;  %4466 = vmatprep.mubr.bf16.mxu1 %v3917_v22  ;;  %v3829_v12 = vmax.f32 %v3688_v15, 0.0  ;;  %5843 = vmatpush3.bf16.msra.mxu0 %v6350_v37  ;;  %v9598_v2 = vld [vmem:[#allocation22_spill] sm:$0xff] }
 0x2e4   : > { %v3502_v56 = vpop.f32.mrf.mxu0  ;;  %4467 = vmatmul.mubr.bf16.gmra.mxu1 %v3916_v62 }
 0x2e5   : > { %v3695_v57 = vpop.f32.mrf.mxu1  ;;  %v3832_v54 = vmax.f32 %v3690_v30, 0.0  ;;  %v3692_v46 = vadd.f32 %v3691_v51, %v3499_v3  ;;  %v3503_v11 = vadd.f32 %v3502_v56, %v9593_v36  ;;  %v6351_v51 = vld [vmem:[%s9184_s5 + $0x8] sm:$0xff]  }
 0x2e6   : > { %v3504_v23 = vpop.f32.mrf.mxu0  ;;  %5844 = vmatprep.subr.bf16.mxu0 %v6351_v51 }
 0x2e7   : > { %v3697_v53 = vpop.f32.mrf.mxu1  ;;  %v3920_v17 = vpack.c.bf16 %v3832_v54, %v3828_v4  ;;  %v3833_v16 = vmax.f32 %v3692_v46, 0.0  ;;  %v3505_v44 = vadd.f32 %v3504_v23, %v9594_v59  ;;  %v3696_v43 = vadd.f32 %v3695_v57, %v3503_v11  ;;  %5845 = vmatpush3.bf16.msra.mxu0 %v6351_v51  ;;  %v9599_v11 = vld [vmem:[#allocation23_spill] sm:$0xff]  ;;  %v6352_v23 = vld [vmem:[%s9184_s5] sm:$0xff]  }
 0x2e8   : > { %v3506_v40 = vpop.f32.mrf.mxu0  ;;  %v3143_v57 = vadd.f32 %v8639_v5, %v8420_v31  ;;  %5846 = vmatprep.subr.bf16.mxu0 %v6352_v23 }
 0x2e9   : > { %v3699_v25 = vpop.f32.mrf.mxu1  ;;  %v3507_v61 = vadd.f32 %v3506_v40, %v9595_v0  ;;  %v3921_v21 = vpack.c.bf16 %v3833_v16, %v3829_v12  ;;  %v3698_v13 = vadd.f32 %v3697_v53, %v3505_v44  ;;  %v3836_v27 = vmax.f32 %v3696_v43, 0.0  ;;  %v9600_v44 = vld [vmem:[#allocation24_spill] sm:$0xff] }
 0x2ea   : > { %v3508_v60 = vpop.f32.mrf.mxu0  ;;  %v9601_v0 = vld [vmem:[#allocation112_spill] sm:$0xff] }
 0x2eb   : > { %v3701_v19 = vpop.f32.mrf.mxu1  ;;  %v3700_v39 = vadd.f32 %v3699_v25, %v3507_v61  ;;  %v3509_v14 = vadd.f32 %v3508_v60, %v3316_v45  ;;  %4474 = vmatprep.mubr.bf16.mxu1 %v3921_v21  ;;  %v3837_v8 = vmax.f32 %v3698_v13, 0.0  ;;  %5847 = vmatpush3.bf16.msra.mxu0 %v6352_v23  ;;  %v3336_v45 = vadd.f32 %v8641_v41, %v3143_v57  ;;  %v9602_v41 = vld [vmem:[#allocation113_spill] sm:$0xff] }
 0x2ec   : > { %v3512_v20 = vpop.f32.mrf.mxu0  ;;  %4475 = vmatmul.mubr.bf16.gmra.mxu1 %v3920_v17 }
 0x2ed   : > { %v3705_v7 = vpop.f32.mrf.mxu1  ;;  %v3840_v55 = vmax.f32 %v3700_v39, 0.0  ;;  %v3702_v6 = vadd.f32 %v3701_v19, %v3509_v14  ;;  %v3513_v42 = vadd.f32 %v3512_v20, %v9596_v32  ;;  %v3153_v14 = vadd.f32 %v8654_v29, %v8420_v31 }
 0x2ee   : > { %v3514_v34 = vpop.f32.mrf.mxu0 }
 0x2ef   : > { %v3707_v62 = vpop.f32.mrf.mxu1  ;;  %v3924_v48 = vpack.c.bf16 %v3840_v55, %v3836_v27  ;;  %v3841_v58 = vmax.f32 %v3702_v6, 0.0  ;;  %v3515_v63 = vadd.f32 %v3514_v34, %v9597_v33  ;;  %v3706_v47 = vadd.f32 %v3705_v7, %v3513_v42 }
 0x2f0   : > { %v3516_v18 = vpop.f32.mrf.mxu0 }
 0x2f1   : > { %v3709_v10 = vpop.f32.mrf.mxu1  ;;  %v3517_v22 = vadd.f32 %v3516_v18, %v9598_v2  ;;  %v3925_v50 = vpack.c.bf16 %v3841_v58, %v3837_v8  ;;  %v3708_v3 = vadd.f32 %v3707_v62, %v3515_v63  ;;  %v3844_v54 = vmax.f32 %v3706_v47, 0.0  ;;  %v9603_v8 = vld [vmem:[#allocation25_spill] sm:$0xff] }
 0x2f2   : > { %v3518_v15 = vpop.f32.mrf.mxu0  ;;  %v3346_v63 = vadd.f32 %v8656_v28, %v3153_v14  ;;  %v9605_v28 = vld [vmem:[#allocation27_spill] sm:$0xff] }
 0x2f3   : > { %v3711_v30 = vpop.f32.mrf.mxu1  ;;  %v3710_v1 = vadd.f32 %v3709_v10, %v3517_v22  ;;  %v3519_v56 = vadd.f32 %v3518_v15, %v3326_v52  ;;  %4482 = vmatprep.mubr.bf16.mxu1 %v3925_v50  ;;  %v3845_v17 = vmax.f32 %v3708_v3, 0.0  ;;  %v9604_v10 = vld [vmem:[#allocation26_spill] sm:$0xff]  ;;  %v3163_v15 = vadd.f32 %v8669_v24, %v8420_v31 }
 0x2f4   : > { %v3522_v4 = vpop.f32.mrf.mxu0  ;;  %4483 = vmatmul.mubr.bf16.gmra.mxu1 %v3924_v48 }
 0x2f5   : > { %v3715_v49 = vpop.f32.mrf.mxu1  ;;  %v3848_v46 = vmax.f32 %v3710_v1, 0.0  ;;  %v3712_v36 = vadd.f32 %v3711_v30, %v3519_v56  ;;  %v3523_v9 = vadd.f32 %v3522_v4, %v9599_v11 }
 0x2f6   : > { %v3524_v53 = vpop.f32.mrf.mxu0 }
 0x2f7   : > { %v3717_v12 = vpop.f32.mrf.mxu1  ;;  %v3928_v16 = vpack.c.bf16 %v3848_v46, %v3844_v54  ;;  %v3849_v59 = vmax.f32 %v3712_v36, 0.0  ;;  %v3525_v5 = vadd.f32 %v3524_v53, %v9600_v44  ;;  %v3716_v43 = vadd.f32 %v3715_v49, %v3523_v9  ;;  %v9606_v9 = vld [vmem:[#allocation28_spill] sm:$0xff] }
 0x2f8   : > { %v3526_v40 = vpop.f32.mrf.mxu0 }
 0x2f9   : > { %v3719_v25 = vpop.f32.mrf.mxu1  ;;  %v3527_v61 = vadd.f32 %v3526_v40, %v9601_v0  ;;  %v3929_v21 = vpack.c.bf16 %v3849_v59, %v3845_v17  ;;  %v3718_v19 = vadd.f32 %v3717_v12, %v3525_v5  ;;  %v3852_v7 = vmax.f32 %v3716_v43, 0.0  ;;  %v9607_v59 = vld [vmem:[#allocation29_spill] sm:$0xff]  ;;  %v9608_v0 = vld [vmem:[#allocation32_spill] sm:$0xff] }
 0x2fa   : > { %v3528_v38 = vpop.f32.mrf.mxu0  ;;  %v3356_v17 = vadd.f32 %v8671_v35, %v3163_v15  ;;  %v9609_v35 = vld [vmem:[#allocation30_spill] sm:$0xff] }
 0x2fb   : > { %v3721_v60 = vpop.f32.mrf.mxu1  ;;  %v3720_v13 = vadd.f32 %v3719_v25, %v3527_v61  ;;  %v3529_v39 = vadd.f32 %v3528_v38, %v3336_v45  ;;  %4490 = vmatprep.mubr.bf16.mxu1 %v3929_v21  ;;  %v3853_v37 = vmax.f32 %v3718_v19, 0.0  ;;  %v3173_v61 = vadd.f32 %v9608_v0, %v8420_v31 }
 0x2fc   : > { %v3532_v26 = vpop.f32.mrf.mxu0  ;;  %4491 = vmatmul.mubr.bf16.gmra.mxu1 %v3928_v16 }
 0x2fd   : > { %v3725_v20 = vpop.f32.mrf.mxu1  ;;  %v3856_v27 = vmax.f32 %v3720_v13, 0.0  ;;  %v3722_v55 = vadd.f32 %v3721_v60, %v3529_v39  ;;  %v3533_v6 = vadd.f32 %v3532_v26, %v9602_v41 }
 0x2fe   : > { %v3534_v32 = vpop.f32.mrf.mxu0 }
 0x2ff   : > { %v3727_v42 = vpop.f32.mrf.mxu1  ;;  %v3932_v34 = vpack.c.bf16 %v3856_v27, %v3852_v7  ;;  %v3857_v62 = vmax.f32 %v3722_v55, 0.0  ;;  %v3535_v48 = vadd.f32 %v3534_v32, %v9603_v8  ;;  %v3726_v18 = vadd.f32 %v3725_v20, %v3533_v6  ;;  %v9610_v55 = vld [vmem:[#allocation31_spill] sm:$0xff] }
 0x300   : > { %v3536_v58 = vpop.f32.mrf.mxu0 }
 0x301   : > { %v3729_v33 = vpop.f32.mrf.mxu1  ;;  %v3933_v29 = vpack.c.bf16 %v3857_v62, %v3853_v37  ;;  %v3537_v52 = vadd.f32 %v3536_v58, %v9604_v10  ;;  %v3728_v22 = vadd.f32 %v3727_v42, %v3535_v48  ;;  %v3860_v1 = vmax.f32 %v3726_v18, 0.0  ;;  %v9611_v42 = vld [vmem:[#allocation116_spill] sm:$0xff]  ;;  %v9612_v62 = vld [vmem:[#allocation33_spill] sm:$0xff] }
 0x302   : > { %v3538_v47 = vpop.f32.mrf.mxu0  ;;  %v3366_v37 = vadd.f32 %v9611_v42, %v3173_v61 }
 0x303   : > { %v3731_v2 = vpop.f32.mrf.mxu1  ;;  %v3730_v50 = vadd.f32 %v3729_v33, %v3537_v52  ;;  %v3539_v51 = vadd.f32 %v3538_v47, %v3346_v63  ;;  %4498 = vmatprep.mubr.bf16.mxu1 %v3933_v29  ;;  %v3861_v46 = vmax.f32 %v3728_v22, 0.0 }
 0x304   : > { %v3542_v30 = vpop.f32.mrf.mxu0  ;;  %4499 = vmatmul.mubr.bf16.gmra.mxu1 %v3932_v34 }
 0x305   : > { %v3735_v3 = vpop.f32.mrf.mxu1  ;;  %v3864_v56 = vmax.f32 %v3730_v50, 0.0  ;;  %v3732_v57 = vadd.f32 %v3731_v2, %v3539_v51  ;;  %v3543_v4 = vadd.f32 %v3542_v30, %v9605_v28 }
 0x306   : > { %v3544_v49 = vpop.f32.mrf.mxu0 }
 0x307   : > { %v3737_v54 = vpop.f32.mrf.mxu1  ;;  %v3936_v36 = vpack.c.bf16 %v3864_v56, %v3860_v1  ;;  %v3865_v11 = vmax.f32 %v3732_v57, 0.0  ;;  %v3545_v23 = vadd.f32 %v3544_v49, %v9606_v9  ;;  %v3736_v16 = vadd.f32 %v3735_v3, %v3543_v4 }
 0x308   : > { %v3546_v53 = vpop.f32.mrf.mxu0 }
 0x309   : > { %v3739_v12 = vpop.f32.mrf.mxu1  ;;  %v3937_v24 = vpack.c.bf16 %v3865_v11, %v3861_v46  ;;  %v3547_v44 = vadd.f32 %v3546_v53, %v9607_v59  ;;  %v3738_v25 = vadd.f32 %v3737_v54, %v3545_v23  ;;  %v3868_v60 = vmax.f32 %v3736_v16, 0.0 }
 0x30a   : > { %v3548_v5 = vpop.f32.mrf.mxu0 }
 0x30b   : > { %v3741_v40 = vpop.f32.mrf.mxu1  ;;  %v3740_v45 = vadd.f32 %v3739_v12, %v3547_v44  ;;  %v3549_v43 = vadd.f32 %v3548_v5, %v3356_v17  ;;  %4506 = vmatprep.mubr.bf16.mxu1 %v3937_v24  ;;  %v3869_v20 = vmax.f32 %v3738_v25, 0.0 }
 0x30c   : > { %v3552_v21 = vpop.f32.mrf.mxu0  ;;  %4507 = vmatmul.mubr.bf16.gmra.mxu1 %v3936_v36 }
 0x30d   : > { %v3745_v38 = vpop.f32.mrf.mxu1  ;;  %v3872_v19 = vmax.f32 %v3740_v45, 0.0  ;;  %v3742_v13 = vadd.f32 %v3741_v40, %v3549_v43  ;;  %v3553_v39 = vadd.f32 %v3552_v21, %v9609_v35 }
 0x30e   : > { %v3554_v14 = vpop.f32.mrf.mxu0 }
 0x30f   : > { %v3747_v26 = vpop.f32.mrf.mxu1  ;;  %v3940_v7 = vpack.c.bf16 %v3872_v19, %v3868_v60  ;;  %v3873_v27 = vmax.f32 %v3742_v13, 0.0  ;;  %v3555_v41 = vadd.f32 %v3554_v14, %v9610_v55  ;;  %v3746_v34 = vadd.f32 %v3745_v38, %v3553_v39  ;;  %v8872_v39 = vld [vmem:[%s9183_s4] ss:$0 sm:$0xff] }
 0x310   : > { %v3556_v6 = vpop.f32.mrf.mxu0 }
 0x311   : > { %v3749_v32 = vpop.f32.mrf.mxu1  ;;  %v3941_v31 = vpack.c.bf16 %v3873_v27, %v3869_v20  ;;  %v3557_v8 = vadd.f32 %v3556_v6, %v9612_v62  ;;  %v3748_v58 = vadd.f32 %v3747_v26, %v3555_v41  ;;  %v3876_v10 = vmax.f32 %v3746_v34, 0.0 }
 0x312   : > { %v3558_v48 = vpop.f32.mrf.mxu0 }
 0x313   : > { %v3750_v33 = vadd.f32 %v3749_v32, %v3557_v8  ;;  %v3559_v63 = vadd.f32 %v3558_v48, %v3366_v37  ;;  %4514 = vmatprep.mubr.bf16.mxu1 %v3941_v31  ;;  %v3751_v29 = vpop.f32.mrf.mxu1  ;;  %v3877_v22 = vmax.f32 %v3748_v58, 0.0  ;;  %v6353_v37 = vld [vmem:[%s9186_s7 + $0x18] sm:$0xff]   ;;  %v6354_v31 = vld [vmem:[%s9186_s7 + $0x10] sm:$0xff]  }
 0x314   : > { %v5580_v18 = vpop.f32.mrf.mxu0  ;;  %4515 = vmatmul.mubr.bf16.gmra.mxu1 %v3940_v7  ;;  %5880 = vmatprep.subr.bf16.mxu1 %v6353_v37 }
 0x315   : > { %v3880_v52 = vmax.f32 %v3750_v33, 0.0  ;;  %v3752_v47 = vadd.f32 %v3751_v29, %v3559_v63  ;;  %5881 = vmatpush3.bf16.msra.mxu1 %v6353_v37 }
 0x316   : > { %v5581_v2 = vpop.f32.mrf.mxu0  ;;  %5882 = vmatprep.subr.bf16.mxu1 %v6354_v31 }
 0x317   : > { %v3944_v50 = vpack.c.bf16 %v3880_v52, %v3876_v10  ;;  %v3881_v51 = vmax.f32 %v3752_v47, 0.0  ;;  %v5582_v35 = vadd.f32 %v5581_v2, %v5580_v18 }
 0x318   : > { %v5583_v15 = vpop.f32.mrf.mxu0 }
 0x319   : > { %v3945_v30 = vpack.c.bf16 %v3881_v51, %v3877_v22  ;;  %v4244_v55 = vadd.f32 %v5582_v35, %v8872_v39  ;;  %5883 = vmatpush3.bf16.msra.mxu1 %v6354_v31 }
 0x31a   : > { %v5584_v3 = vpop.f32.mrf.mxu0 }
 0x31b   : > { %4522 = vmatprep.mubr.bf16.mxu1 %v3945_v30  ;;  %v5585_v26 = vadd.f32 %v5584_v3, %v5583_v15 }
 0x31c   : > { %v5586_v1 = vpop.f32.mrf.mxu0  ;;  %4523 = vmatmul.mubr.bf16.gmra.mxu1 %v3944_v50 }
 0x31d   : > { %v4247_v6 = vadd.f32 %v5585_v26, %v8872_v39 }
 0x31e   : > { %v5587_v56 = vpop.f32.mrf.mxu0 }
 0x31f   : > { %v5588_v8 = vadd.f32 %v5587_v56, %v5586_v1 }
 0x320   : > { %v5589_v57 = vpop.f32.mrf.mxu0 }
 0x321   : > { %v4252_v47 = vadd.f32 %v5588_v8, %v8872_v39 }
 0x322   : > { %v5590_v28 = vpop.f32.mrf.mxu0 }
 0x323   : > { %v5591_v33 = vadd.f32 %v5590_v28, %v5589_v57 }
 0x324   : > { %v8817_v4 = vpop.f32.mrf.mxu0 }
 0x325   : > { %v4255_v50 = vadd.f32 %v5591_v33, %v8872_v39 }
 0x326   : > { %v8819_v49 = vpop.f32.mrf.mxu0 }
 0x327   : > { %v5594_v1 = vadd.f32 %v8819_v49, %v8817_v4 }
 0x328   : > { %v8821_v54 = vpop.f32.mrf.mxu0 }
 0x32a   : > { %v8823_v46 = vpop.f32.mrf.mxu0 }
 0x32b   : > { %v5597_v28 = vadd.f32 %v8823_v46, %v8821_v54 }
 0x32c   : > { %v8825_v36 = vpop.f32.mrf.mxu0 }
 0x32e   : > { %v8827_v11 = vpop.f32.mrf.mxu0 }
 0x32f   : > { %v5600_v54 = vadd.f32 %v8827_v11, %v8825_v36 }
 0x330   : > { %v8829_v9 = vpop.f32.mrf.mxu0 }
 0x332   : > { %v8831_v23 = vpop.f32.mrf.mxu0 }
 0x333   : > { %v5603_v31 = vadd.f32 %v8831_v23, %v8829_v9 }
 0x334   : > { %v8833_v53 = vpop.f32.mrf.mxu0 }
 0x336   : > { %v8835_v12 = vpop.f32.mrf.mxu0 }
 0x337   : > { %v5606_v9 = vadd.f32 %v8835_v12, %v8833_v53 }
 0x338   : > { %v8837_v17 = vpop.f32.mrf.mxu0 }
 0x33a   : > { %v8839_v24 = vpop.f32.mrf.mxu0 }
 0x33c   : > { %v8841_v16 = vpop.f32.mrf.mxu0 }
 0x33e   : > { %v8843_v59 = vpop.f32.mrf.mxu0 }
 0x340   : > { %v8845_v44 = vpop.f32.mrf.mxu0 }
 0x342   : > { %v8847_v5 = vpop.f32.mrf.mxu0 }
 0x344   : > { %v8849_v40 = vpop.f32.mrf.mxu0 }
 0x346   : > { %v8851_v25 = vpop.f32.mrf.mxu0 }
 0x348   : > { %v8853_v45 = vpop.f32.mrf.mxu0 }
 0x34a   : > { %v8855_v43 = vpop.f32.mrf.mxu0 }
 0x34c   : > { %v8857_v0 = vpop.f32.mrf.mxu0 }
 0x34e   : > { %v8859_v61 = vpop.f32.mrf.mxu0 }
 0x350   : > { %v8861_v21 = vpop.f32.mrf.mxu0 }
 0x352   : > { %v8863_v38 = vpop.f32.mrf.mxu0 }
 0x354   : > { %v8865_v60 = vpop.f32.mrf.mxu0 }
 0x356   : > { %v8867_v19 = vpop.f32.mrf.mxu0 }
 0x358   : > { %v8874_v7 = vpop.f32.mrf.mxu0 }
 0x35a   : > { %v8884_v34 = vpop.f32.mrf.mxu0 }
 0x35c   : > { %v8886_v10 = vpop.f32.mrf.mxu0 }
 0x35e   : > { %v8890_v30 = vpop.f32.mrf.mxu0 }
 0x360   : > { %v8896_v26 = vpop.f32.mrf.mxu0 }
 0x362   : > { %v8900_v4 = vpop.f32.mrf.mxu0 }
 0x364   : > { %v5692_v13 = vpop.f32.mrf.mxu1 }
 0x366   : > { %v5693_v14 = vpop.f32.mrf.mxu1 }
 0x367   : > { %v5694_v20 = vadd.f32 %v5693_v14, %v5692_v13 }
 0x368   : > { %v5695_v27 = vpop.f32.mrf.mxu1 }
 0x369   : > { %v4405_v32 = vadd.f32 %v5694_v20, %v4244_v55 }
 0x36a   : > { %v5696_v41 = vpop.f32.mrf.mxu1 }
 0x36b   : > { %v5697_v42 = vadd.f32 %v5696_v41, %v5695_v27  ;;  %v4531_v63 = vmax.f32 %v4405_v32, 0.0  ;;  %v4260_v27 = vadd.f32 %v5594_v1, %v8872_v39 }
 0x36c   : > { %v5698_v62 = vpop.f32.mrf.mxu1 }
 0x36d   : > { %v4408_v48 = vadd.f32 %v5697_v42, %v4247_v6  ;;  %v4263_v6 = vadd.f32 %v5597_v28, %v8872_v39 }
 0x36e   : > { %v5699_v58 = vpop.f32.mrf.mxu1 }
 0x36f   : > { %v4532_v29 = vmax.f32 %v4408_v48, 0.0  ;;  %v5700_v18 = vadd.f32 %v5699_v58, %v5698_v62  ;;  %v8906_v58 = vpop.f32.mrf.mxu0 }
 0x370   : > { %v5701_v52 = vpop.f32.mrf.mxu1 }
 0x371   : > { %v4563_v2 = vpack.c.bf16 %v4532_v29, %v4531_v63  ;;  %v4413_v51 = vadd.f32 %v5700_v18, %v4252_v47  ;;  %v4268_v63 = vadd.f32 %v5600_v54, %v8872_v39  ;;  %v8910_v36 = vpop.f32.mrf.mxu0 }
 0x372   : > { %v5702_v22 = vpop.f32.mrf.mxu1 }
 0x373   : > { %v5703_v15 = vadd.f32 %v5702_v22, %v5701_v52  ;;  %5848 = vmatprep.mubr.bf16.mxu0 %v4563_v2  ;;  %v4533_v13 = vmax.f32 %v4413_v51, 0.0  ;;  %v4271_v52 = vadd.f32 %v5603_v31, %v8872_v39  ;;  %v8916_v1 = vpop.f32.mrf.mxu0 }
 0x374   : > { %v5704_v3 = vpop.f32.mrf.mxu1 }
 0x375   : > { %v4416_v56 = vadd.f32 %v5703_v15, %v4255_v50  ;;  %v5609_v50 = vadd.f32 %v8839_v24, %v8837_v17  ;;  %v8920_v53 = vpop.f32.mrf.mxu0  ;;  %v5612_v17 = vadd.f32 %v8843_v59, %v8841_v16 }
 0x376   : > { %v5705_v57 = vpop.f32.mrf.mxu1 }
 0x377   : > { %v4534_v35 = vmax.f32 %v4416_v56, 0.0  ;;  %v5706_v14 = vadd.f32 %v5705_v57, %v5704_v3  ;;  %v4276_v57 = vadd.f32 %v5606_v9, %v8872_v39  ;;  %v4284_v54 = vadd.f32 %v5612_v17, %v8872_v39 }
 0x378   : > { %v5707_v20 = vpop.f32.mrf.mxu1 }
 0x379   : > { %v4564_v55 = vpack.c.bf16 %v4534_v35, %v4533_v13  ;;  %v4421_v32 = vadd.f32 %v5706_v14, %v4260_v27  ;;  %v4279_v35 = vadd.f32 %v5609_v50, %v8872_v39 }
 0x37a   : > { %v5708_v41 = vpop.f32.mrf.mxu1 }
 0x37b   : > { %v5709_v42 = vadd.f32 %v5708_v41, %v5707_v20  ;;  %5849 = vmatmul.mubr.bf16.vlgmr.msra.gmra.mxu0 %v4564_v55  ;;  %v4535_v62 = vmax.f32 %v4421_v32, 0.0  ;;  %v5615_v55 = vadd.f32 %v8847_v5, %v8845_v44  ;;  %v5618_v44 = vadd.f32 %v8851_v25, %v8849_v40 }
 0x37c   : > { %v5710_v49 = vpop.f32.mrf.mxu1 }
 0x37d   : > { %v4424_v46 = vadd.f32 %v5709_v42, %v4263_v6  ;;  %v8926_v42 = vpop.f32.mrf.mxu0  ;;  %v4287_v31 = vadd.f32 %v5615_v55, %v8872_v39  ;;  %v5633_v55 = vadd.f32 %v8884_v34, %v8874_v7  ;;  %v5636_v7 = vadd.f32 %v8890_v30, %v8886_v10 }
 0x37e   : > { %v5711_v37 = vpop.f32.mrf.mxu1 }
 0x37f   : > { %v4536_v8 = vmax.f32 %v4424_v46, 0.0  ;;  %v5712_v48 = vadd.f32 %v5711_v37, %v5710_v49  ;;  %v8930_v16 = vpop.f32.mrf.mxu0 }
 0x380   : > { %v5713_v33 = vpop.f32.mrf.mxu1 }
 0x381   : > { %v4565_v29 = vpack.c.bf16 %v4536_v8, %v4535_v62  ;;  %v4429_v47 = vadd.f32 %v5712_v48, %v4268_v63 }
 0x382   : > { %v5714_v18 = vpop.f32.mrf.mxu1 }
 0x383   : > { %v5715_v2 = vadd.f32 %v5714_v18, %v5713_v33  ;;  %5852 = vmatprep.mubr.bf16.mxu0 %v4565_v29  ;;  %v4537_v51 = vmax.f32 %v4429_v47, 0.0  ;;  %v5621_v33 = vadd.f32 %v8855_v43, %v8853_v45  ;;  %v5624_v45 = vadd.f32 %v8859_v61, %v8857_v0 }
 0x384   : > { %v5716_v11 = vpop.f32.mrf.mxu1 }
 0x385   : > { %v4432_v23 = vadd.f32 %v5715_v2, %v4271_v52  ;;  %v8936_v52 = vpop.f32.mrf.mxu0  ;;  %v4292_v2 = vadd.f32 %v5618_v44, %v8872_v39 }
 0x386   : > { %v5717_v22 = vpop.f32.mrf.mxu1 }
 0x387   : > { %v4538_v15 = vmax.f32 %v4432_v23, 0.0  ;;  %v5718_v3 = vadd.f32 %v5717_v22, %v5716_v11  ;;  %v4295_v23 = vadd.f32 %v5621_v33, %v8872_v39  ;;  %v8940_v40 = vpop.f32.mrf.mxu0 }
 0x388   : > { %v5719_v56 = vpop.f32.mrf.mxu1 }
 0x389   : > { %v4566_v28 = vpack.c.bf16 %v4538_v15, %v4537_v51  ;;  %v4437_v14 = vadd.f32 %v5718_v3, %v4276_v57  ;;  %v5627_v15 = vadd.f32 %v8863_v38, %v8861_v21  ;;  %v5630_v21 = vadd.f32 %v8867_v19, %v8865_v60 }
 0x38a   : > { %v5720_v13 = vpop.f32.mrf.mxu1 }
 0x38b   : > { %v5721_v20 = vadd.f32 %v5720_v13, %v5719_v56  ;;  %5853 = vmatmul.mubr.bf16.gmra.mxu0 %v4566_v28  ;;  %v4539_v41 = vmax.f32 %v4437_v14, 0.0  ;;  %v8946_v28 = vpop.f32.mrf.mxu0 }
 0x38c   : > { %v5722_v12 = vpop.f32.mrf.mxu1 }
 0x38d   : > { %v4440_v24 = vadd.f32 %v5721_v20, %v4279_v35  ;;  %v4300_v35 = vadd.f32 %v5624_v45, %v8872_v39  ;;  %v8950_v0 = vpop.f32.mrf.mxu0 }
 0x38e   : > { %v5723_v27 = vpop.f32.mrf.mxu1 }
 0x38f   : > { %v4540_v6 = vmax.f32 %v4440_v24, 0.0  ;;  %v5724_v32 = vadd.f32 %v5723_v27, %v5722_v12  ;;  %v4303_v12 = vadd.f32 %v5627_v15, %v8872_v39 }
 0x390   : > { %v5725_v49 = vpop.f32.mrf.mxu1 }
 0x391   : > { %v4567_v46 = vpack.c.bf16 %v4540_v6, %v4539_v41  ;;  %v4445_v62 = vadd.f32 %v5724_v32, %v4284_v54 }
 0x392   : > { %v5726_v37 = vpop.f32.mrf.mxu1 }
 0x393   : > { %v5727_v8 = vadd.f32 %v5726_v37, %v5725_v49  ;;  %5856 = vmatprep.mubr.bf16.mxu0 %v4567_v46  ;;  %v4541_v63 = vmax.f32 %v4445_v62, 0.0  ;;  %v8956_v49 = vpop.f32.mrf.mxu0  ;;  %v4308_v46 = vadd.f32 %v5630_v21, %v8872_v39  ;;  %v4311_v62 = vadd.f32 %v5633_v55, %v8872_v39 }
 0x394   : > { %v5728_v59 = vpop.f32.mrf.mxu1 }
 0x395   : > { %v4448_v5 = vadd.f32 %v5727_v8, %v4287_v31  ;;  %v8960_v60 = vpop.f32.mrf.mxu0 }
 0x396   : > { %v5729_v48 = vpop.f32.mrf.mxu1 }
 0x397   : > { %v4542_v29 = vmax.f32 %v4448_v5, 0.0  ;;  %v5730_v18 = vadd.f32 %v5729_v48, %v5728_v59  ;;  %v5639_v5 = vadd.f32 %v8900_v4, %v8896_v26  ;;  %v5642_v26 = vadd.f32 %v8910_v36, %v8906_v58 }
 0x398   : > { %v5731_v47 = vpop.f32.mrf.mxu1 }
 0x399   : > { %v4568_v11 = vpack.c.bf16 %v4542_v29, %v4541_v63  ;;  %v4453_v22 = vadd.f32 %v5730_v18, %v4292_v2  ;;  %v8966_v29 = vpop.f32.mrf.mxu0 }
 0x39a   : > { %v5732_v9 = vpop.f32.mrf.mxu1 }
 0x39b   : > { %v5733_v50 = vadd.f32 %v5732_v9, %v5731_v47  ;;  %5857 = vmatmul.mubr.bf16.gmra.mxu0 %v4568_v11  ;;  %v4543_v3 = vmax.f32 %v4453_v22, 0.0  ;;  %v4316_v47 = vadd.f32 %v5636_v7, %v8872_v39  ;;  %v4319_v9 = vadd.f32 %v5639_v5, %v8872_v39  ;;  %v5659_v10 = vpop.f32.mrf.mxu0 }
 0x39c   : > { %v5734_v25 = vpop.f32.mrf.mxu1 }
 0x39d   : > { %v4456_v43 = vadd.f32 %v5733_v50, %v4295_v23  ;;  %v5661_v15 = vpop.f32.mrf.mxu0 }
 0x39e   : > { %v5735_v51 = vpop.f32.mrf.mxu1 }
 0x39f   : > { %v4544_v56 = vmax.f32 %v4456_v43, 0.0  ;;  %v5736_v57 = vadd.f32 %v5735_v51, %v5734_v25  ;;  %v5645_v25 = vadd.f32 %v8920_v53, %v8916_v1  ;;  %v5662_v58 = vpop.f32.mrf.mxu0 }
 0x3a0   : > { %v5737_v13 = vpop.f32.mrf.mxu1 }
 0x3a1   : > { %v4569_v14 = vpack.c.bf16 %v4544_v56, %v4543_v3  ;;  %v4461_v17 = vadd.f32 %v5736_v57, %v4300_v35  ;;  %v4324_v56 = vadd.f32 %v5642_v26, %v8872_v39  ;;  %v4327_v35 = vadd.f32 %v5645_v25, %v8872_v39 }
 0x3a2   : > { %v5738_v20 = vpop.f32.mrf.mxu1 }
 0x3a3   : > { %v5739_v24 = vadd.f32 %v5738_v20, %v5737_v13  ;;  %5860 = vmatprep.mubr.bf16.mxu0 %v4569_v14  ;;  %v4545_v41 = vmax.f32 %v4461_v17, 0.0  ;;  %v5651_v17 = vadd.f32 %v8940_v40, %v8936_v52  ;;  %v6356_v52 = vld [vmem:[%s9186_s7] sm:$0xff]  }
 0x3a4   : > { %v5740_v61 = vpop.f32.mrf.mxu1 }
 0x3a5   : > { %v4464_v38 = vadd.f32 %v5739_v24, %v4303_v12  ;;  %v5648_v12 = vadd.f32 %v8930_v16, %v8926_v42  ;;  %v4335_v42 = vadd.f32 %v5651_v17, %v8872_v39 }
 0x3a6   : > { %v5741_v27 = vpop.f32.mrf.mxu1 }
 0x3a7   : > { %v4546_v6 = vmax.f32 %v4464_v38, 0.0  ;;  %v5742_v32 = vadd.f32 %v5741_v27, %v5740_v61  ;;  %v6355_v38 = vld [vmem:[%s9186_s7 + $0x8] sm:$0xff]   ;;  %v5664_v27 = vpop.f32.mrf.mxu0 }
 0x3a8   : > { %v5743_v54 = vpop.f32.mrf.mxu1  ;;  %5884 = vmatprep.subr.bf16.mxu1 %v6355_v38 }
 0x3a9   : > { %v4570_v37 = vpack.c.bf16 %v4546_v6, %v4545_v41  ;;  %v4469_v8 = vadd.f32 %v5742_v32, %v4308_v46  ;;  %v4332_v41 = vadd.f32 %v5648_v12, %v8872_v39  ;;  %5885 = vmatpush3.bf16.msra.mxu1 %v6355_v38  ;;  %v5665_v40 = vpop.f32.mrf.mxu0 }
 0x3aa   : > { %v5744_v31 = vpop.f32.mrf.mxu1  ;;  %5886 = vmatprep.subr.bf16.mxu1 %v6356_v52 }
 0x3ab   : > { %v5745_v59 = vadd.f32 %v5744_v31, %v5743_v54  ;;  %5861 = vmatmul.mubr.bf16.gmra.mxu0 %v4570_v37  ;;  %v4547_v48 = vmax.f32 %v4469_v8, 0.0  ;;  %v5654_v37 = vadd.f32 %v8950_v0, %v8946_v28  ;;  %v5657_v8 = vadd.f32 %v8960_v60, %v8956_v49 }
 0x3ac   : > { %v5746_v19 = vpop.f32.mrf.mxu1  ;;  %v5663_v60 = vadd.f32 %v5662_v58, %v5661_v15 }
 0x3ad   : > { %v4472_v34 = vadd.f32 %v5745_v59, %v4311_v62  ;;  %5887 = vmatpush3.bf16.msra.mxu1 %v6356_v52  ;;  %v4340_v5 = vadd.f32 %v5654_v37, %v8872_v39 }
 0x3ae   : > { %v5747_v44 = vpop.f32.mrf.mxu1 }
 0x3af   : > { %v4548_v33 = vmax.f32 %v4472_v34, 0.0  ;;  %v5748_v63 = vadd.f32 %v5747_v44, %v5746_v19  ;;  %v5667_v34 = vpop.f32.mrf.mxu0 }
 0x3b0   : > { %v5749_v18 = vpop.f32.mrf.mxu1 }
 0x3b1   : > { %v4571_v2 = vpack.c.bf16 %v4548_v33, %v4547_v48  ;;  %v4477_v23 = vadd.f32 %v5748_v63, %v4316_v47  ;;  %v4343_v63 = vadd.f32 %v5657_v8, %v8872_v39  ;;  %v5668_v0 = vpop.f32.mrf.mxu0 }
 0x3b2   : > { %v5750_v11 = vpop.f32.mrf.mxu1  ;;  %v5669_v15 = vadd.f32 %v5668_v0, %v5667_v34 }
 0x3b3   : > { %v5751_v22 = vadd.f32 %v5750_v11, %v5749_v18  ;;  %5864 = vmatprep.mubr.bf16.mxu0 %v4571_v2  ;;  %v4549_v45 = vmax.f32 %v4477_v23, 0.0  ;;  %v5660_v2 = vadd.f32 %v5659_v10, %v8966_v29  ;;  %v5666_v29 = vadd.f32 %v5665_v40, %v5664_v27 }
 0x3b4   : > { %v5752_v30 = vpop.f32.mrf.mxu1 }
 0x3b5   : > { %v4480_v4 = vadd.f32 %v5751_v22, %v4319_v9 }
 0x3b6   : > { %v5753_v50 = vpop.f32.mrf.mxu1 }
 0x3b7   : > { %v4550_v43 = vmax.f32 %v4480_v4, 0.0  ;;  %v5754_v51 = vadd.f32 %v5753_v50, %v5752_v30  ;;  %v5670_v30 = vpop.f32.mrf.mxu0  ;;  %v4348_v4 = vadd.f32 %v5660_v2, %v8872_v39 }
 0x3b8   : > { %v5755_v3 = vpop.f32.mrf.mxu1 }
 0x3b9   : > { %v4572_v57 = vpack.c.bf16 %v4550_v43, %v4549_v45  ;;  %v4485_v14 = vadd.f32 %v5754_v51, %v4324_v56  ;;  %v4351_v45 = vadd.f32 %v5663_v60, %v8872_v39 }
 0x3ba   : > { %v5756_v13 = vpop.f32.mrf.mxu1 }
 0x3bb   : > { %v5757_v20 = vadd.f32 %v5756_v13, %v5755_v3  ;;  %5865 = vmatmul.mubr.bf16.gmra.mxu0 %v4572_v57  ;;  %v4551_v24 = vmax.f32 %v4485_v14, 0.0  ;;  %v5671_v3 = vpop.f32.mrf.mxu0 }
 0x3bc   : > { %v5758_v36 = vpop.f32.mrf.mxu1  ;;  %v5672_v38 = vadd.f32 %v5671_v3, %v5670_v30 }
 0x3bd   : > { %v4488_v1 = vadd.f32 %v5757_v20, %v4327_v35  ;;  %v5673_v20 = vpop.f32.mrf.mxu0 }
 0x3be   : > { %v5759_v53 = vpop.f32.mrf.mxu1 }
 0x3bf   : > { %v4552_v61 = vmax.f32 %v4488_v1, 0.0  ;;  %v5760_v21 = vadd.f32 %v5759_v53, %v5758_v36  ;;  %v4356_v36 = vadd.f32 %v5666_v29, %v8872_v39  ;;  %v4359_v53 = vadd.f32 %v5669_v15, %v8872_v39 }
 0x3c0   : > { %v5761_v55 = vpop.f32.mrf.mxu1 }
 0x3c1   : > { %v4573_v6 = vpack.c.bf16 %v4552_v61, %v4551_v24  ;;  %v4493_v16 = vadd.f32 %v5760_v21, %v4332_v41  ;;  %v5674_v61 = vpop.f32.mrf.mxu0 }
 0x3c2   : > { %v5762_v32 = vpop.f32.mrf.mxu1  ;;  %v5675_v41 = vadd.f32 %v5674_v61, %v5673_v20 }
 0x3c3   : > { %v5763_v54 = vadd.f32 %v5762_v32, %v5761_v55  ;;  %5868 = vmatprep.mubr.bf16.mxu0 %v4573_v6  ;;  %v4553_v59 = vmax.f32 %v4493_v16, 0.0 }
 0x3c4   : > { %v5764_v46 = vpop.f32.mrf.mxu1 }
 0x3c5   : > { %v4496_v31 = vadd.f32 %v5763_v54, %v4335_v42  ;;  %v4364_v54 = vadd.f32 %v5672_v38, %v8872_v39 }
 0x3c6   : > { %v5765_v62 = vpop.f32.mrf.mxu1 }
 0x3c7   : > { %v4554_v19 = vmax.f32 %v4496_v31, 0.0  ;;  %v5766_v7 = vadd.f32 %v5765_v62, %v5764_v46  ;;  %v4367_v46 = vadd.f32 %v5675_v41, %v8872_v39 }
 0x3c8   : > { %v5767_v44 = vpop.f32.mrf.mxu1 }
 0x3c9   : > { %v4574_v48 = vpack.c.bf16 %v4554_v19, %v4553_v59  ;;  %v4501_v18 = vadd.f32 %v5766_v7, %v4340_v5 }
 0x3ca   : > { %v5768_v33 = vpop.f32.mrf.mxu1 }
 0x3cb   : > { %v5769_v28 = vadd.f32 %v5768_v33, %v5767_v44  ;;  %5869 = vmatmul.mubr.bf16.gmra.mxu0 %v4574_v48  ;;  %v4555_v9 = vmax.f32 %v4501_v18, 0.0  ;;  %v9004_v44 = vld [vmem:[%s9185_s6] ss:$0 sm:$0xff] }
 0x3cc   : > { %v5770_v47 = vpop.f32.mrf.mxu1 }
 0x3cd   : > { %v4504_v11 = vadd.f32 %v5769_v28, %v4343_v63 }
 0x3ce   : > { %v5771_v49 = vpop.f32.mrf.mxu1 }
 0x3cf   : > { %v4556_v23 = vmax.f32 %v4504_v11, 0.0  ;;  %v5772_v22 = vadd.f32 %v5771_v49, %v5770_v47 }
 0x3d0   : > { %v5773_v26 = vpop.f32.mrf.mxu1 }
 0x3d1   : > { %v4575_v50 = vpack.c.bf16 %v4556_v23, %v4555_v9  ;;  %v4509_v43 = vadd.f32 %v5772_v22, %v4348_v4 }
 0x3d2   : > { %v5774_v25 = vpop.f32.mrf.mxu1 }
 0x3d3   : > { %v5775_v51 = vadd.f32 %v5774_v25, %v5773_v26  ;;  %5872 = vmatprep.mubr.bf16.mxu0 %v4575_v50  ;;  %v4557_v13 = vmax.f32 %v4509_v43, 0.0 }
 0x3d4   : > { %v5776_v56 = vpop.f32.mrf.mxu1 }
 0x3d5   : > { %v4512_v10 = vadd.f32 %v5775_v51, %v4351_v45 }
 0x3d6   : > { %v5777_v57 = vpop.f32.mrf.mxu1 }
 0x3d7   : > { %v4558_v35 = vmax.f32 %v4512_v10, 0.0  ;;  %v5778_v14 = vadd.f32 %v5777_v57, %v5776_v56 }
 0x3d8   : > { %v5779_v58 = vpop.f32.mrf.mxu1 }
 0x3d9   : > { %v4576_v12 = vpack.c.bf16 %v4558_v35, %v4557_v13  ;;  %v4517_v17 = vadd.f32 %v5778_v14, %v4356_v36 }
 0x3da   : > { %v5780_v1 = vpop.f32.mrf.mxu1 }
 0x3db   : > { %v5781_v24 = vadd.f32 %v5780_v1, %v5779_v58  ;;  %5873 = vmatmul.mubr.bf16.gmra.mxu0 %v4576_v12  ;;  %v4559_v6 = vmax.f32 %v4517_v17, 0.0 }
 0x3dc   : > { %v5782_v21 = vpop.f32.mrf.mxu1 }
 0x3dd   : > { %v4520_v27 = vadd.f32 %v5781_v24, %v4359_v53 }
 0x3de   : > { %v5783_v55 = vpop.f32.mrf.mxu1 }
 0x3df   : > { %v4560_v32 = vmax.f32 %v4520_v27, 0.0  ;;  %v5784_v42 = vadd.f32 %v5783_v55, %v5782_v21 }
 0x3e0   : > { %v5785_v16 = vpop.f32.mrf.mxu1 }
 0x3e1   : > { %v4577_v52 = vpack.c.bf16 %v4560_v32, %v4559_v6  ;;  %v4525_v37 = vadd.f32 %v5784_v42, %v4364_v54 }
 0x3e2   : > { %v5786_v40 = vpop.f32.mrf.mxu1 }
 0x3e3   : > { %v5787_v31 = vadd.f32 %v5786_v40, %v5785_v16  ;;  %5876 = vmatprep.mubr.bf16.mxu0 %v4577_v52  ;;  %v4561_v8 = vmax.f32 %v4525_v37, 0.0 }
 0x3e5   : > { %v4528_v62 = vadd.f32 %v5787_v31, %v4367_v46 }
 0x3e7   : > { %v4562_v59 = vmax.f32 %v4528_v62, 0.0 }
 0x3e9   : > { %v4578_v19 = vpack.c.bf16 %v4562_v59, %v4561_v8 }
 0x3eb   : > { %5877 = vmatmul.mubr.bf16.gmra.mxu0 %v4578_v19 }
 0x43b   : > { %v5850_v7 = vpop.f32.mrf.mxu0 }
 0x43c   : > { %v4693_v33 = vadd.f32 %v5850_v7, %v9004_v44 }
 0x43d   : > { %v4684_v34 = vpop.f32.mrf.mxu0 }
 0x43e   : > { %v4685_v48 = vadd.f32 %v9004_v44, %v4684_v34  ;;  %v4813_v2 = vmax.f32 %v4693_v33, 0.0 }
 0x43f   : > { %v5851_v5 = vpop.f32.mrf.mxu0 }
 0x440   : > { %v4696_v39 = vadd.f32 %v5851_v5, %v9004_v44  ;;  %v4811_v0 = vmax.f32 %v4685_v48, 0.0 }
 0x441   : > { %v4687_v63 = vpop.f32.mrf.mxu0 }
 0x442   : > { %v4688_v18 = vadd.f32 %v9004_v44, %v4687_v63  ;;  %v4814_v28 = vmax.f32 %v4696_v39, 0.0 }
 0x444   : > { %v4812_v47 = vmax.f32 %v4688_v18, 0.0  ;;  %v4844_v49 = vpack.c.bf16 %v4814_v28, %v4813_v2 }
 0x446   : > { %v4843_v11 = vpack.c.bf16 %v4812_v47, %v4811_v0 }
 0x448   : > { %5888 = vmatprep.mubr.msk.bf16.mxu1 %vm4898_vm2, %v4843_v11 }
 0x449   : > { %5889 = vmatmul.mubr.msk.bf16.vlgmr.msra.gmra.mxu1 %vm4898_vm2, %v4844_v49 }
 0x44b   : > { %v5854_v60 = vpop.f32.mrf.mxu0 }
 0x44c   : > { %v4709_v26 = vadd.f32 %v5854_v60, %v9004_v44 }
 0x44d   : > { %v4700_v9 = vpop.f32.mrf.mxu0 }
 0x44e   : > { %v4701_v22 = vadd.f32 %v9004_v44, %v4700_v9  ;;  %v4817_v51 = vmax.f32 %v4709_v26, 0.0 }
 0x44f   : > { %v5855_v23 = vpop.f32.mrf.mxu0 }
 0x450   : > { %v4712_v30 = vadd.f32 %v5855_v23, %v9004_v44  ;;  %v4815_v45 = vmax.f32 %v4701_v22, 0.0 }
 0x451   : > { %v4703_v4 = vpop.f32.mrf.mxu0 }
 0x452   : > { %v4704_v50 = vadd.f32 %v9004_v44, %v4703_v4  ;;  %v4818_v25 = vmax.f32 %v4712_v30, 0.0 }
 0x454   : > { %v4816_v43 = vmax.f32 %v4704_v50, 0.0  ;;  %v4846_v56 = vpack.c.bf16 %v4818_v25, %v4817_v51 }
 0x456   : > { %v4845_v3 = vpack.c.bf16 %v4816_v43, %v4815_v45 }
 0x458   : > { %5892 = vmatprep.mubr.msk.bf16.mxu1 %vm4898_vm2, %v4845_v3 }
 0x459   : > { %5893 = vmatmul.mubr.msk.bf16.gmra.mxu1 %vm4898_vm2, %v4846_v56 }
 0x45b   : > { %v5858_v29 = vpop.f32.mrf.mxu0 }
 0x45c   : > { %v4725_v35 = vadd.f32 %v5858_v29, %v9004_v44 }
 0x45d   : > { %v4716_v10 = vpop.f32.mrf.mxu0 }
 0x45e   : > { %v4717_v15 = vadd.f32 %v9004_v44, %v4716_v10  ;;  %v4821_v1 = vmax.f32 %v4725_v35, 0.0 }
 0x45f   : > { %v5859_v57 = vpop.f32.mrf.mxu0 }
 0x460   : > { %v4728_v13 = vadd.f32 %v5859_v57, %v9004_v44  ;;  %v4819_v36 = vmax.f32 %v4717_v15, 0.0 }
 0x461   : > { %v4719_v14 = vpop.f32.mrf.mxu0 }
 0x462   : > { %v4720_v20 = vadd.f32 %v9004_v44, %v4719_v14  ;;  %v4822_v58 = vmax.f32 %v4728_v13, 0.0 }
 0x464   : > { %v4820_v12 = vmax.f32 %v4720_v20, 0.0  ;;  %v4848_v17 = vpack.c.bf16 %v4822_v58, %v4821_v1 }
 0x466   : > { %v4847_v53 = vpack.c.bf16 %v4820_v12, %v4819_v36 }
 0x468   : > { %5896 = vmatprep.mubr.msk.bf16.mxu1 %vm4898_vm2, %v4847_v53 }
 0x469   : > { %5897 = vmatmul.mubr.msk.bf16.gmra.mxu1 %vm4898_vm2, %v4848_v17 }
 0x46b   : > { %v5862_v24 = vpop.f32.mrf.mxu0 }
 0x46c   : > { %v4741_v55 = vadd.f32 %v5862_v24, %v9004_v44 }
 0x46d   : > { %v4732_v61 = vpop.f32.mrf.mxu0 }
 0x46e   : > { %v4733_v38 = vadd.f32 %v9004_v44, %v4732_v61  ;;  %v4825_v54 = vmax.f32 %v4741_v55, 0.0 }
 0x46f   : > { %v5863_v21 = vpop.f32.mrf.mxu0 }
 0x470   : > { %v4744_v27 = vadd.f32 %v5863_v21, %v9004_v44  ;;  %v4823_v42 = vmax.f32 %v4733_v38, 0.0 }
 0x471   : > { %v4735_v41 = vpop.f32.mrf.mxu0 }
 0x472   : > { %v4736_v6 = vadd.f32 %v9004_v44, %v4735_v41  ;;  %v4826_v32 = vmax.f32 %v4744_v27, 0.0 }
 0x474   : > { %v4824_v16 = vmax.f32 %v4736_v6, 0.0  ;;  %v4850_v40 = vpack.c.bf16 %v4826_v32, %v4825_v54  ;;  %v9060_v6 = vld [vmem:[%s9187_s8] ss:$0 sm:$0xff] }
 0x476   : > { %v4849_v52 = vpack.c.bf16 %v4824_v16, %v4823_v42 }
 0x478   : > { %5900 = vmatprep.mubr.msk.bf16.mxu1 %vm4898_vm2, %v4849_v52 }
 0x479   : > { %5901 = vmatmul.mubr.msk.bf16.gmra.mxu1 %vm4898_vm2, %v4850_v40 }
 0x47b   : > { %v5866_v46 = vpop.f32.mrf.mxu0 }
 0x47c   : > { %v4757_v59 = vadd.f32 %v5866_v46, %v9004_v44 }
 0x47d   : > { %v4748_v37 = vpop.f32.mrf.mxu0 }
 0x47e   : > { %v4749_v62 = vadd.f32 %v9004_v44, %v4748_v37  ;;  %v4829_v39 = vmax.f32 %v4757_v59, 0.0 }
 0x47f   : > { %v5867_v31 = vpop.f32.mrf.mxu0 }
 0x480   : > { %v4760_v8 = vadd.f32 %v5867_v31, %v9004_v44  ;;  %v4827_v5 = vmax.f32 %v4749_v62, 0.0 }
 0x481   : > { %v4751_v19 = vpop.f32.mrf.mxu0 }
 0x482   : > { %v4752_v7 = vadd.f32 %v9004_v44, %v4751_v19  ;;  %v4830_v34 = vmax.f32 %v4760_v8, 0.0 }
 0x484   : > { %v4828_v48 = vmax.f32 %v4752_v7, 0.0  ;;  %v4852_v63 = vpack.c.bf16 %v4830_v34, %v4829_v39 }
 0x486   : > { %v4851_v33 = vpack.c.bf16 %v4828_v48, %v4827_v5 }
 0x488   : > { %5904 = vmatprep.mubr.msk.bf16.mxu1 %vm4898_vm2, %v4851_v33 }
 0x489   : > { %5905 = vmatmul.mubr.msk.bf16.gmra.mxu1 %vm4898_vm2, %v4852_v63 }
 0x48b   : > { %v5870_v18 = vpop.f32.mrf.mxu0 }
 0x48c   : > { %v4773_v11 = vadd.f32 %v5870_v18, %v9004_v44 }
 0x48d   : > { %v4764_v28 = vpop.f32.mrf.mxu0 }
 0x48e   : > { %v4765_v47 = vadd.f32 %v9004_v44, %v4764_v28  ;;  %v4833_v30 = vmax.f32 %v4773_v11, 0.0 }
 0x48f   : > { %v5871_v0 = vpop.f32.mrf.mxu0 }
 0x490   : > { %v4776_v2 = vadd.f32 %v5871_v0, %v9004_v44  ;;  %v4831_v23 = vmax.f32 %v4765_v47, 0.0 }
 0x491   : > { %v4767_v49 = vpop.f32.mrf.mxu0 }
 0x492   : > { %v4768_v60 = vadd.f32 %v9004_v44, %v4767_v49  ;;  %v4834_v9 = vmax.f32 %v4776_v2, 0.0 }
 0x494   : > { %v4832_v22 = vmax.f32 %v4768_v60, 0.0  ;;  %v4854_v4 = vpack.c.bf16 %v4834_v9, %v4833_v30 }
 0x496   : > { %v4853_v26 = vpack.c.bf16 %v4832_v22, %v4831_v23 }
 0x498   : > { %5908 = vmatprep.mubr.msk.bf16.mxu1 %vm4898_vm2, %v4853_v26 }
 0x499   : > { %5909 = vmatmul.mubr.msk.bf16.gmra.mxu1 %vm4898_vm2, %v4854_v4 }
 0x49b   : > { %v5874_v50 = vpop.f32.mrf.mxu0 }
 0x49c   : > { %v4789_v3 = vadd.f32 %v5874_v50, %v9004_v44 }
 0x49d   : > { %v4780_v25 = vpop.f32.mrf.mxu0 }
 0x49e   : > { %v4781_v43 = vadd.f32 %v9004_v44, %v4780_v25  ;;  %v4837_v13 = vmax.f32 %v4789_v3, 0.0 }
 0x49f   : > { %v5875_v45 = vpop.f32.mrf.mxu0 }
 0x4a0   : > { %v4792_v51 = vadd.f32 %v5875_v45, %v9004_v44  ;;  %v4835_v57 = vmax.f32 %v4781_v43, 0.0 }
 0x4a1   : > { %v4783_v56 = vpop.f32.mrf.mxu0 }
 0x4a2   : > { %v4784_v29 = vadd.f32 %v9004_v44, %v4783_v56  ;;  %v4838_v10 = vmax.f32 %v4792_v51, 0.0 }
 0x4a4   : > { %v4836_v15 = vmax.f32 %v4784_v29, 0.0  ;;  %v4856_v14 = vpack.c.bf16 %v4838_v10, %v4837_v13 }
 0x4a6   : > { %v4855_v35 = vpack.c.bf16 %v4836_v15, %v4835_v57 }
 0x4a8   : > { %5912 = vmatprep.mubr.msk.bf16.mxu1 %vm4898_vm2, %v4855_v35 }
 0x4a9   : > { %5913 = vmatmul.mubr.msk.bf16.gmra.mxu1 %vm4898_vm2, %v4856_v14 }
 0x4ab   : > { %v5878_v20 = vpop.f32.mrf.mxu0 }
 0x4ac   : > { %v4805_v53 = vadd.f32 %v5878_v20, %v9004_v44 }
 0x4ad   : > { %v4796_v58 = vpop.f32.mrf.mxu0 }
 0x4ae   : > { %v4797_v12 = vadd.f32 %v9004_v44, %v4796_v58  ;;  %v4841_v27 = vmax.f32 %v4805_v53, 0.0 }
 0x4af   : > { %v5879_v36 = vpop.f32.mrf.mxu0 }
 0x4b0   : > { %v4808_v1 = vadd.f32 %v5879_v36, %v9004_v44  ;;  %v4839_v21 = vmax.f32 %v4797_v12, 0.0 }
 0x4b1   : > { %v4799_v17 = vpop.f32.mrf.mxu0 }
 0x4b2   : > { %v4800_v24 = vadd.f32 %v9004_v44, %v4799_v17  ;;  %v4842_v61 = vmax.f32 %v4808_v1, 0.0 }
 0x4b4   : > { %v4840_v38 = vmax.f32 %v4800_v24, 0.0  ;;  %v4858_v41 = vpack.c.bf16 %v4842_v61, %v4841_v27 }
 0x4b6   : > { %v4857_v55 = vpack.c.bf16 %v4840_v38, %v4839_v21 }
 0x4b8   : > { %5916 = vmatprep.mubr.msk.bf16.mxu1 %vm4898_vm2, %v4857_v55 }
 0x4b9   : > { %5917 = vmatmul.mubr.msk.bf16.gmra.mxu1 %vm4898_vm2, %v4858_v41 }
 0x509   : > { %v5890_v32 = vpop.f32.mrf.mxu1 }
 0x50a   : > { %v4990_v44 = vadd.f32 %v5890_v32, %v9060_v6 }
 0x50b   : > { %v4981_v42 = vpop.f32.mrf.mxu1 }
 0x50c   : > { %5110 = vst [vmem:[%s9063_s17 + $0x10] sm:$0xff] %v4990_v44  ;;  %v4982_v16 = vadd.f32 %v9060_v6, %v4981_v42 }
 0x50d   : > { %v5891_v54 = vpop.f32.mrf.mxu1 }
 0x50e   : > { %5108 = vst [vmem:[%s9063_s17] sm:$0xff] %v4982_v16  ;;  %v4993_v52 = vadd.f32 %v5891_v54, %v9060_v6 }
 0x50f   : > { %v4984_v40 = vpop.f32.mrf.mxu1 }
 0x510   : > { %5111 = vst [vmem:[%s9063_s17 + $0x18] sm:$0xff] %v4993_v52  ;;  %v4985_v46 = vadd.f32 %v9060_v6, %v4984_v40 }
 0x512   : > { %5109 = vst [vmem:[%s9063_s17 + $0x8] sm:$0xff] %v4985_v46 }
 0x519   : > { %v5894_v37 = vpop.f32.mrf.mxu1 }
 0x51a   : > { %v5006_v31 = vadd.f32 %v5894_v37, %v9060_v6 }
 0x51b   : > { %v4997_v62 = vpop.f32.mrf.mxu1 }
 0x51c   : > { %5114 = vst [vmem:[%s9063_s17 + $0x30] sm:$0xff] %v5006_v31  ;;  %v4998_v8 = vadd.f32 %v9060_v6, %v4997_v62 }
 0x51d   : > { %v5895_v59 = vpop.f32.mrf.mxu1 }
 0x51e   : > { %5112 = vst [vmem:[%s9063_s17 + $0x20] sm:$0xff] %v4998_v8  ;;  %v5009_v19 = vadd.f32 %v5895_v59, %v9060_v6 }
 0x51f   : > { %v5000_v7 = vpop.f32.mrf.mxu1 }
 0x520   : > { %5115 = vst [vmem:[%s9063_s17 + $0x38] sm:$0xff] %v5009_v19  ;;  %v5001_v34 = vadd.f32 %v9060_v6, %v5000_v7 }
 0x522   : > { %5113 = vst [vmem:[%s9063_s17 + $0x28] sm:$0xff] %v5001_v34 }
 0x529   : > { %v5898_v5 = vpop.f32.mrf.mxu1 }
 0x52a   : > { %v5022_v48 = vadd.f32 %v5898_v5, %v9060_v6 }
 0x52b   : > { %v5013_v39 = vpop.f32.mrf.mxu1 }
 0x52c   : > { %5118 = vst [vmem:[%s9063_s17 + $0x50] sm:$0xff] %v5022_v48  ;;  %v5014_v33 = vadd.f32 %v9060_v6, %v5013_v39 }
 0x52d   : > { %v5899_v63 = vpop.f32.mrf.mxu1 }
 0x52e   : > { %5116 = vst [vmem:[%s9063_s17 + $0x40] sm:$0xff] %v5014_v33  ;;  %v5025_v18 = vadd.f32 %v5899_v63, %v9060_v6 }
 0x52f   : > { %v5016_v28 = vpop.f32.mrf.mxu1 }
 0x530   : > { %5119 = vst [vmem:[%s9063_s17 + $0x58] sm:$0xff] %v5025_v18  ;;  %v5017_v0 = vadd.f32 %v9060_v6, %v5016_v28 }
 0x532   : > { %5117 = vst [vmem:[%s9063_s17 + $0x48] sm:$0xff] %v5017_v0 }
 0x539   : > { %v5902_v47 = vpop.f32.mrf.mxu1 }
 0x53a   : > { %v5038_v2 = vadd.f32 %v5902_v47, %v9060_v6 }
 0x53b   : > { %v5029_v11 = vpop.f32.mrf.mxu1 }
 0x53c   : > { %5122 = vst [vmem:[%s9063_s17 + $0x70] sm:$0xff] %v5038_v2  ;;  %v5030_v49 = vadd.f32 %v9060_v6, %v5029_v11 }
 0x53d   : > { %v5903_v60 = vpop.f32.mrf.mxu1 }
 0x53e   : > { %5120 = vst [vmem:[%s9063_s17 + $0x60] sm:$0xff] %v5030_v49  ;;  %v5041_v9 = vadd.f32 %v5903_v60, %v9060_v6 }
 0x53f   : > { %v5032_v23 = vpop.f32.mrf.mxu1 }
 0x540   : > { %5123 = vst [vmem:[%s9063_s17 + $0x78] sm:$0xff] %v5041_v9  ;;  %v5033_v22 = vadd.f32 %v9060_v6, %v5032_v23 }
 0x542   : > { %5121 = vst [vmem:[%s9063_s17 + $0x68] sm:$0xff] %v5033_v22 }
 0x549   : > { %v5906_v30 = vpop.f32.mrf.mxu1 }
 0x54a   : > { %v5054_v26 = vadd.f32 %v5906_v30, %v9060_v6 }
 0x54b   : > { %v5045_v4 = vpop.f32.mrf.mxu1 }
 0x54c   : > { %5126 = vst [vmem:[%s9063_s17 + $0x90] sm:$0xff] %v5054_v26  ;;  %v5046_v50 = vadd.f32 %v9060_v6, %v5045_v4 }
 0x54d   : > { %v5907_v25 = vpop.f32.mrf.mxu1 }
 0x54e   : > { %5124 = vst [vmem:[%s9063_s17 + $0x80] sm:$0xff] %v5046_v50  ;;  %v5057_v45 = vadd.f32 %v5907_v25, %v9060_v6 }
 0x54f   : > { %v5048_v43 = vpop.f32.mrf.mxu1 }
 0x550   : > { %5127 = vst [vmem:[%s9063_s17 + $0x98] sm:$0xff] %v5057_v45  ;;  %v5049_v51 = vadd.f32 %v9060_v6, %v5048_v43 }
 0x552   : > { %5125 = vst [vmem:[%s9063_s17 + $0x88] sm:$0xff] %v5049_v51 }
 0x559   : > { %v5910_v3 = vpop.f32.mrf.mxu1 }
 0x55a   : > { %v5070_v56 = vadd.f32 %v5910_v3, %v9060_v6 }
 0x55b   : > { %v5061_v29 = vpop.f32.mrf.mxu1 }
 0x55c   : > { %5130 = vst [vmem:[%s9063_s17 + $0xb0] sm:$0xff] %v5070_v56  ;;  %v5062_v10 = vadd.f32 %v9060_v6, %v5061_v29 }
 0x55d   : > { %v5911_v57 = vpop.f32.mrf.mxu1 }
 0x55e   : > { %5128 = vst [vmem:[%s9063_s17 + $0xa0] sm:$0xff] %v5062_v10  ;;  %v5073_v15 = vadd.f32 %v5911_v57, %v9060_v6 }
 0x55f   : > { %v5064_v13 = vpop.f32.mrf.mxu1 }
 0x560   : > { %5131 = vst [vmem:[%s9063_s17 + $0xb8] sm:$0xff] %v5073_v15  ;;  %v5065_v35 = vadd.f32 %v9060_v6, %v5064_v13 }
 0x562   : > { %5129 = vst [vmem:[%s9063_s17 + $0xa8] sm:$0xff] %v5065_v35 }
 0x569   : > { %v5914_v14 = vpop.f32.mrf.mxu1 }
 0x56a   : > { %v5086_v20 = vadd.f32 %v5914_v14, %v9060_v6 }
 0x56b   : > { %v5077_v58 = vpop.f32.mrf.mxu1 }
 0x56c   : > { %5134 = vst [vmem:[%s9063_s17 + $0xd0] sm:$0xff] %v5086_v20  ;;  %v5078_v36 = vadd.f32 %v9060_v6, %v5077_v58 }
 0x56d   : > { %v5915_v12 = vpop.f32.mrf.mxu1 }
 0x56e   : > { %5132 = vst [vmem:[%s9063_s17 + $0xc0] sm:$0xff] %v5078_v36  ;;  %v5089_v1 = vadd.f32 %v5915_v12, %v9060_v6 }
 0x56f   : > { %v5080_v53 = vpop.f32.mrf.mxu1 }
 0x570   : > { %5135 = vst [vmem:[%s9063_s17 + $0xd8] sm:$0xff] %v5089_v1  ;;  %v5081_v17 = vadd.f32 %v9060_v6, %v5080_v53 }
 0x572   : > { %5133 = vst [vmem:[%s9063_s17 + $0xc8] sm:$0xff] %v5081_v17 }
 0x579   : > { %v5918_v24 = vpop.f32.mrf.mxu1 }
 0x57a   : > { %v5102_v61 = vadd.f32 %v5918_v24, %v9060_v6 }
 0x57b   : > { %v5093_v21 = vpop.f32.mrf.mxu1 }
 0x57c   : > { %5138 = vst [vmem:[%s9063_s17 + $0xf0] sm:$0xff] %v5102_v61  ;;  %v5094_v38 = vadd.f32 %v9060_v6, %v5093_v21 }
 0x57d   : > { %v5919_v27 = vpop.f32.mrf.mxu1 }
 0x57e   : > { %5136 = vst [vmem:[%s9063_s17 + $0xe0] sm:$0xff] %v5094_v38  ;;  %v5105_v55 = vadd.f32 %v5919_v27, %v9060_v6 }
 0x57f   : > { %v5096_v41 = vpop.f32.mrf.mxu1 }
 0x580   : > { %5139 = vst [vmem:[%s9063_s17 + $0xf8] sm:$0xff] %v5105_v55  ;;  %v5097_v32 = vadd.f32 %v9060_v6, %v5096_v41 }
 0x582   : > { %5137 = vst [vmem:[%s9063_s17 + $0xe8] sm:$0xff] %v5097_v32 }
 0x583   : > { %6371 = shalt.err (!%p6368_p3)
}
 0x584   : > { %s6372_s28 = scalar_lea.hbm %s9130_s25, 4096  ;;  %s6376_s23 = scalar_lea.hbm %s9188_s9, 8192 }
 0x585   : > { %p6373_p4 = scmp.ne.s32.totalorder %s9130_s25, %s6372_s28  ;;  %p6377_p9 = scmp.lt.s32.totalorder %s9130_s25, %s9188_s9 }
 0x586   : > { %p6378_p10 = scmp.lt.s32.totalorder %s6376_s23, %s6372_s28 }
 0x587   : > { %p6374_p7 = pnand %p6373_p4, %p6511_p5 }
 0x588   : > { %p6379_p11 = por %p6378_p10, %p6377_p9 }
 0x589   : > { %p6375_p8 = pneg %p6374_p7 }
 0x58b   : > { %p6380_p12 = pnand %p6379_p11, %p6375_p8 }
 0x58d   : > { %6383 = shalt.err (!%p6380_p12)
}
 0x58e   : > { %s6421_s26 = smov 128   ;;  %s6422_s27 = smov 8  }
 0x58f   : > { %5920 = dma.vmem_to_hbm [thread:$0]  (%p6511_p5), %s9132_s24, 4096, %s9130_s25, %s9139_s13, %s6421_s26, %s6421_s26, %s6422_s27  }
 0x590 PF: > { %p5926_p13 = scmp.ge.s32.totalorder %s6418_s12, 2  ;;  %s5169_s29 = sand.u32 1, %s6406_s30  }
 0x591   : > { %s5170_s14 = scalar_lea.sflag [#allocation3], %s5169_s29 }
 0x592   : > { %p5923_p0 = pnand %p5926_p13, %p6515_p6 }
 0x594   : > { %p5924_p1 = pneg %p5923_p0 }
 0x596   : > { %6401 = dma.done.wait (%p5924_p1), %s5170_s14, 4096  }
 0x597   : > { %6403 = vsyncadd (%p5924_p1), %s5170_s14, 4294963200  ;;  %p19_p2 = scmp.ge.s32.totalorder %s6498_s15, 4   ;;  %s9613_s30 = smov %s6410_s10 }
 0x598   : > { %s9614_s10 = smov %s6414_s11  ;;  %s9615_s11 = smov %s6509_s18 }
 0x599   : > { %s9616_s12 = smov %s6498_s15  ;;  %21 = sbr.rel (!%p19_p2) target bundleno = 3 (0x3), region = 91 }
 0x59e   :  { %5175 = vsyncpa [#allocation3], 1 }
 0x59f   :  { %5177 = vsyncpa [#allocation3 + $0x1], 1 }

</bundles_post_ra>
